<compile_context>
chip_gen: v7x
topology: tpu7x:2x2x1
jax: 0.10.0
libtpu: 0.0.40
codegen_flags: <defaults>
</compile_context>

<pallas_src>
import jax
import jax.numpy as jnp
import numpy as np
from jax.experimental import pallas as pl
from jax.experimental.pallas import tpu as pltpu

COUT_PAD = 8  # num_classes (5) padded up to a sublane multiple for the output


# ----------------------------------------------------------------------------
# Fused kernel: conv3x3+ReLU -> conv3x3+ReLU -> conv1x1+ReLU -> conv1x1 (head)
# ----------------------------------------------------------------------------
def _segmentor_fused_kernel(x_ref, w1_ref, b1_ref, w2_ref, b2_ref,
                            w3_ref, b3_ref, w4_ref, b4_ref,
                            o_ref, xpad_ref, fpad_ref):
    """One batch element per grid step.

    x_ref : (1, H, W, Cin)        input tile (NHWC)
    w1_ref: (9*Cin, Cmid)  bf16   im2col-reshaped 3x3 weights, layer 1
    w2_ref: (9*Cmid, Cfeat) bf16  im2col-reshaped 3x3 weights, layer 2
    w3_ref: (Cfeat, Cfeat) bf16   aggregator 1x1
    w4_ref: (COUT_PAD, Cfeat) bf16  seg-head 1x1, transposed + class-padded
    b*_ref: f32 biases
    o_ref : (1, COUT_PAD, H*W)    lane-dense logits (classes on sublanes)
    xpad_ref: (H+2, W+2, Cin)  f32 VMEM scratch (padded input)
    fpad_ref: (H+2, W+2, Cmid) f32 VMEM scratch (padded layer-1 features)
    """
    _, H, W, Cin = x_ref.shape
    Cmid = w1_ref.shape[1]

    def im2col(pad_ref, c):
        # 9 shifted views of the padded map, concatenated on the channel axis.
        taps = []
        for dy in range(3):
            for dx in range(3):
                taps.append(pad_ref[dy:dy + H, dx:dx + W, :].reshape(H * W, c))
        return jnp.concatenate(taps, axis=-1)          # (H*W, 9*c)

    # ---- backbone conv1: 3x3, pad 1, ReLU -----------------------------------
    xpad_ref[...] = jnp.zeros_like(xpad_ref)
    xpad_ref[1:H + 1, 1:W + 1, :] = x_ref[0]
    p1 = im2col(xpad_ref, Cin).astype(jnp.bfloat16)     # (H*W, 9*Cin)
    f1 = jnp.dot(p1, w1_ref[...], preferred_element_type=jnp.float32)
    f1 = jnp.maximum(f1 + b1_ref[...], 0.0)             # (H*W, Cmid) f32

    # ---- backbone conv2: 3x3, pad 1, ReLU -----------------------------------
    fpad_ref[...] = jnp.zeros_like(fpad_ref)
    fpad_ref[1:H + 1, 1:W + 1, :] = f1.reshape(H, W, Cmid)
    p2 = im2col(fpad_ref, Cmid).astype(jnp.bfloat16)    # (H*W, 9*Cmid)
    f2 = jnp.dot(p2, w2_ref[...], preferred_element_type=jnp.float32)
    f2 = jnp.maximum(f2 + b2_ref[...], 0.0)             # (H*W, Cfeat)

    # ---- aggregator: 1x1 conv, ReLU -----------------------------------------
    f3 = jnp.dot(f2.astype(jnp.bfloat16), w3_ref[...],
                 preferred_element_type=jnp.float32)
    f3 = jnp.maximum(f3 + b3_ref[...], 0.0)             # (H*W, Cfeat)

    # ---- seg head: 1x1 conv, lane-dense output (classes x spatial) ----------
    # logits[c, m] = sum_k w4[c, k] * f3[m, k]
    logits = jax.lax.dot_general(
        w4_ref[...], f3.astype(jnp.bfloat16),
        dimension_numbers=(((1,), (1,)), ((), ())),
        preferred_element_type=jnp.float32)             # (COUT_PAD, H*W)
    logits = logits + b4_ref[...]
    o_ref[...] = logits[None].astype(o_ref.dtype)


# ----------------------------------------------------------------------------
# Parameters (concrete config) and forward wrapper
# ----------------------------------------------------------------------------
def init_params(key, c_in=4, c_mid=16, c_feat=32, num_classes=5):
    ks = jax.random.split(key, 8)
    scale = 0.1
    return {
        # backbone
        "bb1_w": scale * jax.random.normal(ks[0], (3, 3, c_in, c_mid), jnp.float32),
        "bb1_b": scale * jax.random.normal(ks[1], (c_mid,), jnp.float32),
        "bb2_w": scale * jax.random.normal(ks[2], (3, 3, c_mid, c_feat), jnp.float32),
        "bb2_b": scale * jax.random.normal(ks[3], (c_feat,), jnp.float32),
        # aggregator
        "agg_w": scale * jax.random.normal(ks[4], (c_feat, c_feat), jnp.float32),
        "agg_b": scale * jax.random.normal(ks[5], (c_feat,), jnp.float32),
        # seg head
        "seg_w": scale * jax.random.normal(ks[6], (c_feat, num_classes), jnp.float32),
        "seg_b": scale * jax.random.normal(ks[7], (num_classes,), jnp.float32),
    }


@jax.jit
def segmentor_forward(params, batch_nchw):
    """Mirrors Segmentor.forward: fea = backbone(x); fea = aggregator(fea);
    output = {}; for head in heads: output.update(head(fea)).

    batch_nchw: (N, C, H, W) float32 (PyTorch convention). Returns NCHW dict.
    """
    N, Cin, H, W = batch_nchw.shape
    Cmid = params["bb1_w"].shape[-1]
    Cfeat = params["bb2_w"].shape[-1]
    num_classes = params["seg_w"].shape[-1]

    # NCHW -> NHWC for the kernel input.
    x = jnp.transpose(batch_nchw, (0, 2, 3, 1))

    # Pre-reshape weights for im2col matmuls; bf16 MXU operands, f32 biases.
    w1 = params["bb1_w"].reshape(9 * Cin, Cmid).astype(jnp.bfloat16)
    b1 = params["bb1_b"].reshape(1, Cmid).astype(jnp.float32)
    w2 = params["bb2_w"].reshape(9 * Cmid, Cfeat).astype(jnp.bfloat16)
    b2 = params["bb2_b"].reshape(1, Cfeat).astype(jnp.float32)
    w3 = params["agg_w"].astype(jnp.bfloat16)
    b3 = params["agg_b"].reshape(1, Cfeat).astype(jnp.float32)
    # Head weights: transposed (classes, Cfeat) and class-padded to COUT_PAD.
    w4t = jnp.zeros((COUT_PAD, Cfeat), jnp.bfloat16)
    w4t = w4t.at[:num_classes].set(params["seg_w"].T.astype(jnp.bfloat16))
    b4 = jnp.zeros((COUT_PAD, 1), jnp.float32)
    b4 = b4.at[:num_classes, 0].set(params["seg_b"])

    out = pl.pallas_call(
        _segmentor_fused_kernel,
        out_shape=jax.ShapeDtypeStruct((N, COUT_PAD, H * W), jnp.float32),
        grid_spec=pltpu.PrefetchScalarGridSpec(
            num_scalar_prefetch=0,
            grid=(N,),
            in_specs=[
                pl.BlockSpec((1, H, W, Cin), lambda n: (n, 0, 0, 0)),
                pl.BlockSpec((9 * Cin, Cmid), lambda n: (0, 0)),
                pl.BlockSpec((1, Cmid), lambda n: (0, 0)),
                pl.BlockSpec((9 * Cmid, Cfeat), lambda n: (0, 0)),
                pl.BlockSpec((1, Cfeat), lambda n: (0, 0)),
                pl.BlockSpec((Cfeat, Cfeat), lambda n: (0, 0)),
                pl.BlockSpec((1, Cfeat), lambda n: (0, 0)),
                pl.BlockSpec((COUT_PAD, Cfeat), lambda n: (0, 0)),
                pl.BlockSpec((COUT_PAD, 1), lambda n: (0, 0)),
            ],
            out_specs=pl.BlockSpec((1, COUT_PAD, H * W), lambda n: (n, 0, 0)),
            scratch_shapes=[
                pltpu.VMEM((H + 2, W + 2, Cin), jnp.float32),   # padded input
                pltpu.VMEM((H + 2, W + 2, Cmid), jnp.float32),  # padded layer-1 fea
            ],
        ),
        compiler_params=pltpu.CompilerParams(
            dimension_semantics=("parallel",)),
    )(x, w1, b1, w2, b2, w3, b3, w4t, b4)

    # (N, COUT_PAD, H*W) -> drop class padding -> NCHW.
    seg = out[:, :num_classes, :].reshape(N, num_classes, H, W)
    return {"seg": seg}


# ----------------------------------------------------------------------------
# Pure-JAX reference (same math, f32) for a loose numerical self-check.
# ----------------------------------------------------------------------------
def reference_forward(params, batch_nchw):
    x = jnp.transpose(batch_nchw, (0, 2, 3, 1))
    dn = ("NHWC", "HWIO", "NHWC")
    y = jax.lax.conv_general_dilated(x, params["bb1_w"], (1, 1),
                                     ((1, 1), (1, 1)), dimension_numbers=dn)
    y = jax.nn.relu(y + params["bb1_b"])
    y = jax.lax.conv_general_dilated(y, params["bb2_w"], (1, 1),
                                     ((1, 1), (1, 1)), dimension_numbers=dn)
    y = jax.nn.relu(y + params["bb2_b"])
    y = jax.nn.relu(jnp.einsum("nhwc,cd->nhwd", y, params["agg_w"]) + params["agg_b"])
    seg = jnp.einsum("nhwc,cd->nhwd", y, params["seg_w"]) + params["seg_b"]
    return {"seg": jnp.transpose(seg, (0, 3, 1, 2))}


if __name__ == "__main__":
    key = jax.random.PRNGKey(0)
    k_params, k_data = jax.random.split(key)

    N, C, H, W = 2, 4, 16, 16
    params = init_params(k_params, c_in=C)
    batch = jax.random.normal(k_data, (N, C, H, W), jnp.float32)

    out = segmentor_forward(params, batch)
    jax.block_until_ready(out)

    assert out["seg"].shape == (N, 5, H, W), out["seg"].shape
    assert out["seg"].dtype == jnp.float32

    ref = reference_forward(params, batch)
    np.testing.assert_allclose(np.asarray(out["seg"]), np.asarray(ref["seg"]),
                               atol=5e-2, rtol=5e-2)
    print("KERNEL_OK")
</pallas_src>

<mosaic_0001>
module attributes {stable_mosaic.version = 11 : i64} {
  func.func @_segmentor_fused_kernel(%arg0: i32, %arg1: memref<1x16x16x4xf32, #tpu.memory_space<vmem>>, %arg2: memref<36x16xbf16, #tpu.memory_space<vmem>>, %arg3: memref<1x16xf32, #tpu.memory_space<vmem>>, %arg4: memref<144x32xbf16, #tpu.memory_space<vmem>>, %arg5: memref<1x32xf32, #tpu.memory_space<vmem>>, %arg6: memref<32x32xbf16, #tpu.memory_space<vmem>>, %arg7: memref<1x32xf32, #tpu.memory_space<vmem>>, %arg8: memref<8x32xbf16, #tpu.memory_space<vmem>>, %arg9: memref<8x1xf32, #tpu.memory_space<vmem>>, %arg10: memref<1x8x256xf32, #tpu.memory_space<vmem>>, %arg11: memref<18x18x4xf32, #tpu.memory_space<vmem>>, %arg12: memref<18x18x16xf32, #tpu.memory_space<vmem>>) attributes {dimension_semantics = [#tpu.dimension_semantics<parallel>], iteration_bounds = array<i64: 2>, scalar_prefetch = 0 : i64, scratch_operands = 2 : i64, tpu.core_type = #tpu.core_type<tc>, window_params = [{transform_indices = @transform_0, window_bounds = array<i64: 1, 16, 16, 4>}, {pipeline_mode = #tpu.pipeline_mode<synchronous>, transform_indices = @transform_1, window_bounds = array<i64: 36, 16>}, {pipeline_mode = #tpu.pipeline_mode<synchronous>, transform_indices = @transform_2, window_bounds = array<i64: 1, 16>}, {pipeline_mode = #tpu.pipeline_mode<synchronous>, transform_indices = @transform_3, window_bounds = array<i64: 144, 32>}, {pipeline_mode = #tpu.pipeline_mode<synchronous>, transform_indices = @transform_4, window_bounds = array<i64: 1, 32>}, {pipeline_mode = #tpu.pipeline_mode<synchronous>, transform_indices = @transform_5, window_bounds = array<i64: 32, 32>}, {pipeline_mode = #tpu.pipeline_mode<synchronous>, transform_indices = @transform_6, window_bounds = array<i64: 1, 32>}, {pipeline_mode = #tpu.pipeline_mode<synchronous>, transform_indices = @transform_7, window_bounds = array<i64: 8, 32>}, {pipeline_mode = #tpu.pipeline_mode<synchronous>, transform_indices = @transform_8, window_bounds = array<i64: 8, 1>}, {transform_indices = @transform_9, window_bounds = array<i64: 1, 8, 256>}]} {
    %cst = arith.constant 0.000000e+00 : f32
    %0 = vector.broadcast %cst : f32 to vector<18x18x4xf32>
    %c0 = arith.constant 0 : index
    %c0_0 = arith.constant 0 : index
    %c0_1 = arith.constant 0 : index
    %1 = vector.load %arg11[%c0, %c0_0, %c0_1] : memref<18x18x4xf32, #tpu.memory_space<vmem>>, vector<18x18x4xf32>
    tpu.vector_store %arg11[%c0, %c0_0, %c0_1], %0 {strides = array<i32>} : memref<18x18x4xf32, #tpu.memory_space<vmem>>, vector<18x18x4xf32>,
    %c0_2 = arith.constant 0 : index
    %c0_3 = arith.constant 0 : index
    %c0_4 = arith.constant 0 : index
    %c0_5 = arith.constant 0 : index
    %2 = vector.load %arg1[%c0_2, %c0_3, %c0_4, %c0_5] : memref<1x16x16x4xf32, #tpu.memory_space<vmem>>, vector<1x16x16x4xf32>
    %3 = vector.shape_cast %2 : vector<1x16x16x4xf32> to vector<16x16x4xf32>
    %c1 = arith.constant 1 : index
    %c1_6 = arith.constant 1 : index
    %c0_7 = arith.constant 0 : index
    %4 = vector.load %arg11[%c1, %c1_6, %c0_7] : memref<18x18x4xf32, #tpu.memory_space<vmem>>, vector<16x16x4xf32>
    tpu.vector_store %arg11[%c1, %c1_6, %c0_7], %3 {strides = array<i32>} : memref<18x18x4xf32, #tpu.memory_space<vmem>>, vector<16x16x4xf32>,
    %c0_8 = arith.constant 0 : index
    %c0_9 = arith.constant 0 : index
    %c0_10 = arith.constant 0 : index
    %5 = vector.load %arg11[%c0_8, %c0_9, %c0_10] : memref<18x18x4xf32, #tpu.memory_space<vmem>>, vector<16x16x4xf32>
    %6 = vector.shape_cast %5 : vector<16x16x4xf32> to vector<256x4xf32>
    %c0_11 = arith.constant 0 : index
    %c1_12 = arith.constant 1 : index
    %c0_13 = arith.constant 0 : index
    %7 = vector.load %arg11[%c0_11, %c1_12, %c0_13] : memref<18x18x4xf32, #tpu.memory_space<vmem>>, vector<16x16x4xf32>
    %8 = vector.shape_cast %7 : vector<16x16x4xf32> to vector<256x4xf32>
    %c0_14 = arith.constant 0 : index
    %c2 = arith.constant 2 : index
    %c0_15 = arith.constant 0 : index
    %9 = vector.load %arg11[%c0_14, %c2, %c0_15] : memref<18x18x4xf32, #tpu.memory_space<vmem>>, vector<16x16x4xf32>
    %10 = vector.shape_cast %9 : vector<16x16x4xf32> to vector<256x4xf32>
    %c1_16 = arith.constant 1 : index
    %c0_17 = arith.constant 0 : index
    %c0_18 = arith.constant 0 : index
    %11 = vector.load %arg11[%c1_16, %c0_17, %c0_18] : memref<18x18x4xf32, #tpu.memory_space<vmem>>, vector<16x16x4xf32>
    %12 = vector.shape_cast %11 : vector<16x16x4xf32> to vector<256x4xf32>
    %c1_19 = arith.constant 1 : index
    %c1_20 = arith.constant 1 : index
    %c0_21 = arith.constant 0 : index
    %13 = vector.load %arg11[%c1_19, %c1_20, %c0_21] : memref<18x18x4xf32, #tpu.memory_space<vmem>>, vector<16x16x4xf32>
    %14 = vector.shape_cast %13 : vector<16x16x4xf32> to vector<256x4xf32>
    %c1_22 = arith.constant 1 : index
    %c2_23 = arith.constant 2 : index
    %c0_24 = arith.constant 0 : index
    %15 = vector.load %arg11[%c1_22, %c2_23, %c0_24] : memref<18x18x4xf32, #tpu.memory_space<vmem>>, vector<16x16x4xf32>
    %16 = vector.shape_cast %15 : vector<16x16x4xf32> to vector<256x4xf32>
    %c2_25 = arith.constant 2 : index
    %c0_26 = arith.constant 0 : index
    %c0_27 = arith.constant 0 : index
    %17 = vector.load %arg11[%c2_25, %c0_26, %c0_27] : memref<18x18x4xf32, #tpu.memory_space<vmem>>, vector<16x16x4xf32>
    %18 = vector.shape_cast %17 : vector<16x16x4xf32> to vector<256x4xf32>
    %c2_28 = arith.constant 2 : index
    %c1_29 = arith.constant 1 : index
    %c0_30 = arith.constant 0 : index
    %19 = vector.load %arg11[%c2_28, %c1_29, %c0_30] : memref<18x18x4xf32, #tpu.memory_space<vmem>>, vector<16x16x4xf32>
    %20 = vector.shape_cast %19 : vector<16x16x4xf32> to vector<256x4xf32>
    %c2_31 = arith.constant 2 : index
    %c2_32 = arith.constant 2 : index
    %c0_33 = arith.constant 0 : index
    %21 = vector.load %arg11[%c2_31, %c2_32, %c0_33] : memref<18x18x4xf32, #tpu.memory_space<vmem>>, vector<16x16x4xf32>
    %22 = vector.shape_cast %21 : vector<16x16x4xf32> to vector<256x4xf32>
    %23 = tpu.concatenate %6, %8, %10, %12, %14, %16, %18, %20, %22 in 1 : vector<256x4xf32>, vector<256x4xf32>, vector<256x4xf32>, vector<256x4xf32>, vector<256x4xf32>, vector<256x4xf32>, vector<256x4xf32>, vector<256x4xf32>, vector<256x4xf32> -> vector<256x36xf32>
    %24 = arith.truncf %23 : vector<256x36xf32> to vector<256x36xbf16>
    %c0_34 = arith.constant 0 : index
    %c0_35 = arith.constant 0 : index
    %25 = vector.load %arg2[%c0_34, %c0_35] : memref<36x16xbf16, #tpu.memory_space<vmem>>, vector<36x16xbf16>
    %cst_36 = arith.constant dense<0.000000e+00> : vector<256x16xf32>
    %26 = tpu.matmul %24, %25, %cst_36 {dimension_numbers = #tpu.dot_dimension_numbers<[1], [0], [0], [1], [0, 0, 1, 1], [], []>} : vector<256x36xbf16>, vector<36x16xbf16>, vector<256x16xf32> -> vector<256x16xf32>
    %c0_37 = arith.constant 0 : index
    %c0_38 = arith.constant 0 : index
    %27 = vector.load %arg3[%c0_37, %c0_38] : memref<1x16xf32, #tpu.memory_space<vmem>>, vector<1x16xf32>
    %28 = vector.broadcast %27 : vector<1x16xf32> to vector<256x16xf32>
    %29 = arith.addf %26, %28 : vector<256x16xf32>
    %cst_39 = arith.constant 0.000000e+00 : f32
    %30 = vector.broadcast %cst_39 : f32 to vector<256x16xf32>
    %31 = arith.maximumf %29, %30 : vector<256x16xf32>
    %cst_40 = arith.constant 0.000000e+00 : f32
    %32 = vector.broadcast %cst_40 : f32 to vector<18x18x16xf32>
    %c0_41 = arith.constant 0 : index
    %c0_42 = arith.constant 0 : index
    %c0_43 = arith.constant 0 : index
    %33 = vector.load %arg12[%c0_41, %c0_42, %c0_43] : memref<18x18x16xf32, #tpu.memory_space<vmem>>, vector<18x18x16xf32>
    tpu.vector_store %arg12[%c0_41, %c0_42, %c0_43], %32 {strides = array<i32>} : memref<18x18x16xf32, #tpu.memory_space<vmem>>, vector<18x18x16xf32>,
    %34 = vector.shape_cast %31 : vector<256x16xf32> to vector<16x16x16xf32>
    %c1_44 = arith.constant 1 : index
    %c1_45 = arith.constant 1 : index
    %c0_46 = arith.constant 0 : index
    %35 = vector.load %arg12[%c1_44, %c1_45, %c0_46] : memref<18x18x16xf32, #tpu.memory_space<vmem>>, vector<16x16x16xf32>
    tpu.vector_store %arg12[%c1_44, %c1_45, %c0_46], %34 {strides = array<i32>} : memref<18x18x16xf32, #tpu.memory_space<vmem>>, vector<16x16x16xf32>,
    %c0_47 = arith.constant 0 : index
    %c0_48 = arith.constant 0 : index
    %c0_49 = arith.constant 0 : index
    %36 = vector.load %arg12[%c0_47, %c0_48, %c0_49] : memref<18x18x16xf32, #tpu.memory_space<vmem>>, vector<16x16x16xf32>
    %37 = vector.shape_cast %36 : vector<16x16x16xf32> to vector<256x16xf32>
    %c0_50 = arith.constant 0 : index
    %c1_51 = arith.constant 1 : index
    %c0_52 = arith.constant 0 : index
    %38 = vector.load %arg12[%c0_50, %c1_51, %c0_52] : memref<18x18x16xf32, #tpu.memory_space<vmem>>, vector<16x16x16xf32>
    %39 = vector.shape_cast %38 : vector<16x16x16xf32> to vector<256x16xf32>
    %c0_53 = arith.constant 0 : index
    %c2_54 = arith.constant 2 : index
    %c0_55 = arith.constant 0 : index
    %40 = vector.load %arg12[%c0_53, %c2_54, %c0_55] : memref<18x18x16xf32, #tpu.memory_space<vmem>>, vector<16x16x16xf32>
    %41 = vector.shape_cast %40 : vector<16x16x16xf32> to vector<256x16xf32>
    %c1_56 = arith.constant 1 : index
    %c0_57 = arith.constant 0 : index
    %c0_58 = arith.constant 0 : index
    %42 = vector.load %arg12[%c1_56, %c0_57, %c0_58] : memref<18x18x16xf32, #tpu.memory_space<vmem>>, vector<16x16x16xf32>
    %43 = vector.shape_cast %42 : vector<16x16x16xf32> to vector<256x16xf32>
    %c1_59 = arith.constant 1 : index
    %c1_60 = arith.constant 1 : index
    %c0_61 = arith.constant 0 : index
    %44 = vector.load %arg12[%c1_59, %c1_60, %c0_61] : memref<18x18x16xf32, #tpu.memory_space<vmem>>, vector<16x16x16xf32>
    %45 = vector.shape_cast %44 : vector<16x16x16xf32> to vector<256x16xf32>
    %c1_62 = arith.constant 1 : index
    %c2_63 = arith.constant 2 : index
    %c0_64 = arith.constant 0 : index
    %46 = vector.load %arg12[%c1_62, %c2_63, %c0_64] : memref<18x18x16xf32, #tpu.memory_space<vmem>>, vector<16x16x16xf32>
    %47 = vector.shape_cast %46 : vector<16x16x16xf32> to vector<256x16xf32>
    %c2_65 = arith.constant 2 : index
    %c0_66 = arith.constant 0 : index
    %c0_67 = arith.constant 0 : index
    %48 = vector.load %arg12[%c2_65, %c0_66, %c0_67] : memref<18x18x16xf32, #tpu.memory_space<vmem>>, vector<16x16x16xf32>
    %49 = vector.shape_cast %48 : vector<16x16x16xf32> to vector<256x16xf32>
    %c2_68 = arith.constant 2 : index
    %c1_69 = arith.constant 1 : index
    %c0_70 = arith.constant 0 : index
    %50 = vector.load %arg12[%c2_68, %c1_69, %c0_70] : memref<18x18x16xf32, #tpu.memory_space<vmem>>, vector<16x16x16xf32>
    %51 = vector.shape_cast %50 : vector<16x16x16xf32> to vector<256x16xf32>
    %c2_71 = arith.constant 2 : index
    %c2_72 = arith.constant 2 : index
    %c0_73 = arith.constant 0 : index
    %52 = vector.load %arg12[%c2_71, %c2_72, %c0_73] : memref<18x18x16xf32, #tpu.memory_space<vmem>>, vector<16x16x16xf32>
    %53 = vector.shape_cast %52 : vector<16x16x16xf32> to vector<256x16xf32>
    %54 = tpu.concatenate %37, %39, %41, %43, %45, %47, %49, %51, %53 in 1 : vector<256x16xf32>, vector<256x16xf32>, vector<256x16xf32>, vector<256x16xf32>, vector<256x16xf32>, vector<256x16xf32>, vector<256x16xf32>, vector<256x16xf32>, vector<256x16xf32> -> vector<256x144xf32>
    %55 = arith.truncf %54 : vector<256x144xf32> to vector<256x144xbf16>
    %c0_74 = arith.constant 0 : index
    %c0_75 = arith.constant 0 : index
    %56 = vector.load %arg4[%c0_74, %c0_75] : memref<144x32xbf16, #tpu.memory_space<vmem>>, vector<144x32xbf16>
    %cst_76 = arith.constant dense<0.000000e+00> : vector<256x32xf32>
    %57 = tpu.matmul %55, %56, %cst_76 {dimension_numbers = #tpu.dot_dimension_numbers<[1], [0], [0], [1], [0, 0, 1, 1], [], []>} : vector<256x144xbf16>, vector<144x32xbf16>, vector<256x32xf32> -> vector<256x32xf32>
    %c0_77 = arith.constant 0 : index
    %c0_78 = arith.constant 0 : index
    %58 = vector.load %arg5[%c0_77, %c0_78] : memref<1x32xf32, #tpu.memory_space<vmem>>, vector<1x32xf32>
    %59 = vector.broadcast %58 : vector<1x32xf32> to vector<256x32xf32>
    %60 = arith.addf %57, %59 : vector<256x32xf32>
    %cst_79 = arith.constant 0.000000e+00 : f32
    %61 = vector.broadcast %cst_79 : f32 to vector<256x32xf32>
    %62 = arith.maximumf %60, %61 : vector<256x32xf32>
    %63 = arith.truncf %62 : vector<256x32xf32> to vector<256x32xbf16>
    %c0_80 = arith.constant 0 : index
    %c0_81 = arith.constant 0 : index
    %64 = vector.load %arg6[%c0_80, %c0_81] : memref<32x32xbf16, #tpu.memory_space<vmem>>, vector<32x32xbf16>
    %cst_82 = arith.constant dense<0.000000e+00> : vector<256x32xf32>
    %65 = tpu.matmul %63, %64, %cst_82 {dimension_numbers = #tpu.dot_dimension_numbers<[1], [0], [0], [1], [0, 0, 1, 1], [], []>} : vector<256x32xbf16>, vector<32x32xbf16>, vector<256x32xf32> -> vector<256x32xf32>
    %c0_83 = arith.constant 0 : index
    %c0_84 = arith.constant 0 : index
    %66 = vector.load %arg7[%c0_83, %c0_84] : memref<1x32xf32, #tpu.memory_space<vmem>>, vector<1x32xf32>
    %67 = vector.broadcast %66 : vector<1x32xf32> to vector<256x32xf32>
    %68 = arith.addf %65, %67 : vector<256x32xf32>
    %cst_85 = arith.constant 0.000000e+00 : f32
    %69 = vector.broadcast %cst_85 : f32 to vector<256x32xf32>
    %70 = arith.maximumf %68, %69 : vector<256x32xf32>
    %c0_86 = arith.constant 0 : index
    %c0_87 = arith.constant 0 : index
    %71 = vector.load %arg8[%c0_86, %c0_87] : memref<8x32xbf16, #tpu.memory_space<vmem>>, vector<8x32xbf16>
    %72 = arith.truncf %70 : vector<256x32xf32> to vector<256x32xbf16>
    %cst_88 = arith.constant dense<0.000000e+00> : vector<8x256xf32>
    %73 = tpu.matmul %71, %72, %cst_88 {dimension_numbers = #tpu.dot_dimension_numbers<[1], [1], [0], [0], [0, 0, 1, 0], [], []>} : vector<8x32xbf16>, vector<256x32xbf16>, vector<8x256xf32> -> vector<8x256xf32>
    %c0_89 = arith.constant 0 : index
    %c0_90 = arith.constant 0 : index
    %74 = vector.load %arg9[%c0_89, %c0_90] : memref<8x1xf32, #tpu.memory_space<vmem>>, vector<8x1xf32>
    %75 = vector.broadcast %74 : vector<8x1xf32> to vector<8x256xf32>
    %76 = arith.addf %73, %75 : vector<8x256xf32>
    %77 = vector.shape_cast %76 : vector<8x256xf32> to vector<1x8x256xf32>
    %c0_91 = arith.constant 0 : index
    %c0_92 = arith.constant 0 : index
    %c0_93 = arith.constant 0 : index
    %78 = vector.load %arg10[%c0_91, %c0_92, %c0_93] : memref<1x8x256xf32, #tpu.memory_space<vmem>>, vector<1x8x256xf32>
    tpu.vector_store %arg10[%c0_91, %c0_92, %c0_93], %77 {strides = array<i32>} : memref<1x8x256xf32, #tpu.memory_space<vmem>>, vector<1x8x256xf32>,
    return
  }
  func.func @transform_0(%arg0: i32) -> (i32, i32, i32, i32) {
    %c0_i32 = arith.constant 0 : i32
    %c0_i32_0 = arith.constant 0 : i32
    %c0_i32_1 = arith.constant 0 : i32
    %c0_i32_2 = arith.constant 0 : i32
    return %arg0, %c0_i32, %c0_i32_0, %c0_i32_1 : i32, i32, i32, i32
  }
  func.func @transform_1(%arg0: i32) -> (i32, i32) {
    %c0_i32 = arith.constant 0 : i32
    %c0_i32_0 = arith.constant 0 : i32
    %c0_i32_1 = arith.constant 0 : i32
    return %c0_i32, %c0_i32_0 : i32, i32
  }
  func.func @transform_2(%arg0: i32) -> (i32, i32) {
    %c0_i32 = arith.constant 0 : i32
    %c0_i32_0 = arith.constant 0 : i32
    %c0_i32_1 = arith.constant 0 : i32
    return %c0_i32, %c0_i32_0 : i32, i32
  }
  func.func @transform_3(%arg0: i32) -> (i32, i32) {
    %c0_i32 = arith.constant 0 : i32
    %c0_i32_0 = arith.constant 0 : i32
    %c0_i32_1 = arith.constant 0 : i32
    return %c0_i32, %c0_i32_0 : i32, i32
  }
  func.func @transform_4(%arg0: i32) -> (i32, i32) {
    %c0_i32 = arith.constant 0 : i32
    %c0_i32_0 = arith.constant 0 : i32
    %c0_i32_1 = arith.constant 0 : i32
    return %c0_i32, %c0_i32_0 : i32, i32
  }
  func.func @transform_5(%arg0: i32) -> (i32, i32) {
    %c0_i32 = arith.constant 0 : i32
    %c0_i32_0 = arith.constant 0 : i32
    %c0_i32_1 = arith.constant 0 : i32
    return %c0_i32, %c0_i32_0 : i32, i32
  }
  func.func @transform_6(%arg0: i32) -> (i32, i32) {
    %c0_i32 = arith.constant 0 : i32
    %c0_i32_0 = arith.constant 0 : i32
    %c0_i32_1 = arith.constant 0 : i32
    return %c0_i32, %c0_i32_0 : i32, i32
  }
  func.func @transform_7(%arg0: i32) -> (i32, i32) {
    %c0_i32 = arith.constant 0 : i32
    %c0_i32_0 = arith.constant 0 : i32
    %c0_i32_1 = arith.constant 0 : i32
    return %c0_i32, %c0_i32_0 : i32, i32
  }
  func.func @transform_8(%arg0: i32) -> (i32, i32) {
    %c0_i32 = arith.constant 0 : i32
    %c0_i32_0 = arith.constant 0 : i32
    %c0_i32_1 = arith.constant 0 : i32
    return %c0_i32, %c0_i32_0 : i32, i32
  }
  func.func @transform_9(%arg0: i32) -> (i32, i32, i32) {
    %c0_i32 = arith.constant 0 : i32
    %c0_i32_0 = arith.constant 0 : i32
    %c0_i32_1 = arith.constant 0 : i32
    return %arg0, %c0_i32, %c0_i32_0 : i32, i32, i32
  }
}

</mosaic_0001>

<bundles_post_ra>
// kernel: segmentor_forward.1
= control target key start
LH: loop header
LB: loop body
LE: loop exit
PB: predicated region body
PF: predicated region fallthrough
CT: control target
= control target key end

     0   :  { %s6179_s30 = smov 0   ;;  %s8053_s0 = inlined_call_operand.vmem [shape: f32[2,16,16,4], index: 0, kind: input, shape index: {}]   ;;  %s8054_s1 = inlined_call_operand.vmem [shape: bf16[36,16], index: 1, kind: input, shape index: {}]   ;;  %s8055_s2 = inlined_call_operand.vmem [shape: f32[1,16], index: 2, kind: input, shape index: {}]   ;;  %s8056_s3 = inlined_call_operand.vmem [shape: bf16[144,32], index: 3, kind: input, shape index: {}]   ;;  %s8057_s4 = inlined_call_operand.vmem [shape: f32[1,32], index: 4, kind: input, shape index: {}]   ;;  %s8058_s5 = inlined_call_operand.vmem [shape: bf16[32,32], index: 5, kind: input, shape index: {}]   ;;  %s8059_s6 = inlined_call_operand.vmem [shape: f32[1,32], index: 6, kind: input, shape index: {}]   ;;  %s8060_s7 = inlined_call_operand.vmem [shape: bf16[8,32], index: 7, kind: input, shape index: {}]   ;;  %s8061_s8 = inlined_call_operand.vmem [shape: f32[8,1], index: 8, kind: input, shape index: {}]   ;;  %s8062_s9 = inlined_call_operand.vmem [shape: f32[2,8,256], index: 9, kind: output, shape index: {}]  }
   0x1 LB: > { %s4626_s10 = sadd.s32 4294967295, %s6112_s30   ;;  %p4630_p0 = scmp.ge.s32.totalorder %s6112_s30, 1  ;;  %s6112_s30 = sphi %s6179_s30, %s19_s30  }
   0x2   : > { %p287_p1 = scmp.lt.s32.totalorder %s6112_s30, 3 }
   0x4   : > { %p288_p2 = pnand %p4630_p0, %p287_p1 }
   0x5   : > { %vm334_vm0 = vcmask (!%p288_p2), 31744   ;;  %vm337_vm1 = vcmask (!%p288_p2), 25600   ;;  %v6114_v0 = vmov (!%p288_p2), 0.0   ;;  %p323_p3 = scmp.lt.s32.totalorder (!%p288_p2), %s4626_s10, 1  ;;  %s6115_s15 = smov (!%p288_p2), 8   ;;  %vm1866_vm2 = vcmask (!%p288_p2), 130048  }
   0x6   : > { %291 = sbr.rel (%p288_p2) target bundleno = 1465 (0x5b9), region = 56  ;;  %335 = vst.msk [vmem:[#allocation2] sm:$0xff] (!%p288_p2), %vm334_vm0, %v6114_v0  ;;  %336 = vst.msk [vmem:[#allocation2 + $0x8] sm:$0xff] (!%p288_p2), %vm334_vm0, %v6114_v0  ;;  %s6116_s16 = smov (!%p288_p2), 4   ;;  %v6085_v50 = vld [vmem:[%s8054_s1] sm:$0xff] (!%p288_p2)   ;;  %v6086_v52 = vld [vmem:[%s8054_s1 + $0x8] sm:$0xff] (!%p288_p2)  }
   0x7   : > { %338 = vst.msk [vmem:[#allocation2 + $0x10] sm:$0x3] (!%p288_p2), %vm337_vm1, %v6114_v0  ;;  %341 = vst.msk [vmem:[#allocation2 + $0x28] sm:$0x3] (!%p288_p2), %vm337_vm1, %v6114_v0  ;;  %s6117_s17 = smov (!%p288_p2), 12   ;;  %s6118_s18 = smov (!%p288_p2), 16   ;;  %4760 = vmatprep.subr.bf16.mxu0 (!%p288_p2), %v6085_v50 }
   0x8   : > { %339 = vst.msk [vmem:[#allocation2 + $0x18] sm:$0xff] (!%p288_p2), %vm334_vm0, %v6114_v0  ;;  %340 = vst.msk [vmem:[#allocation2 + $0x20] sm:$0xff] (!%p288_p2), %vm334_vm0, %v6114_v0  ;;  %s6119_s19 = smov (!%p288_p2), 20   ;;  %s6120_s22 = smov (!%p288_p2), 24   ;;  %4761 = vmatpush3.bf16.msra.mxu0 (!%p288_p2), %v6085_v50  ;;  %vm2123_vm3 = vcmask (!%p288_p2), 1041408   ;;  %vm1800_vm4 = vcmask (!%p288_p2), 64512  }
   0x9   : > { %342 = vst.msk [vmem:[#allocation2 + $0x30] sm:$0xff] (!%p288_p2), %vm334_vm0, %v6114_v0  ;;  %343 = vst.msk [vmem:[#allocation2 + $0x38] sm:$0xff] (!%p288_p2), %vm334_vm0, %v6114_v0  ;;  %v6087_v54 = vld [vmem:[%s8054_s1 + $0x10] ss:$0 sps:$4 sm:$0x33] (!%p288_p2)   ;;  %4762 = vmatprep.subr.bf16.mxu0 (!%p288_p2), %v6086_v52  ;;  %s6121_s27 = smov (!%p288_p2), 28  }
   0xa   : > { %344 = vst.msk [vmem:[#allocation2 + $0x40] sm:$0x3] (!%p288_p2), %vm337_vm1, %v6114_v0  ;;  %347 = vst.msk [vmem:[#allocation2 + $0x58] sm:$0x3] (!%p288_p2), %vm337_vm1, %v6114_v0  ;;  %v2125_v58 = vsel (!%p288_p2), %vm2123_vm3, %v6087_v54, 0  ;;  %s6122_s28 = smov (!%p288_p2), 32  }
   0xb   : > { %345 = vst.msk [vmem:[#allocation2 + $0x48] sm:$0xff] (!%p288_p2), %vm334_vm0, %v6114_v0  ;;  %346 = vst.msk [vmem:[#allocation2 + $0x50] sm:$0xff] (!%p288_p2), %vm334_vm0, %v6114_v0  ;;  %vm1833_vm5 = vcmask (!%p288_p2), 97280   ;;  %vm1899_vm6 = vcmask (!%p288_p2), 162816   ;;  %vm1932_vm7 = vcmask (!%p288_p2), 195584   ;;  %vm1965_vm8 = vcmask (!%p288_p2), 228352  }
   0xc   : > { %348 = vst.msk [vmem:[#allocation2 + $0x60] sm:$0xff] (!%p288_p2), %vm334_vm0, %v6114_v0  ;;  %349 = vst.msk [vmem:[#allocation2 + $0x68] sm:$0xff] (!%p288_p2), %vm334_vm0, %v6114_v0  ;;  %4763 = vmatpush3.bf16.msra.mxu0 (!%p288_p2), %v6086_v52  ;;  %vm1998_vm9 = vcmask (!%p288_p2), 261120   ;;  %vm2074_vm10 = vcmask (!%p288_p2), 293888   ;;  %vm2322_vm11 = vcmask (!%p288_p2), 123904   ;;  %s6125_s20 = smov (!%p288_p2), 48  }
   0xd   : > { %350 = vst.msk [vmem:[#allocation2 + $0x70] sm:$0x3] %vm337_vm1, %v6114_v0  ;;  %353 = vst.msk [vmem:[#allocation2 + $0x88] sm:$0x3] %vm337_vm1, %v6114_v0  ;;  %s8064_s10 = smov (!%p323_p3, %s4626_s10), 1  ;;  %v519_v4 = vld [vmem:[#allocation2 + $0x2] sm:$0xff]  ;;  %4852 = vmatprep.subr.msk.bf16.mxu0 %vm2123_vm3, %v6087_v54 }
   0xe   : > { %351 = vst.msk [vmem:[#allocation2 + $0x78] sm:$0xff] %vm334_vm0, %v6114_v0  ;;  %352 = vst.msk [vmem:[#allocation2 + $0x80] sm:$0xff] %vm334_vm0, %v6114_v0  ;;  %s4703_s11 = sshll.u32 %s8064_s10, 8  ;;  %v520_v5 = vld [vmem:[#allocation2 + $0xa] sm:$0xff]  ;;  %v487_v6 = vld [vmem:[#allocation2 + $0x1] sm:$0xff]  ;;  %s6126_s23 = smov 80  }
   0xf   : > { %354 = vst.msk [vmem:[#allocation2 + $0x90] sm:$0xff] %vm334_vm0, %v6114_v0  ;;  %355 = vst.msk [vmem:[#allocation2 + $0x98] sm:$0xff] %vm334_vm0, %v6114_v0  ;;  %s6305_s14 = scalar_lea.vmem %s8053_s0, %s4703_s11  ;;  %v4889_v7 = vpack.i.bf16 %v520_v5, %v519_v4  ;;  %v488_v8 = vld [vmem:[#allocation2 + $0x9] sm:$0xff]  ;;  %s6127_s29 = smov 96   ;;  %vm3657_vm12 = vcmask 392192   ;;  %vm3690_vm13 = vcmask 523264  }
  0x10   : > { %356 = vst.msk [vmem:[#allocation2 + $0xa0] sm:$0x3] %vm337_vm1, %v6114_v0  ;;  %359 = vst.msk [vmem:[#allocation2 + $0xb8] sm:$0x3] %vm337_vm1, %v6114_v0  ;;  %v390_v1 = vld [vmem:[%s6305_s14] sm:$0xff]  ;;  %v391_v2 = vld [vmem:[%s6305_s14 + $0x8] sm:$0xff]  ;;  %v4884_v11 = vpack.i.bf16 %v488_v8, %v487_v6  ;;  %4765 = vmatpush3.bf16.msra.mxu0 %v2125_v58 }
  0x11   : > { %357 = vst.msk [vmem:[#allocation2 + $0xa8] sm:$0xff] %vm334_vm0, %v6114_v0  ;;  %358 = vst.msk [vmem:[#allocation2 + $0xb0] sm:$0xff] %vm334_vm0, %v6114_v0  ;;  %v392_v3 = vld [vmem:[%s6305_s14 + $0x10] sm:$0xff]  ;;  %v393_v9 = vld [vmem:[%s6305_s14 + $0x18] sm:$0xff]  ;;  %4890 = vrot.lane.b32.xlu1 %v4889_v7, %s6115_s15  ;;  %s6128_s13 = smov 112   ;;  %vm3723_vm14 = vcmask 654336  }
  0x12   : > { %360 = vst.msk [vmem:[#allocation2 + $0xc0] sm:$0xff] %vm334_vm0, %v6114_v0  ;;  %361 = vst.msk [vmem:[#allocation2 + $0xc8] sm:$0xff] %vm334_vm0, %v6114_v0  ;;  %v394_v10 = vld [vmem:[%s6305_s14 + $0x20] sm:$0xff]  ;;  %v395_v12 = vld [vmem:[%s6305_s14 + $0x28] sm:$0xff]  ;;  %4885 = vrot.lane.b32.xlu0 %v4884_v11, %s6116_s16  ;;  %vm3756_vm15 = vcmask 785408  }
  0x13   : > { %362 = vst.msk [vmem:[#allocation2 + $0xd0] sm:$0x3] %vm337_vm1, %v6114_v0  ;;  %365 = vst.msk [vmem:[#allocation2 + $0xe8] sm:$0x3] %vm337_vm1, %v6114_v0  ;;  %v396_v13 = vld [vmem:[%s6305_s14 + $0x30] sm:$0xff]  ;;  %v397_v14 = vld [vmem:[%s6305_s14 + $0x38] sm:$0xff] }
  0x14   : > { %363 = vst.msk [vmem:[#allocation2 + $0xd8] sm:$0xff] %vm334_vm0, %v6114_v0  ;;  %364 = vst.msk [vmem:[#allocation2 + $0xe0] sm:$0xff] %vm334_vm0, %v6114_v0  ;;  %v398_v15 = vld [vmem:[%s6305_s14 + $0x40] sm:$0xff]  ;;  %v399_v16 = vld [vmem:[%s6305_s14 + $0x48] sm:$0xff] }
  0x15   : > { %366 = vst.msk [vmem:[#allocation2 + $0xf0] sm:$0xff] %vm334_vm0, %v6114_v0  ;;  %367 = vst.msk [vmem:[#allocation2 + $0xf8] sm:$0xff] %vm334_vm0, %v6114_v0  ;;  %v400_v17 = vld [vmem:[%s6305_s14 + $0x50] sm:$0xff]  ;;  %v401_v18 = vld [vmem:[%s6305_s14 + $0x58] sm:$0xff] }
  0x16   : > { %368 = vst.msk [vmem:[#allocation2 + $0x100] sm:$0x3] %vm337_vm1, %v6114_v0  ;;  %371 = vst.msk [vmem:[#allocation2 + $0x118] sm:$0x3] %vm337_vm1, %v6114_v0  ;;  %v402_v19 = vld [vmem:[%s6305_s14 + $0x60] sm:$0xff]  ;;  %v403_v20 = vld [vmem:[%s6305_s14 + $0x68] sm:$0xff] }
  0x17   : > { %369 = vst.msk [vmem:[#allocation2 + $0x108] sm:$0xff] %vm334_vm0, %v6114_v0  ;;  %370 = vst.msk [vmem:[#allocation2 + $0x110] sm:$0xff] %vm334_vm0, %v6114_v0  ;;  %v404_v21 = vld [vmem:[%s6305_s14 + $0x70] sm:$0xff]  ;;  %v405_v22 = vld [vmem:[%s6305_s14 + $0x78] sm:$0xff] }
  0x18   : > { %372 = vst.msk [vmem:[#allocation2 + $0x120] sm:$0xff] %vm334_vm0, %v6114_v0  ;;  %373 = vst.msk [vmem:[#allocation2 + $0x128] sm:$0xff] %vm334_vm0, %v6114_v0  ;;  %v406_v23 = vld [vmem:[%s6305_s14 + $0x80] sm:$0xff]  ;;  %v407_v24 = vld [vmem:[%s6305_s14 + $0x88] sm:$0xff] }
  0x19   : > { %374 = vst.msk [vmem:[#allocation2 + $0x130] sm:$0x3] %vm337_vm1, %v6114_v0  ;;  %377 = vst.msk [vmem:[#allocation2 + $0x148] sm:$0x3] %vm337_vm1, %v6114_v0  ;;  %v408_v48 = vld [vmem:[%s6305_s14 + $0x90] sm:$0xff]  ;;  %v409_v49 = vld [vmem:[%s6305_s14 + $0x98] sm:$0xff] }
  0x1a   : > { %375 = vst.msk [vmem:[#allocation2 + $0x138] sm:$0xff] %vm334_vm0, %v6114_v0  ;;  %376 = vst.msk [vmem:[#allocation2 + $0x140] sm:$0xff] %vm334_vm0, %v6114_v0  ;;  %v410_v53 = vld [vmem:[%s6305_s14 + $0xa0] sm:$0xff]  ;;  %v411_v55 = vld [vmem:[%s6305_s14 + $0xa8] sm:$0xff] }
  0x1b   : > { %378 = vst.msk [vmem:[#allocation2 + $0x150] sm:$0xff] %vm334_vm0, %v6114_v0  ;;  %379 = vst.msk [vmem:[#allocation2 + $0x158] sm:$0xff] %vm334_vm0, %v6114_v0  ;;  %v412_v60 = vld [vmem:[%s6305_s14 + $0xb0] sm:$0xff]  ;;  %v413_v61 = vld [vmem:[%s6305_s14 + $0xb8] sm:$0xff] }
  0x1c   : > { %380 = vst.msk [vmem:[#allocation2 + $0x160] sm:$0x3] %vm337_vm1, %v6114_v0  ;;  %383 = vst.msk [vmem:[#allocation2 + $0x178] sm:$0x3] %vm337_vm1, %v6114_v0  ;;  %v414_v7 = vld [vmem:[%s6305_s14 + $0xc0] sm:$0xff]  ;;  %v415_v8 = vld [vmem:[%s6305_s14 + $0xc8] sm:$0xff] }
  0x1d   : > { %381 = vst.msk [vmem:[#allocation2 + $0x168] sm:$0xff] %vm334_vm0, %v6114_v0  ;;  %382 = vst.msk [vmem:[#allocation2 + $0x170] sm:$0xff] %vm334_vm0, %v6114_v0 }
  0x1e   : > { %384 = vst.msk [vmem:[#allocation2 + $0x180] sm:$0xff] %vm334_vm0, %v6114_v0  ;;  %385 = vst.msk [vmem:[#allocation2 + $0x188] sm:$0xff] %vm334_vm0, %v6114_v0 }
  0x1f   : > { %386 = vst.msk [vmem:[#allocation2 + $0x190] sm:$0x3] %vm337_vm1, %v6114_v0  ;;  %389 = vst.msk [vmem:[#allocation2 + $0x1a8] sm:$0x3] %vm337_vm1, %v6114_v0 }
  0x20   : > { %387 = vst.msk [vmem:[#allocation2 + $0x198] sm:$0xff] %vm334_vm0, %v6114_v0  ;;  %388 = vst.msk [vmem:[#allocation2 + $0x1a0] sm:$0xff] %vm334_vm0, %v6114_v0 }
  0x21   : > { %423 = vst.msk [vmem:[#allocation2 + $0x19] sm:$0xff] %vm334_vm0, %v390_v1  ;;  %424 = vst.msk [vmem:[#allocation2 + $0x21] sm:$0xff] %vm334_vm0, %v391_v2 }
  0x22   : > { %425 = vst.msk [vmem:[#allocation2 + $0x31] sm:$0xff] %vm334_vm0, %v392_v3  ;;  %426 = vst.msk [vmem:[#allocation2 + $0x39] sm:$0xff] %vm334_vm0, %v393_v9 }
  0x23   : > { %427 = vst.msk [vmem:[#allocation2 + $0x49] sm:$0xff] %vm334_vm0, %v394_v10  ;;  %428 = vst.msk [vmem:[#allocation2 + $0x51] sm:$0xff] %vm334_vm0, %v395_v12 }
  0x24   : > { %429 = vst.msk [vmem:[#allocation2 + $0x61] sm:$0xff] %vm334_vm0, %v396_v13  ;;  %430 = vst.msk [vmem:[#allocation2 + $0x69] sm:$0xff] %vm334_vm0, %v397_v14 }
  0x25   : > { %431 = vst.msk [vmem:[#allocation2 + $0x79] sm:$0xff] %vm334_vm0, %v398_v15  ;;  %432 = vst.msk [vmem:[#allocation2 + $0x81] sm:$0xff] %vm334_vm0, %v399_v16 }
  0x26   : > { %433 = vst.msk [vmem:[#allocation2 + $0x91] sm:$0xff] %vm334_vm0, %v400_v17  ;;  %434 = vst.msk [vmem:[#allocation2 + $0x99] sm:$0xff] %vm334_vm0, %v401_v18 }
  0x27   : > { %435 = vst.msk [vmem:[#allocation2 + $0xa9] sm:$0xff] %vm334_vm0, %v402_v19  ;;  %436 = vst.msk [vmem:[#allocation2 + $0xb1] sm:$0xff] %vm334_vm0, %v403_v20  ;;  %v416_v19 = vld [vmem:[%s6305_s14 + $0xd0] sm:$0xff]  ;;  %v417_v20 = vld [vmem:[%s6305_s14 + $0xd8] sm:$0xff] }
  0x28   : > { %2320 = vst.msk [vmem:[#allocation3] sm:$0xff] %vm1866_vm2, %v6114_v0  ;;  %2321 = vst.msk [vmem:[#allocation3 + $0x8] sm:$0xff] %vm1866_vm2, %v6114_v0  ;;  %v521_v25 = vld [vmem:[#allocation2 + $0x1a] sm:$0xff]  ;;  %v522_v26 = vld [vmem:[#allocation2 + $0x22] sm:$0xff] }
  0x29   : > { %2324 = vst.msk [vmem:[#allocation3 + $0x18] sm:$0xff] %vm1866_vm2, %v6114_v0  ;;  %2325 = vst.msk [vmem:[#allocation3 + $0x20] sm:$0xff] %vm1866_vm2, %v6114_v0  ;;  %v489_v27 = vld [vmem:[#allocation2 + $0x19] sm:$0xff]  ;;  %v4899_v28 = vpack.i.bf16 %v522_v26, %v521_v25  ;;  %v490_v29 = vld [vmem:[#allocation2 + $0x21] sm:$0xff] }
  0x2a   : > { %2327 = vst.msk [vmem:[#allocation3 + $0x30] sm:$0xff] %vm1866_vm2, %v6114_v0  ;;  %2328 = vst.msk [vmem:[#allocation3 + $0x38] sm:$0xff] %vm1866_vm2, %v6114_v0  ;;  %v6417_v30 = vld [vmem:[#allocation2 + $0x30] sm:$0xff]  ;;  %v6419_v31 = vld [vmem:[#allocation2 + $0x18] sm:$0xff]  ;;  %v4894_v32 = vpack.i.bf16 %v490_v29, %v489_v27 }
  0x2b   : > { %2330 = vst.msk [vmem:[#allocation3 + $0x48] sm:$0xff] %vm1866_vm2, %v6114_v0  ;;  %2331 = vst.msk [vmem:[#allocation3 + $0x50] sm:$0xff] %vm1866_vm2, %v6114_v0  ;;  %v6421_v33 = vld [vmem:[#allocation2 + $0x38] sm:$0xff]  ;;  %v6423_v34 = vld [vmem:[#allocation2 + $0x20] sm:$0xff]  ;;  %4900 = vrot.lane.b32.xlu1 %v4899_v28, %s6115_s15 }
  0x2c   : > { %2333 = vst.msk [vmem:[#allocation3 + $0x60] sm:$0xff] %vm1866_vm2, %v6114_v0  ;;  %2334 = vst.msk [vmem:[#allocation3 + $0x68] sm:$0xff] %vm1866_vm2, %v6114_v0  ;;  %v4909_v35 = vpack.i.bf16 %v6421_v33, %v6417_v30  ;;  %4895 = vrot.lane.b32.xlu0 %v4894_v32, %s6116_s16  ;;  %v4904_v36 = vpack.i.bf16 %v6423_v34, %v6419_v31  ;;  %v585_v37 = vld [vmem:[#allocation2 + $0x31] sm:$0xff]  ;;  %v586_v38 = vld [vmem:[#allocation2 + $0x39] sm:$0xff] }
  0x2d   : > { %2336 = vst.msk [vmem:[#allocation3 + $0x78] sm:$0xff] %vm1866_vm2, %v6114_v0  ;;  %2337 = vst.msk [vmem:[#allocation3 + $0x80] sm:$0xff] %vm1866_vm2, %v6114_v0  ;;  %v4919_v39 = vpack.i.bf16 %v586_v38, %v585_v37  ;;  %v617_v40 = vld [vmem:[#allocation2 + $0x32] sm:$0xff]  ;;  %v618_v41 = vld [vmem:[#allocation2 + $0x3a] sm:$0xff] }
  0x2e   : > { %2339 = vst.msk [vmem:[#allocation3 + $0x90] sm:$0xff] %vm1866_vm2, %v6114_v0  ;;  %2340 = vst.msk [vmem:[#allocation3 + $0x98] sm:$0xff] %vm1866_vm2, %v6114_v0  ;;  %v4929_v42 = vpack.i.bf16 %v618_v41, %v617_v40  ;;  %v6435_v43 = vld [vmem:[#allocation2 + $0x48] sm:$0xff]  ;;  %v6437_v44 = vld [vmem:[#allocation2 + $0x50] sm:$0xff] }
  0x2f   : > { %2342 = vst.msk [vmem:[#allocation3 + $0xa8] sm:$0xff] %vm1866_vm2, %v6114_v0  ;;  %2343 = vst.msk [vmem:[#allocation3 + $0xb0] sm:$0xff] %vm1866_vm2, %v6114_v0  ;;  %4910 = vrot.lane.b32.xlu1 %v4909_v35, %s6117_s17  ;;  %v4939_v45 = vpack.i.bf16 %v6437_v44, %v6435_v43  ;;  %v682_v46 = vld [vmem:[#allocation2 + $0x49] sm:$0xff]  ;;  %v683_v47 = vld [vmem:[#allocation2 + $0x51] sm:$0xff] }
  0x30   : > { %2345 = vst.msk [vmem:[#allocation3 + $0xc0] sm:$0xff] %vm1866_vm2, %v6114_v0  ;;  %2346 = vst.msk [vmem:[#allocation3 + $0xc8] sm:$0xff] %vm1866_vm2, %v6114_v0  ;;  %4905 = vrot.lane.b32.xlu0 %v4904_v36, %s6117_s17  ;;  %v4949_v51 = vpack.i.bf16 %v683_v47, %v682_v46  ;;  %v714_v56 = vld [vmem:[#allocation2 + $0x4a] sm:$0xff]  ;;  %v715_v57 = vld [vmem:[#allocation2 + $0x52] sm:$0xff] }
  0x31   : > { %2348 = vst.msk [vmem:[#allocation3 + $0xd8] sm:$0xff] %vm1866_vm2, %v6114_v0  ;;  %2349 = vst.msk [vmem:[#allocation3 + $0xe0] sm:$0xff] %vm1866_vm2, %v6114_v0  ;;  %v4964_v59 = vpack.i.bf16 %v715_v57, %v714_v56  ;;  %v557_v62 = vld [vmem:[#allocation2 + $0x60] sm:$0xff]  ;;  %v558_v63 = vld [vmem:[#allocation2 + $0x68] sm:$0xff] }
  0x32   : > { %2351 = vst.msk [vmem:[#allocation3 + $0xf0] sm:$0xff] %vm1866_vm2, %v6114_v0  ;;  %2352 = vst.msk [vmem:[#allocation3 + $0xf8] sm:$0xff] %vm1866_vm2, %v6114_v0  ;;  %v4989_v1 = vpack.i.bf16 %v558_v63, %v557_v62  ;;  %v589_v2 = vld [vmem:[#allocation2 + $0x61] sm:$0xff]  ;;  %v590_v3 = vld [vmem:[#allocation2 + $0x69] sm:$0xff] }
  0x33   : > { %2354 = vst.msk [vmem:[#allocation3 + $0x108] sm:$0xff] %vm1866_vm2, %v6114_v0  ;;  %2355 = vst.msk [vmem:[#allocation3 + $0x110] sm:$0xff] %vm1866_vm2, %v6114_v0  ;;  %4920 = vrot.lane.b32.xlu1 %v4919_v39, %s6118_s18  ;;  %v4999_v4 = vpack.i.bf16 %v590_v3, %v589_v2  ;;  %v621_v5 = vld [vmem:[#allocation2 + $0x62] sm:$0xff]  ;;  %v622_v6 = vld [vmem:[#allocation2 + $0x6a] sm:$0xff] }
  0x34   : > { %2357 = vst.msk [vmem:[#allocation3 + $0x120] sm:$0xff] %vm1866_vm2, %v6114_v0  ;;  %2358 = vst.msk [vmem:[#allocation3 + $0x128] sm:$0xff] %vm1866_vm2, %v6114_v0  ;;  %4915 = vrot.lane.b32.xlu0 %v4894_v32, %s6118_s18  ;;  %v5009_v9 = vpack.i.bf16 %v622_v6, %v621_v5  ;;  %v654_v10 = vld [vmem:[#allocation2 + $0x78] sm:$0xff]  ;;  %v655_v11 = vld [vmem:[#allocation2 + $0x80] sm:$0xff] }
  0x35   : > { %2360 = vst.msk [vmem:[#allocation3 + $0x138] sm:$0xff] %vm1866_vm2, %v6114_v0  ;;  %2361 = vst.msk [vmem:[#allocation3 + $0x140] sm:$0xff] %vm1866_vm2, %v6114_v0  ;;  %v5019_v12 = vpack.i.bf16 %v655_v11, %v654_v10  ;;  %v686_v13 = vld [vmem:[#allocation2 + $0x79] sm:$0xff]  ;;  %v687_v14 = vld [vmem:[#allocation2 + $0x81] sm:$0xff] }
  0x36   : > { %2363 = vst.msk [vmem:[#allocation3 + $0x150] sm:$0xff] %vm1866_vm2, %v6114_v0  ;;  %2364 = vst.msk [vmem:[#allocation3 + $0x158] sm:$0xff] %vm1866_vm2, %v6114_v0  ;;  %v5029_v15 = vpack.i.bf16 %v687_v14, %v686_v13  ;;  %v718_v16 = vld [vmem:[#allocation2 + $0x7a] sm:$0xff]  ;;  %v719_v17 = vld [vmem:[#allocation2 + $0x82] sm:$0xff] }
  0x37   : > { %2366 = vst.msk [vmem:[#allocation3 + $0x168] sm:$0xff] %vm1866_vm2, %v6114_v0  ;;  %2367 = vst.msk [vmem:[#allocation3 + $0x170] sm:$0xff] %vm1866_vm2, %v6114_v0  ;;  %4930 = vrot.lane.b32.xlu1 %v4929_v42, %s6119_s19  ;;  %v5039_v18 = vpack.i.bf16 %v719_v17, %v718_v16  ;;  %v594_v25 = vld [vmem:[#allocation2 + $0x99] sm:$0xff]  ;;  %v419_v32 = vld [vmem:[%s6305_s14 + $0xe8] sm:$0xff] }
  0x38   : > { %2369 = vst.msk [vmem:[#allocation3 + $0x180] sm:$0xff] %vm1866_vm2, %v6114_v0  ;;  %2370 = vst.msk [vmem:[#allocation3 + $0x188] sm:$0xff] %vm1866_vm2, %v6114_v0  ;;  %4925 = vrot.lane.b32.xlu0 %v4899_v28, %s6119_s19  ;;  %v625_v27 = vld [vmem:[#allocation2 + $0x92] sm:$0xff]  ;;  %v626_v28 = vld [vmem:[#allocation2 + $0x9a] sm:$0xff] }
  0x39   : > { %2372 = vst.msk [vmem:[#allocation3 + $0x198] sm:$0xff] %vm1866_vm2, %v6114_v0  ;;  %2373 = vst.msk [vmem:[#allocation3 + $0x1a0] sm:$0xff] %vm1866_vm2, %v6114_v0  ;;  %v418_v29 = vld [vmem:[%s6305_s14 + $0xe0] sm:$0xff]  ;;  %v658_v36 = vld [vmem:[#allocation2 + $0xa8] sm:$0xff] }
  0x3a   : > { %437 = vst.msk [vmem:[#allocation2 + $0xc1] sm:$0xff] %vm334_vm0, %v404_v21  ;;  %438 = vst.msk [vmem:[#allocation2 + $0xc9] sm:$0xff] %vm334_vm0, %v405_v22  ;;  %v561_v21 = vld [vmem:[#allocation2 + $0x90] sm:$0xff]  ;;  %v562_v22 = vld [vmem:[#allocation2 + $0x98] sm:$0xff] }
  0x3b   : > { %439 = vst.msk [vmem:[#allocation2 + $0xd9] sm:$0xff] %vm334_vm0, %v406_v23  ;;  %440 = vst.msk [vmem:[#allocation2 + $0xe1] sm:$0xff] %vm334_vm0, %v407_v24  ;;  %4940 = vrot.lane.b32.xlu1 %v4939_v45, %s6120_s22  ;;  %v5069_v23 = vpack.i.bf16 %v562_v22, %v561_v21  ;;  %v593_v24 = vld [vmem:[#allocation2 + $0x91] sm:$0xff]  ;;  %v456_v17 = vld [vmem:[#allocation2 + $0x8] sm:$0xff] }
  0x3c   : > { %441 = vst.msk [vmem:[#allocation2 + $0xf1] sm:$0xff] %vm334_vm0, %v408_v48  ;;  %442 = vst.msk [vmem:[#allocation2 + $0xf9] sm:$0xff] %vm334_vm0, %v409_v49  ;;  %4935 = vrot.lane.b32.xlu0 %v4909_v35, %s6120_s22  ;;  %v5079_v26 = vpack.i.bf16 %v594_v25, %v593_v24  ;;  %v5089_v35 = vpack.i.bf16 %v626_v28, %v625_v27  ;;  %v659_v37 = vld [vmem:[#allocation2 + $0xb0] sm:$0xff]  ;;  %v421_v48 = vld [vmem:[%s6305_s14 + $0xf8] sm:$0xff] }
  0x3d   : > { %443 = vst.msk [vmem:[#allocation2 + $0x109] sm:$0xff] %vm334_vm0, %v410_v53  ;;  %444 = vst.msk [vmem:[#allocation2 + $0x111] sm:$0xff] %vm334_vm0, %v411_v55  ;;  %v5099_v38 = vpack.i.bf16 %v659_v37, %v658_v36  ;;  %v691_v40 = vld [vmem:[#allocation2 + $0xb1] sm:$0xff] }
  0x3e   : > { %445 = vst.msk [vmem:[#allocation2 + $0x121] sm:$0xff] %vm334_vm0, %v412_v60  ;;  %446 = vst.msk [vmem:[#allocation2 + $0x129] sm:$0xff] %vm334_vm0, %v413_v61  ;;  %v420_v47 = vld [vmem:[%s6305_s14 + $0xf0] sm:$0xff] }
  0x3f   : > { %4950 = vrot.lane.b32.xlu1 %v4949_v51, %s6121_s27  ;;  %447 = vst.msk [vmem:[#allocation2 + $0x139] sm:$0xff] %vm334_vm0, %v414_v7  ;;  %448 = vst.msk [vmem:[#allocation2 + $0x141] sm:$0xff] %vm334_vm0, %v415_v8 }
  0x40   : > { %4945 = vrot.lane.b32.xlu0 %v4919_v39, %s6121_s27  ;;  %449 = vst.msk [vmem:[#allocation2 + $0x151] sm:$0xff] %vm334_vm0, %v416_v19  ;;  %450 = vst.msk [vmem:[#allocation2 + $0x159] sm:$0xff] %vm334_vm0, %v417_v20 }
  0x41   : > { %451 = vst.msk [vmem:[#allocation2 + $0x169] sm:$0xff] %vm334_vm0, %v418_v29  ;;  %452 = vst.msk [vmem:[#allocation2 + $0x171] sm:$0xff] %vm334_vm0, %v419_v32  ;;  %v565_v49 = vld [vmem:[#allocation2 + $0xc0] sm:$0xff]  ;;  %v566_v50 = vld [vmem:[#allocation2 + $0xc8] sm:$0xff] }
  0x42   : > { %453 = vst.msk [vmem:[#allocation2 + $0x181] sm:$0xff] %vm334_vm0, %v420_v47  ;;  %454 = vst.msk [vmem:[#allocation2 + $0x189] sm:$0xff] %vm334_vm0, %v421_v48  ;;  %v597_v52 = vld [vmem:[#allocation2 + $0xc1] sm:$0xff]  ;;  %v598_v53 = vld [vmem:[#allocation2 + $0xc9] sm:$0xff] }
  0x43   : > { %4960 = vrot.lane.b32.xlu1 %v4919_v39, %s6116_s16  ;;  %v690_v39 = vld [vmem:[#allocation2 + $0xa9] sm:$0xff]  ;;  %v5159_v54 = vpack.i.bf16 %v598_v53, %v597_v52  ;;  %v662_v58 = vld [vmem:[#allocation2 + $0xd8] sm:$0xff]  ;;  %2329 = vst.msk [vmem:[#allocation3 + $0x40] sm:$0x3] %vm2322_vm11, %v6114_v0  ;;  %2323 = vst.msk [vmem:[#allocation3 + $0x10] sm:$0x3] %vm2322_vm11, %v6114_v0 }
  0x44   : > { %4955 = vrot.lane.b32.xlu0 %v4929_v42, %s6122_s28  ;;  %v5109_v41 = vpack.i.bf16 %v691_v40, %v690_v39  ;;  %v629_v55 = vld [vmem:[#allocation2 + $0xc2] sm:$0xff]  ;;  %v630_v56 = vld [vmem:[#allocation2 + $0xca] sm:$0xff]  ;;  %v694_v63 = vld [vmem:[#allocation2 + $0xd9] sm:$0xff]  ;;  %2326 = vst.msk [vmem:[#allocation3 + $0x28] sm:$0x3] %vm2322_vm11, %v6114_v0 }
  0x45   : > { %v5169_v57 = vpack.i.bf16 %v630_v56, %v629_v55  ;;  %v726_v3 = vld [vmem:[#allocation2 + $0xda] sm:$0xff]  ;;  %v601_v25 = vld [vmem:[#allocation2 + $0xf1] sm:$0xff]  ;;  %2332 = vst.msk [vmem:[#allocation3 + $0x58] sm:$0x3] %vm2322_vm11, %v6114_v0  ;;  %2335 = vst.msk [vmem:[#allocation3 + $0x70] sm:$0x3] %vm2322_vm11, %v6114_v0 }
  0x46   : > { %v570_v13 = vld [vmem:[#allocation2 + $0xf8] sm:$0xff]  ;;  %v667_v39 = vld [vmem:[#allocation2 + $0x110] sm:$0xff]  ;;  %2338 = vst.msk [vmem:[#allocation3 + $0x88] sm:$0x3] %vm2322_vm11, %v6114_v0  ;;  %2341 = vst.msk [vmem:[#allocation3 + $0xa0] sm:$0x3] %vm2322_vm11, %v6114_v0 }
  0x47   : > { %4970 = vrot.lane.b32.xlu1 %v4949_v51, %s6116_s16  ;;  %v633_v27 = vld [vmem:[#allocation2 + $0xf2] sm:$0xff]  ;;  %v634_v37 = vld [vmem:[#allocation2 + $0xfa] sm:$0xff]  ;;  %2344 = vst.msk [vmem:[#allocation3 + $0xb8] sm:$0x3] %vm2322_vm11, %v6114_v0  ;;  %2347 = vst.msk [vmem:[#allocation3 + $0xd0] sm:$0x3] %vm2322_vm11, %v6114_v0 }
  0x48   : > { %4965 = vrot.lane.b32.xlu0 %v4964_v59, %s6122_s28  ;;  %2350 = vst.msk [vmem:[#allocation3 + $0xe8] sm:$0x3] %vm2322_vm11, %v6114_v0  ;;  %2353 = vst.msk [vmem:[#allocation3 + $0x100] sm:$0x3] %vm2322_vm11, %v6114_v0 }
  0x49   : > { %2356 = vst.msk [vmem:[#allocation3 + $0x118] sm:$0x3] %vm2322_vm11, %v6114_v0  ;;  %2359 = vst.msk [vmem:[#allocation3 + $0x130] sm:$0x3] %vm2322_vm11, %v6114_v0 }
  0x4a   : > { %2362 = vst.msk [vmem:[#allocation3 + $0x148] sm:$0x3] %vm2322_vm11, %v6114_v0  ;;  %2365 = vst.msk [vmem:[#allocation3 + $0x160] sm:$0x3] %vm2322_vm11, %v6114_v0 }
  0x4b   : > { %4980 = vrot.lane.b32.xlu1 %v4964_v59, %s6115_s15  ;;  %2368 = vst.msk [vmem:[#allocation3 + $0x178] sm:$0x3] %vm2322_vm11, %v6114_v0  ;;  %2371 = vst.msk [vmem:[#allocation3 + $0x190] sm:$0x3] %vm2322_vm11, %v6114_v0 }
  0x4c   : > { %4975 = vrot.lane.b32.xlu0 %v4929_v42, %s6115_s15  ;;  %v722_v42 = vld [vmem:[#allocation2 + $0xaa] sm:$0xff]  ;;  %2374 = vst.msk [vmem:[#allocation3 + $0x1a8] sm:$0x3] %vm2322_vm11, %v6114_v0 }
  0x4f   : > { %4990 = vrot.lane.b32.xlu1 %v4989_v1, %s6117_s17 }
  0x50   : > { %4985 = vrot.lane.b32.xlu0 %v4939_v45, %s6117_s17  ;;  %v723_v45 = vld [vmem:[#allocation2 + $0xb2] sm:$0xff] }
  0x51   : > { %v5119_v46 = vpack.i.bf16 %v723_v45, %v722_v42 }
  0x53   : > { %5000 = vrot.lane.b32.xlu1 %v4999_v4, %s6118_s18 }
  0x54   : > { %4995 = vrot.lane.b32.xlu0 %v4949_v51, %s6118_s18  ;;  %v5149_v51 = vpack.i.bf16 %v566_v50, %v565_v49 }
  0x57   : > { %5010 = vrot.lane.b32.xlu1 %v5009_v9, %s6119_s19 }
  0x58   : > { %5005 = vrot.lane.b32.xlu0 %v4964_v59, %s6119_s19  ;;  %v663_v59 = vld [vmem:[#allocation2 + $0xe0] sm:$0xff] }
  0x59   : > { %v6529_v61 = vpack.i.bf16 %v663_v59, %v662_v58 }
  0x5b   : > { %5020 = vrot.lane.b32.xlu1 %v5019_v12, %s6120_s22 }
  0x5c   : > { %5015 = vrot.lane.b32.xlu0 %v4989_v1, %s6120_s22  ;;  %v695_v1 = vld [vmem:[#allocation2 + $0xe1] sm:$0xff] }
  0x5d   : > { %v6534_v2 = vpack.i.bf16 %v695_v1, %v694_v63 }
  0x5f   : > { %5030 = vrot.lane.b32.xlu1 %v5029_v15, %s6121_s27 }
  0x60   : > { %5025 = vrot.lane.b32.xlu0 %v4999_v4, %s6121_s27 }
  0x63   : > { %5040 = vrot.lane.b32.xlu1 %v5039_v18, %s6122_s28 }
  0x64   : > { %5035 = vrot.lane.b32.xlu0 %v5009_v9, %s6122_s28 }
  0x67   : > { %5050 = vrot.lane.b32.xlu1 %v5029_v15, %s6116_s16 }
  0x68   : > { %5045 = vrot.lane.b32.xlu0 %v4999_v4, %s6116_s16  ;;  %v727_v4 = vld [vmem:[#allocation2 + $0xe2] sm:$0xff] }
  0x69   : > { %v6539_v7 = vpack.i.bf16 %v727_v4, %v726_v3 }
  0x6b   : > { %5060 = vrot.lane.b32.xlu1 %v5039_v18, %s6115_s15 }
  0x6c   : > { %5055 = vrot.lane.b32.xlu0 %v5009_v9, %s6115_s15 }
  0x6f   : > { %5070 = vrot.lane.b32.xlu1 %v5069_v23, %s6117_s17 }
  0x70   : > { %5065 = vrot.lane.b32.xlu0 %v5019_v12, %s6117_s17  ;;  %v569_v12 = vld [vmem:[#allocation2 + $0xf0] sm:$0xff] }
  0x71   : > { %v6562_v22 = vpack.i.bf16 %v570_v13, %v569_v12 }
  0x73   : > { %5080 = vrot.lane.b32.xlu1 %v5079_v26, %s6118_s18 }
  0x74   : > { %5075 = vrot.lane.b32.xlu0 %v5029_v15, %s6118_s18 }
  0x77   : > { %5090 = vrot.lane.b32.xlu1 %v5089_v35, %s6119_s19 }
  0x78   : > { %5085 = vrot.lane.b32.xlu0 %v5039_v18, %s6119_s19  ;;  %v455_v18 = vld [vmem:[#allocation2] sm:$0xff] }
  0x7b   : > { %5100 = vrot.lane.b32.xlu1 %v5099_v38, %s6120_s22 }
  0x7c   : > { %5095 = vrot.lane.b32.xlu0 %v5069_v23, %s6120_s22 }
  0x7f   : > { %5110 = vrot.lane.b32.xlu1 %v5109_v41, %s6121_s27 }
  0x80   : > { %5105 = vrot.lane.b32.xlu0 %v5079_v26, %s6121_s27 }
  0x83   : > { %5120 = vrot.lane.b32.xlu1 %v5119_v46, %s6122_s28  ;;  %v6527_v60 = vpop.permute.xlu1 %4890 }
  0x84   : > { %5115 = vrot.lane.b32.xlu0 %v5089_v35, %s6122_s28  ;;  %v4886_v62 = vpop.permute.xlu0 %4885  ;;  %v4893_v23 = vunpack.i.h.bf16 %v6527_v60  ;;  %v4892_v24 = vunpack.i.l.bf16 %v6527_v60 }
  0x85   : > { %v4888_v14 = vunpack.i.h.bf16 %v4886_v62  ;;  %v4887_v15 = vunpack.i.l.bf16 %v4886_v62 }
  0x87   : > { %5130 = vrot.lane.b32.xlu1 %v5109_v41, %s6116_s16  ;;  %v1769_v28 = vsel %vm334_vm0, %v456_v17, %v4888_v14  ;;  %v1768_v29 = vsel %vm334_vm0, %v455_v18, %v4887_v15 }
  0x88   : > { %5125 = vrot.lane.b32.xlu0 %v5079_v26, %s6116_s16  ;;  %v602_v26 = vld [vmem:[#allocation2 + $0xf9] sm:$0xff]  ;;  %v1802_v50 = vsel %vm1800_vm4, %v1769_v28, %v4893_v23  ;;  %v698_v23 = vld [vmem:[#allocation2 + $0x109] sm:$0xff] }
  0x89   : > { %v6581_v49 = vpack.i.bf16 %v602_v26, %v601_v25 }
  0x8b   : > { %5140 = vrot.lane.b32.xlu1 %v5119_v46, %s6115_s15 }
  0x8c   : > { %5135 = vrot.lane.b32.xlu0 %v5089_v35, %s6115_s15 }
  0x8f   : > { %5150 = vrot.lane.b32.xlu1 %v5149_v51, %s6117_s17 }
  0x90   : > { %5145 = vrot.lane.b32.xlu0 %v5099_v38, %s6117_s17  ;;  %v666_v38 = vld [vmem:[#allocation2 + $0x108] sm:$0xff] }
  0x93   : > { %5160 = vrot.lane.b32.xlu1 %v5159_v54, %s6118_s18 }
  0x94   : > { %5155 = vrot.lane.b32.xlu0 %v5109_v41, %s6118_s18 }
  0x97   : > { %5170 = vrot.lane.b32.xlu1 %v5169_v57, %s6119_s19 }
  0x98   : > { %5165 = vrot.lane.b32.xlu0 %v5119_v46, %s6119_s19 }
  0x9b   : > { %5180 = vrot.lane.b32.xlu1 %v6529_v61, %s6120_s22 }
  0x9c   : > { %5175 = vrot.lane.b32.xlu0 %v5149_v51, %s6120_s22  ;;  %v6589_v51 = vpack.i.bf16 %v667_v39, %v666_v38 }
  0x9d   : > { %v4901_v5 = vpop.permute.xlu1 %4900 }
  0x9e   : > { %v4896_v6 = vpop.permute.xlu0 %4895  ;;  %v4903_v32 = vunpack.i.h.bf16 %v4901_v5  ;;  %v4902_v35 = vunpack.i.l.bf16 %v4901_v5 }
  0x9f   : > { %5190 = vrot.lane.b32.xlu1 %v6534_v2, %s6121_s27  ;;  %v4898_v19 = vunpack.i.h.bf16 %v4896_v6  ;;  %v4897_v20 = vunpack.i.l.bf16 %v4896_v6 }
  0xa0   : > { %5185 = vrot.lane.b32.xlu0 %v5159_v54, %s6121_s27 }
  0xa1   : > { %v6542_v8 = vpop.permute.xlu1 %4910  ;;  %v1770_v40 = vsel %vm334_vm0, %v6419_v31, %v4897_v20  ;;  %v1771_v41 = vsel %vm334_vm0, %v6423_v34, %v4898_v19  ;;  %v1801_v31 = vsel %vm1800_vm4, %v1768_v29, %v4892_v24  ;;  %v6587_v34 = vpack.i.bf16 %v634_v37, %v633_v27  ;;  %v699_v24 = vld [vmem:[#allocation2 + $0x111] sm:$0xff] }
  0xa2   : > { %v6544_v9 = vpop.permute.xlu0 %4905  ;;  %v4913_v42 = vunpack.i.h.bf16 %v6542_v8  ;;  %v4912_v45 = vunpack.i.l.bf16 %v6542_v8  ;;  %v1803_v52 = vsel %vm1800_vm4, %v1770_v40, %v4902_v35  ;;  %v1804_v53 = vsel %vm1800_vm4, %v1771_v41, %v4903_v32 }
  0xa3   : > { %5200 = vrot.lane.b32.xlu1 %v6539_v7, %s6122_s28  ;;  %v4908_v47 = vunpack.i.h.bf16 %v6544_v9  ;;  %v4907_v48 = vunpack.i.l.bf16 %v6544_v9  ;;  %v6633_v41 = vpack.i.bf16 %v699_v24, %v698_v23 }
  0xa4   : > { %5195 = vrot.lane.b32.xlu0 %v5169_v57, %s6122_s28  ;;  %v1837_v58 = vsel %vm1833_vm5, %v1804_v53, %v4913_v42 }
  0xa5   : > { %v6549_v10 = vpop.permute.xlu1 %4920  ;;  %v1835_v62 = vsel %vm1833_vm5, %v1802_v50, %v4908_v47  ;;  %v1834_v63 = vsel %vm1833_vm5, %v1801_v31, %v4907_v48  ;;  %v730_v50 = vld [vmem:[#allocation2 + $0x10a] sm:$0xff] }
  0xa6   : > { %v6551_v11 = vpop.permute.xlu0 %4915  ;;  %v4923_v4 = vunpack.i.h.bf16 %v6549_v10  ;;  %v4922_v5 = vunpack.i.l.bf16 %v6549_v10 }
  0xa7   : > { %5210 = vrot.lane.b32.xlu1 %v6534_v2, %s6116_s16  ;;  %v4917_v55 = vunpack.i.l.bf16 %v6551_v11 }
  0xa8   : > { %5205 = vrot.lane.b32.xlu0 %v5159_v54, %s6116_s16  ;;  %v4918_v54 = vunpack.i.h.bf16 %v6551_v11  ;;  %v1870_v32 = vsel %vm1866_vm2, %v1837_v58, %v4923_v4  ;;  %v637_v4 = vld [vmem:[#allocation2 + $0x122] sm:$0xff] }
  0xa9   : > { %v6556_v16 = vpop.permute.xlu1 %4930  ;;  %v1867_v9 = vsel %vm1866_vm2, %v1834_v63, %v4917_v55  ;;  %v574_v63 = vld [vmem:[#allocation2 + $0x128] sm:$0xff] }
  0xaa   : > { %v6558_v21 = vpop.permute.xlu0 %4925  ;;  %v1868_v11 = vsel %vm1866_vm2, %v1835_v62, %v4918_v54  ;;  %v4933_v12 = vunpack.i.h.bf16 %v6556_v16  ;;  %v4932_v13 = vunpack.i.l.bf16 %v6556_v16  ;;  %v573_v62 = vld [vmem:[#allocation2 + $0x120] sm:$0xff] }
  0xab   : > { %5220 = vrot.lane.b32.xlu1 %v6539_v7, %s6115_s15  ;;  %v4928_v59 = vunpack.i.h.bf16 %v6558_v21  ;;  %v4927_v60 = vunpack.i.l.bf16 %v6558_v21 }
  0xac   : > { %5215 = vrot.lane.b32.xlu0 %v5169_v57, %s6115_s15  ;;  %v1836_v57 = vsel %vm1833_vm5, %v1803_v52, %v4912_v45  ;;  %v1903_v39 = vsel %vm1899_vm6, %v1870_v32, %v4933_v12  ;;  %v731_v52 = vld [vmem:[#allocation2 + $0x112] sm:$0xff] }
  0xad   : > { %v6569_v36 = vpop.permute.xlu1 %4940  ;;  %v1900_v15 = vsel %vm1899_vm6, %v1867_v9, %v4927_v60  ;;  %v1901_v17 = vsel %vm1899_vm6, %v1868_v11, %v4928_v59  ;;  %v1869_v29 = vsel %vm1866_vm2, %v1836_v57, %v4922_v5  ;;  %v6648_v58 = vpack.i.bf16 %v731_v52, %v730_v50  ;;  %v670_v9 = vld [vmem:[#allocation2 + $0x138] sm:$0xff]  ;;  %v671_v11 = vld [vmem:[#allocation2 + $0x140] sm:$0xff] }
  0xae   : > { %v4936_v46 = vpop.permute.xlu0 %4935  ;;  %v4943_v10 = vunpack.i.h.bf16 %v6569_v36  ;;  %v4942_v18 = vunpack.i.l.bf16 %v6569_v36  ;;  %v1902_v38 = vsel %vm1899_vm6, %v1869_v29, %v4932_v13  ;;  %v6675_v24 = vpack.i.bf16 %v671_v11, %v670_v9 }
  0xaf   : > { %5230 = vrot.lane.b32.xlu1 %v6562_v22, %s6117_s17  ;;  %v4938_v1 = vunpack.i.h.bf16 %v4936_v46  ;;  %v4937_v3 = vunpack.i.l.bf16 %v4936_v46 }
  0xb0   : > { %5225 = vrot.lane.b32.xlu0 %v6529_v61, %s6117_s17  ;;  %v1935_v42 = vsel %vm1932_vm7, %v1902_v38, %v4942_v18  ;;  %v1936_v45 = vsel %vm1932_vm7, %v1903_v39, %v4943_v10 }
  0xb1   : > { %v4951_v56 = vpop.permute.xlu1 %4950  ;;  %v1933_v21 = vsel %vm1932_vm7, %v1900_v15, %v4937_v3  ;;  %v1934_v16 = vsel %vm1932_vm7, %v1901_v17, %v4938_v1  ;;  %v605_v1 = vld [vmem:[#allocation2 + $0x121] sm:$0xff]  ;;  %v606_v3 = vld [vmem:[#allocation2 + $0x129] sm:$0xff] }
  0xb2   : > { %v4946_v61 = vpop.permute.xlu0 %4945  ;;  %v4953_v25 = vunpack.i.h.bf16 %v4951_v56  ;;  %v4952_v26 = vunpack.i.l.bf16 %v4951_v56 }
  0xb3   : > { %5240 = vrot.lane.b32.xlu1 %v6581_v49, %s6118_s18  ;;  %v4948_v6 = vunpack.i.h.bf16 %v4946_v61  ;;  %v4947_v8 = vunpack.i.l.bf16 %v4946_v61 }
  0xb4   : > { %5235 = vrot.lane.b32.xlu0 %v6534_v2, %s6118_s18  ;;  %v1968_v48 = vsel %vm1965_vm8, %v1935_v42, %v4952_v26  ;;  %v1969_v31 = vsel %vm1965_vm8, %v1936_v45, %v4953_v25 }
  0xb5   : > { %v6611_v14 = vpop.permute.xlu1 %4960  ;;  %v1966_v27 = vsel %vm1965_vm8, %v1933_v21, %v4947_v8  ;;  %v1967_v28 = vsel %vm1965_vm8, %v1934_v16, %v4948_v6  ;;  %v638_v8 = vld [vmem:[#allocation2 + $0x12a] sm:$0xff]  ;;  %v6669_v21 = vpack.i.bf16 %v606_v3, %v605_v1 }
  0xb6   : > { %v4956_v19 = vpop.permute.xlu0 %4955  ;;  %v4963_v12 = vunpack.i.h.bf16 %v6611_v14  ;;  %v4962_v13 = vunpack.i.l.bf16 %v6611_v14 }
  0xb7   : > { %v4958_v2 = vunpack.i.h.bf16 %v4956_v19  ;;  %v4957_v20 = vunpack.i.l.bf16 %v4956_v19  ;;  %5250 = vrot.lane.b32.xlu1 %v6587_v34, %s6119_s19 }
  0xb8   : > { %5245 = vrot.lane.b32.xlu0 %v6539_v7, %s6119_s19  ;;  %v1772_v29 = vsel %vm334_vm0, %v6417_v30, %v4962_v13 }
  0xb9   : > { %v6627_v35 = vpop.permute.xlu1 %4970  ;;  %v1999_v36 = vsel %vm1998_vm9, %v1966_v27, %v4957_v20  ;;  %v2000_v37 = vsel %vm1998_vm9, %v1967_v28, %v4958_v2  ;;  %v6667_v20 = vpack.i.bf16 %v574_v63, %v573_v62  ;;  %v1773_v28 = vsel %vm334_vm0, %v6421_v33, %v4963_v12 }
  0xba   : > { %v4966_v40 = vpop.permute.xlu0 %4965  ;;  %v2031_v7 = vpack.c.bf16 %v2000_v37, %v1999_v36  ;;  %v4973_v5 = vunpack.i.h.bf16 %v6627_v35  ;;  %v4972_v6 = vunpack.i.l.bf16 %v6627_v35 }
  0xbb   : > { %v4968_v46 = vunpack.i.h.bf16 %v4966_v40  ;;  %v4967_v47 = vunpack.i.l.bf16 %v4966_v40  ;;  %5260 = vrot.lane.b32.xlu1 %v6589_v51, %s6120_s22 }
  0xbc   : > { %5255 = vrot.lane.b32.xlu0 %v6562_v22, %s6120_s22  ;;  %4766 = vmatprep.mubr.msk.bf16.mxu0 %vm2074_vm10, %v2031_v7  ;;  %v1775_v14 = vsel %vm334_vm0, %v6437_v44, %v4973_v5  ;;  %v1774_v25 = vsel %vm334_vm0, %v6435_v43, %v4972_v6 }
  0xbd   : > { %v2001_v53 = vsel %vm1998_vm9, %v1968_v48, %v4967_v47  ;;  %v2002_v54 = vsel %vm1998_vm9, %v1969_v31, %v4968_v46  ;;  %v4981_v55 = vpop.permute.xlu1 %4980 }
  0xbe   : > { %v4976_v56 = vpop.permute.xlu0 %4975  ;;  %v2032_v57 = vpack.c.bf16 %v2002_v54, %v2001_v53  ;;  %v4983_v15 = vunpack.i.h.bf16 %v4981_v55  ;;  %v4982_v17 = vunpack.i.l.bf16 %v4981_v55 }
  0xbf   : > { %5270 = vrot.lane.b32.xlu1 %v6633_v41, %s6121_s27  ;;  %v4978_v18 = vunpack.i.h.bf16 %v4976_v56  ;;  %v4977_v19 = vunpack.i.l.bf16 %v4976_v56 }
  0xc0   : > { %5265 = vrot.lane.b32.xlu0 %v6581_v49, %s6121_s27  ;;  %4767 = vmatmul.mubr.msk.bf16.vlgmr.msra.gmra.mrb[0].mxu0 %vm2074_vm10, %v2032_v57  ;;  %v1807_v32 = vsel %vm1800_vm4, %v1774_v25, %v4982_v17  ;;  %v1808_v35 = vsel %vm1800_vm4, %v1775_v14, %v4983_v15  ;;  %v702_v14 = vld [vmem:[#allocation2 + $0x139] sm:$0xff]  ;;  %v703_v25 = vld [vmem:[#allocation2 + $0x141] sm:$0xff] }
  0xc1   : > { %v4991_v22 = vpop.permute.xlu1 %4990  ;;  %v1806_v44 = vsel %vm1800_vm4, %v1773_v28, %v4978_v18  ;;  %v1805_v43 = vsel %vm1800_vm4, %v1772_v29, %v4977_v19 }
  0xc2   : > { %v4986_v59 = vpop.permute.xlu0 %4985  ;;  %v4993_v16 = vunpack.i.h.bf16 %v4991_v22  ;;  %v4992_v23 = vunpack.i.l.bf16 %v4991_v22 }
  0xc3   : > { %5280 = vrot.lane.b32.xlu1 %v6648_v58, %s6122_s28  ;;  %v4988_v26 = vunpack.i.h.bf16 %v4986_v59  ;;  %v4987_v27 = vunpack.i.l.bf16 %v4986_v59 }
  0xc4   : > { %5275 = vrot.lane.b32.xlu0 %v6587_v34, %s6122_s28  ;;  %v1841_v40 = vsel %vm1833_vm5, %v1808_v35, %v4993_v16 }
  0xc5   : > { %v5001_v60 = vpop.permute.xlu1 %5000  ;;  %v1838_v7 = vsel %vm1833_vm5, %v1805_v43, %v4987_v27  ;;  %v1839_v42 = vsel %vm1833_vm5, %v1806_v44, %v4988_v26  ;;  %v735_v44 = vld [vmem:[#allocation2 + $0x142] sm:$0xff] }
  0xc6   : > { %v6657_v61 = vpop.permute.xlu0 %4995  ;;  %v5003_v37 = vunpack.i.h.bf16 %v5001_v60  ;;  %v5002_v38 = vunpack.i.l.bf16 %v5001_v60 }
  0xc7   : > { %5290 = vrot.lane.b32.xlu1 %v6633_v41, %s6116_s16  ;;  %v4998_v33 = vunpack.i.h.bf16 %v6657_v61  ;;  %v4997_v30 = vunpack.i.l.bf16 %v6657_v61 }
  0xc8   : > { %5285 = vrot.lane.b32.xlu0 %v6581_v49, %s6116_s16  ;;  %v6673_v49 = vpack.i.bf16 %v638_v8, %v637_v4  ;;  %v1874_v54 = vsel %vm1866_vm2, %v1841_v40, %v5003_v37 }
  0xc9   : > { %v5011_v10 = vpop.permute.xlu1 %5010  ;;  %v1871_v22 = vsel %vm1866_vm2, %v1838_v7, %v4997_v30  ;;  %v1872_v59 = vsel %vm1866_vm2, %v1839_v42, %v4998_v33  ;;  %v577_v33 = vld [vmem:[#allocation2 + $0x150] sm:$0xff]  ;;  %v578_v30 = vld [vmem:[#allocation2 + $0x158] sm:$0xff] }
  0xca   : > { %v5006_v2 = vpop.permute.xlu0 %5005  ;;  %v5013_v45 = vunpack.i.h.bf16 %v5011_v10  ;;  %v5012_v46 = vunpack.i.l.bf16 %v5011_v10  ;;  %v609_v7 = vld [vmem:[#allocation2 + $0x151] sm:$0xff]  ;;  %v610_v42 = vld [vmem:[#allocation2 + $0x159] sm:$0xff] }
  0xcb   : > { %5300 = vrot.lane.b32.xlu1 %v6648_v58, %s6115_s15  ;;  %v5008_v47 = vunpack.i.h.bf16 %v5006_v2  ;;  %v5007_v48 = vunpack.i.l.bf16 %v5006_v2 }
  0xcc   : > { %5295 = vrot.lane.b32.xlu0 %v6587_v34, %s6115_s15  ;;  %v1840_v34 = vsel %vm1833_vm5, %v1807_v32, %v4992_v23  ;;  %v1907_v62 = vsel %vm1899_vm6, %v1874_v54, %v5013_v45  ;;  %v641_v45 = vld [vmem:[#allocation2 + $0x152] sm:$0xff] }
  0xcd   : > { %v5021_v36 = vpop.permute.xlu1 %5020  ;;  %v1873_v53 = vsel %vm1866_vm2, %v1840_v34, %v5002_v38  ;;  %v1904_v3 = vsel %vm1899_vm6, %v1871_v22, %v5007_v48  ;;  %v1905_v4 = vsel %vm1899_vm6, %v1872_v59, %v5008_v47  ;;  %v642_v48 = vld [vmem:[#allocation2 + $0x15a] sm:$0xff] }
  0xce   : > { %v5016_v39 = vpop.permute.xlu0 %5015  ;;  %v5023_v31 = vunpack.i.h.bf16 %v5021_v36  ;;  %v5022_v50 = vunpack.i.l.bf16 %v5021_v36  ;;  %v6731_v36 = vpack.i.bf16 %v703_v25, %v702_v14  ;;  %v463_v59 = vld [vmem:[#allocation2 + $0x60] sm:$0xff] }
  0xcf   : > { %5310 = vrot.lane.b32.xlu1 %v6667_v20, %s6117_s17  ;;  %v5018_v55 = vunpack.i.h.bf16 %v5016_v39  ;;  %v5017_v56 = vunpack.i.l.bf16 %v5016_v39 }
  0xd0   : > { %5305 = vrot.lane.b32.xlu0 %v6589_v51, %s6117_s17  ;;  %v1906_v51 = vsel %vm1899_vm6, %v1873_v53, %v5012_v46  ;;  %v1940_v6 = vsel %vm1932_vm7, %v1907_v62, %v5023_v31  ;;  %v674_v31 = vld [vmem:[#allocation2 + $0x168] sm:$0xff]  ;;  %v466_v53 = vld [vmem:[#allocation2 + $0x80] sm:$0xff] }
  0xd1   : > { %v5031_v52 = vpop.permute.xlu1 %5030  ;;  %v1939_v5 = vsel %vm1932_vm7, %v1906_v51, %v5022_v50  ;;  %v1937_v9 = vsel %vm1932_vm7, %v1904_v3, %v5017_v56  ;;  %v1938_v11 = vsel %vm1932_vm7, %v1905_v4, %v5018_v55  ;;  %v675_v50 = vld [vmem:[#allocation2 + $0x170] sm:$0xff]  ;;  %v6761_v4 = vpack.i.bf16 %v642_v48, %v641_v45 }
  0xd2   : > { %v5026_v57 = vpop.permute.xlu0 %5025  ;;  %v5033_v60 = vunpack.i.h.bf16 %v5031_v52  ;;  %v5032_v61 = vunpack.i.l.bf16 %v5031_v52  ;;  %v465_v52 = vld [vmem:[#allocation2 + $0x78] sm:$0xff] }
  0xd3   : > { %5320 = vrot.lane.b32.xlu1 %v6669_v21, %s6118_s18  ;;  %v5028_v63 = vunpack.i.h.bf16 %v5026_v57  ;;  %v5027_v1 = vunpack.i.l.bf16 %v5026_v57 }
  0xd4   : > { %5315 = vrot.lane.b32.xlu0 %v6633_v41, %s6118_s18  ;;  %v1972_v17 = vsel %vm1965_vm8, %v1939_v5, %v5032_v61  ;;  %v1973_v41 = vsel %vm1965_vm8, %v1940_v6, %v5033_v60  ;;  %v464_v60 = vld [vmem:[#allocation2 + $0x68] sm:$0xff]  ;;  %v6763_v5 = vpack.i.bf16 %v675_v50, %v674_v31 }
  0xd5   : > { %v5041_v8 = vpop.permute.xlu1 %5040  ;;  %v1970_v19 = vsel %vm1965_vm8, %v1937_v9, %v5027_v1  ;;  %v1971_v2 = vsel %vm1965_vm8, %v1938_v11, %v5028_v63  ;;  %v6755_v63 = vpack.i.bf16 %v578_v30, %v577_v33  ;;  %v6757_v1 = vpack.i.bf16 %v610_v42, %v609_v7 }
  0xd6   : > { %v5043_v12 = vunpack.i.h.bf16 %v5041_v8  ;;  %v5042_v13 = vunpack.i.l.bf16 %v5041_v8  ;;  %v5036_v15 = vpop.permute.xlu0 %5035 }
  0xd7   : > { %v5038_v10 = vunpack.i.h.bf16 %v5036_v15  ;;  %v5037_v18 = vunpack.i.l.bf16 %v5036_v15  ;;  %5330 = vrot.lane.b32.xlu1 %v6673_v49, %s6119_s19 }
  0xd8   : > { %v2005_v16 = vsel %vm1998_vm9, %v1972_v17, %v5042_v13  ;;  %v2006_v23 = vsel %vm1998_vm9, %v1973_v41, %v5043_v12  ;;  %5325 = vrot.lane.b32.xlu0 %v6648_v58, %s6119_s19  ;;  %v734_v58 = vld [vmem:[#allocation2 + $0x13a] sm:$0xff] }
  0xd9   : > { %v2003_v26 = vsel %vm1998_vm9, %v1970_v19, %v5037_v18  ;;  %v2004_v27 = vsel %vm1998_vm9, %v1971_v2, %v5038_v10  ;;  %v5051_v28 = vpop.permute.xlu1 %5050  ;;  %v2034_v29 = vpack.c.bf16 %v2006_v23, %v2005_v16  ;;  %v6739_v38 = vpack.i.bf16 %v735_v44, %v734_v58 }
  0xda   : > { %v5046_v32 = vpop.permute.xlu0 %5045  ;;  %v2033_v35 = vpack.c.bf16 %v2004_v27, %v2003_v26  ;;  %v5053_v46 = vunpack.i.h.bf16 %v5051_v28  ;;  %v5052_v47 = vunpack.i.l.bf16 %v5051_v28 }
  0xdb   : > { %5340 = vrot.lane.b32.xlu1 %v6675_v24, %s6120_s22  ;;  %v5048_v54 = vunpack.i.h.bf16 %v5046_v32  ;;  %v5047_v55 = vunpack.i.l.bf16 %v5046_v32 }
  0xdc   : > { %5335 = vrot.lane.b32.xlu0 %v6667_v20, %s6120_s22  ;;  %4770 = vmatprep.mubr.msk.bf16.mxu0 %vm2074_vm10, %v2033_v35  ;;  %v1779_v6 = vsel %vm334_vm0, %v466_v53, %v5053_v46  ;;  %v1778_v8 = vsel %vm334_vm0, %v465_v52, %v5052_v47 }
  0xdd   : > { %4771 = vmatmul.mubr.msk.bf16.gmra.mrb[4].mxu0 %vm2074_vm10, %v2034_v29  ;;  %v5061_v43 = vpop.permute.xlu1 %5060  ;;  %v1777_v12 = vsel %vm334_vm0, %v464_v60, %v5048_v54  ;;  %v1776_v13 = vsel %vm334_vm0, %v463_v59, %v5047_v55 }
  0xde   : > { %v5056_v37 = vpop.permute.xlu0 %5055  ;;  %v5063_v56 = vunpack.i.h.bf16 %v5061_v43  ;;  %v5062_v57 = vunpack.i.l.bf16 %v5061_v43 }
  0xdf   : > { %5350 = vrot.lane.b32.xlu1 %v6731_v36, %s6121_s27  ;;  %v5058_v61 = vunpack.i.h.bf16 %v5056_v37  ;;  %v5057_v51 = vunpack.i.l.bf16 %v5056_v37 }
  0xe0   : > { %5345 = vrot.lane.b32.xlu0 %v6669_v21, %s6121_s27  ;;  %v1811_v15 = vsel %vm1800_vm4, %v1778_v8, %v5062_v57  ;;  %v1812_v17 = vsel %vm1800_vm4, %v1779_v6, %v5063_v56  ;;  %v706_v6 = vld [vmem:[#allocation2 + $0x169] sm:$0xff]  ;;  %v707_v8 = vld [vmem:[#allocation2 + $0x171] sm:$0xff] }
  0xe1   : > { %v5071_v39 = vpop.permute.xlu1 %5070  ;;  %v1809_v10 = vsel %vm1800_vm4, %v1776_v13, %v5057_v51  ;;  %v1810_v18 = vsel %vm1800_vm4, %v1777_v12, %v5058_v61 }
  0xe2   : > { %v5066_v34 = vpop.permute.xlu0 %5065  ;;  %v5072_v3 = vunpack.i.l.bf16 %v5071_v39 }
  0xe3   : > { %5360 = vrot.lane.b32.xlu1 %v6739_v38, %s6122_s28  ;;  %v5068_v9 = vunpack.i.h.bf16 %v5066_v34  ;;  %v5067_v11 = vunpack.i.l.bf16 %v5066_v34 }
  0xe4   : > { %5355 = vrot.lane.b32.xlu0 %v6673_v49, %s6122_s28 }
  0xe5   : > { %v6747_v20 = vpop.permute.xlu1 %5080  ;;  %v1842_v26 = vsel %vm1833_vm5, %v1809_v10, %v5067_v11  ;;  %v1843_v27 = vsel %vm1833_vm5, %v1810_v18, %v5068_v9  ;;  %v739_v10 = vld [vmem:[#allocation2 + $0x172] sm:$0xff] }
  0xe6   : > { %v6749_v40 = vpop.permute.xlu0 %5075  ;;  %v5083_v19 = vunpack.i.h.bf16 %v6747_v20  ;;  %v5082_v2 = vunpack.i.l.bf16 %v6747_v20 }
  0xe7   : > { %5370 = vrot.lane.b32.xlu1 %v6731_v36, %s6116_s16  ;;  %v5078_v14 = vunpack.i.h.bf16 %v6749_v40  ;;  %v5077_v25 = vunpack.i.l.bf16 %v6749_v40 }
  0xe8   : > { %5365 = vrot.lane.b32.xlu0 %v6669_v21, %s6116_s16  ;;  %v5073_v21 = vunpack.i.h.bf16 %v5071_v39 }
  0xe9   : > { %v5091_v22 = vpop.permute.xlu1 %5090  ;;  %v1875_v33 = vsel %vm1866_vm2, %v1842_v26, %v5077_v25  ;;  %v1876_v30 = vsel %vm1866_vm2, %v1843_v27, %v5078_v14  ;;  %v581_v14 = vld [vmem:[#allocation2 + $0x180] sm:$0xff]  ;;  %v582_v25 = vld [vmem:[#allocation2 + $0x188] sm:$0xff] }
  0xea   : > { %v5086_v62 = vpop.permute.xlu0 %5085  ;;  %v1845_v23 = vsel %vm1833_vm5, %v1812_v17, %v5073_v21  ;;  %v5093_v28 = vunpack.i.h.bf16 %v5091_v22  ;;  %v5092_v29 = vunpack.i.l.bf16 %v5091_v22  ;;  %v613_v26 = vld [vmem:[#allocation2 + $0x181] sm:$0xff]  ;;  %v614_v27 = vld [vmem:[#allocation2 + $0x189] sm:$0xff] }
  0xeb   : > { %5380 = vrot.lane.b32.xlu1 %v6739_v38, %s6115_s15  ;;  %v5088_v32 = vunpack.i.h.bf16 %v5086_v62  ;;  %v5087_v35 = vunpack.i.l.bf16 %v5086_v62  ;;  %v1878_v39 = vsel %vm1866_vm2, %v1845_v23, %v5083_v19 }
  0xec   : > { %5375 = vrot.lane.b32.xlu0 %v6673_v49, %s6115_s15  ;;  %v1844_v49 = vsel %vm1833_vm5, %v1811_v15, %v5072_v3  ;;  %v1911_v45 = vsel %vm1899_vm6, %v1878_v39, %v5093_v28  ;;  %v645_v28 = vld [vmem:[#allocation2 + $0x182] sm:$0xff]  ;;  %v470_v39 = vld [vmem:[#allocation2 + $0xb0] sm:$0xff] }
  0xed   : > { %v5101_v41 = vpop.permute.xlu1 %5100  ;;  %v1877_v37 = vsel %vm1866_vm2, %v1844_v49, %v5082_v2  ;;  %v1908_v48 = vsel %vm1899_vm6, %v1875_v33, %v5087_v35  ;;  %v1909_v31 = vsel %vm1899_vm6, %v1876_v30, %v5088_v32 }
  0xee   : > { %v5096_v16 = vpop.permute.xlu0 %5095  ;;  %v5103_v58 = vunpack.i.h.bf16 %v5101_v41  ;;  %v5102_v44 = vunpack.i.l.bf16 %v5101_v41  ;;  %v6817_v41 = vpack.i.bf16 %v707_v8, %v706_v6 }
  0xef   : > { %5390 = vrot.lane.b32.xlu1 %v6755_v63, %s6117_s17  ;;  %v5098_v34 = vunpack.i.h.bf16 %v5096_v16  ;;  %v5097_v20 = vunpack.i.l.bf16 %v5096_v16 }
  0xf0   : > { %5385 = vrot.lane.b32.xlu0 %v6675_v24, %s6117_s17  ;;  %v1910_v24 = vsel %vm1899_vm6, %v1877_v37, %v5092_v29  ;;  %v1944_v52 = vsel %vm1932_vm7, %v1911_v45, %v5103_v58  ;;  %v646_v58 = vld [vmem:[#allocation2 + $0x18a] sm:$0xff] }
  0xf1   : > { %v5111_v43 = vpop.permute.xlu1 %5110  ;;  %v1943_v50 = vsel %vm1932_vm7, %v1910_v24, %v5102_v44  ;;  %v1941_v54 = vsel %vm1932_vm7, %v1908_v48, %v5097_v20  ;;  %v1942_v55 = vsel %vm1932_vm7, %v1909_v31, %v5098_v34  ;;  %v6841_v44 = vld [vmem:[#allocation2 + $0x198] sm:$0xff]  ;;  %v469_v37 = vld [vmem:[#allocation2 + $0xa8] sm:$0xff]  ;;  %v467_v34 = vld [vmem:[#allocation2 + $0x90] sm:$0xff] }
  0xf2   : > { %v5106_v40 = vpop.permute.xlu0 %5105  ;;  %v5113_v7 = vunpack.i.h.bf16 %v5111_v43  ;;  %v5112_v42 = vunpack.i.l.bf16 %v5111_v43  ;;  %v6843_v43 = vld [vmem:[#allocation2 + $0x1a0] sm:$0xff] }
  0xf3   : > { %5400 = vrot.lane.b32.xlu1 %v6757_v1, %s6118_s18  ;;  %v5108_v46 = vunpack.i.h.bf16 %v5106_v40  ;;  %v5107_v47 = vunpack.i.l.bf16 %v5106_v40 }
  0xf4   : > { %5395 = vrot.lane.b32.xlu0 %v6731_v36, %s6118_s18  ;;  %v1976_v59 = vsel %vm1965_vm8, %v1943_v50, %v5112_v42  ;;  %v1977_v36 = vsel %vm1965_vm8, %v1944_v52, %v5113_v7  ;;  %v468_v42 = vld [vmem:[#allocation2 + $0x98] sm:$0xff]  ;;  %v6855_v50 = vpack.i.bf16 %v646_v58, %v645_v28  ;;  %v5499_v52 = vpack.i.bf16 %v6843_v43, %v6841_v44 }
  0xf5   : > { %v5121_v53 = vpop.permute.xlu1 %5120  ;;  %v1974_v51 = vsel %vm1965_vm8, %v1941_v54, %v5107_v47  ;;  %v1975_v62 = vsel %vm1965_vm8, %v1942_v55, %v5108_v46  ;;  %v6851_v47 = vpack.i.bf16 %v614_v27, %v613_v26  ;;  %v2440_v43 = vld [vmem:[#allocation3 + $0x1] sm:$0xff] }
  0xf6   : > { %v5123_v56 = vunpack.i.h.bf16 %v5121_v53  ;;  %v5122_v57 = vunpack.i.l.bf16 %v5121_v53  ;;  %v5116_v22 = vpop.permute.xlu0 %5115 }
  0xf7   : > { %v5118_v60 = vunpack.i.h.bf16 %v5116_v22  ;;  %v5117_v61 = vunpack.i.l.bf16 %v5116_v22  ;;  %5410 = vrot.lane.b32.xlu1 %v6761_v4, %s6119_s19 }
  0xf8   : > { %v2009_v21 = vsel %vm1998_vm9, %v1976_v59, %v5122_v57  ;;  %v2010_v3 = vsel %vm1998_vm9, %v1977_v36, %v5123_v56  ;;  %5405 = vrot.lane.b32.xlu0 %v6739_v38, %s6119_s19  ;;  %v738_v38 = vld [vmem:[#allocation2 + $0x16a] sm:$0xff] }
  0xf9   : > { %v2007_v9 = vsel %vm1998_vm9, %v1974_v51, %v5117_v61  ;;  %v2008_v11 = vsel %vm1998_vm9, %v1975_v62, %v5118_v60  ;;  %v5131_v12 = vpop.permute.xlu1 %5130  ;;  %v2036_v13 = vpack.c.bf16 %v2010_v3, %v2009_v21  ;;  %v6825_v2 = vpack.i.bf16 %v739_v10, %v738_v38 }
  0xfa   : > { %v5126_v15 = vpop.permute.xlu0 %5125  ;;  %v2035_v17 = vpack.c.bf16 %v2008_v11, %v2007_v9  ;;  %v5133_v29 = vunpack.i.h.bf16 %v5131_v12  ;;  %v5132_v32 = vunpack.i.l.bf16 %v5131_v12 }
  0xfb   : > { %5420 = vrot.lane.b32.xlu1 %v6763_v5, %s6120_s22  ;;  %v5127_v35 = vunpack.i.l.bf16 %v5126_v15  ;;  %v5128_v20 = vunpack.i.h.bf16 %v5126_v15 }
  0xfc   : > { %5415 = vrot.lane.b32.xlu0 %v6755_v63, %s6120_s22  ;;  %4774 = vmatprep.mubr.msk.bf16.mxu0 %vm2074_vm10, %v2035_v17  ;;  %v1783_v53 = vsel %vm334_vm0, %v470_v39, %v5133_v29  ;;  %v1782_v54 = vsel %vm334_vm0, %v469_v37, %v5132_v32 }
  0xfd   : > { %4775 = vmatmul.mubr.msk.bf16.gmra.mrb[8].mxu0 %vm2074_vm10, %v2036_v13  ;;  %v5141_v18 = vpop.permute.xlu1 %5140  ;;  %v1780_v55 = vsel %vm334_vm0, %v467_v34, %v5127_v35  ;;  %v1781_v57 = vsel %vm334_vm0, %v468_v42, %v5128_v20 }
  0xfe   : > { %v5136_v19 = vpop.permute.xlu0 %5135  ;;  %v5143_v40 = vunpack.i.h.bf16 %v5141_v18  ;;  %v5142_v33 = vunpack.i.l.bf16 %v5141_v18 }
  0xff   : > { %5430 = vrot.lane.b32.xlu1 %v6817_v41, %s6121_s27  ;;  %v5137_v30 = vunpack.i.l.bf16 %v5136_v19  ;;  %v5138_v24 = vunpack.i.h.bf16 %v5136_v19 }
 0x100   : > { %5425 = vrot.lane.b32.xlu0 %v6757_v1, %s6121_s27  ;;  %v1815_v22 = vsel %vm1800_vm4, %v1782_v54, %v5142_v33  ;;  %v1816_v59 = vsel %vm1800_vm4, %v1783_v53, %v5143_v40  ;;  %v710_v53 = vld [vmem:[#allocation2 + $0x199] sm:$0xff]  ;;  %v711_v54 = vld [vmem:[#allocation2 + $0x1a1] sm:$0xff] }
 0x101   : > { %v5151_v16 = vpop.permute.xlu1 %5150  ;;  %v1813_v36 = vsel %vm1800_vm4, %v1780_v55, %v5137_v30  ;;  %v1814_v61 = vsel %vm1800_vm4, %v1781_v57, %v5138_v24 }
 0x102   : > { %v5146_v49 = vpop.permute.xlu0 %5145  ;;  %v5152_v45 = vunpack.i.l.bf16 %v5151_v16  ;;  %v5153_v48 = vunpack.i.h.bf16 %v5151_v16 }
 0x103   : > { %5440 = vrot.lane.b32.xlu1 %v6825_v2, %s6122_s28  ;;  %v5147_v31 = vunpack.i.l.bf16 %v5146_v49  ;;  %v5148_v56 = vunpack.i.h.bf16 %v5146_v49 }
 0x104   : > { %5435 = vrot.lane.b32.xlu0 %v6761_v4, %s6122_s28  ;;  %v1848_v51 = vsel %vm1833_vm5, %v1815_v22, %v5152_v45 }
 0x105   : > { %v6833_v63 = vpop.permute.xlu1 %5160  ;;  %v1846_v6 = vsel %vm1833_vm5, %v1813_v36, %v5147_v31  ;;  %v1847_v11 = vsel %vm1833_vm5, %v1814_v61, %v5148_v56  ;;  %v743_v61 = vld [vmem:[#allocation2 + $0x1a2] sm:$0xff] }
 0x106   : > { %v6835_v23 = vpop.permute.xlu0 %5155  ;;  %v5163_v62 = vunpack.i.h.bf16 %v6833_v63  ;;  %v5162_v21 = vunpack.i.l.bf16 %v6833_v63 }
 0x107   : > { %5450 = vrot.lane.b32.xlu1 %v6817_v41, %s6116_s16  ;;  %v5158_v8 = vunpack.i.h.bf16 %v6835_v23  ;;  %v5157_v9 = vunpack.i.l.bf16 %v6835_v23 }
 0x108   : > { %5445 = vrot.lane.b32.xlu0 %v6757_v1, %s6116_s16  ;;  %v6849_v1 = vpack.i.bf16 %v582_v25, %v581_v14  ;;  %v1881_v19 = vsel %vm1866_vm2, %v1848_v51, %v5162_v21 }
 0x109   : > { %v6845_v7 = vpop.permute.xlu1 %5170  ;;  %v1880_v14 = vsel %vm1866_vm2, %v1847_v11, %v5158_v8  ;;  %v2473_v8 = vld [vmem:[#allocation3 + $0xa] sm:$0xff] }
 0x10a   : > { %v6847_v46 = vpop.permute.xlu0 %5165  ;;  %v5173_v12 = vunpack.i.h.bf16 %v6845_v7  ;;  %v5172_v13 = vunpack.i.l.bf16 %v6845_v7 }
 0x10b   : > { %5460 = vrot.lane.b32.xlu1 %v6825_v2, %s6115_s15  ;;  %v5168_v15 = vunpack.i.h.bf16 %v6847_v46  ;;  %v5167_v17 = vunpack.i.l.bf16 %v6847_v46 }
 0x10c   : > { %5455 = vrot.lane.b32.xlu0 %v6761_v4, %s6115_s15  ;;  %v1849_v4 = vsel %vm1833_vm5, %v1816_v59, %v5153_v48  ;;  %v1914_v27 = vsel %vm1899_vm6, %v1881_v19, %v5172_v13 }
 0x10d   : > { %v5181_v60 = vpop.permute.xlu1 %5180  ;;  %v1882_v16 = vsel %vm1866_vm2, %v1849_v4, %v5163_v62  ;;  %v1913_v35 = vsel %vm1899_vm6, %v1880_v14, %v5168_v15  ;;  %v474_v15 = vld [vmem:[#allocation2 + $0xe0] sm:$0xff] }
 0x10e   : > { %v5176_v3 = vpop.permute.xlu0 %5175  ;;  %v5183_v38 = vunpack.i.h.bf16 %v5181_v60  ;;  %v5182_v10 = vunpack.i.l.bf16 %v5181_v60  ;;  %v1915_v28 = vsel %vm1899_vm6, %v1882_v16, %v5173_v12  ;;  %v5509_v60 = vpack.i.bf16 %v711_v54, %v710_v53  ;;  %v471_v16 = vld [vmem:[#allocation2 + $0xc0] sm:$0xff] }
 0x10f   : > { %5470 = vrot.lane.b32.xlu1 %v6849_v1, %s6117_s17  ;;  %v5178_v49 = vunpack.i.h.bf16 %v5176_v3  ;;  %v5177_v63 = vunpack.i.l.bf16 %v5176_v3 }
 0x110   : > { %5465 = vrot.lane.b32.xlu0 %v6763_v5, %s6117_s17  ;;  %v1879_v5 = vsel %vm1866_vm2, %v1846_v6, %v5157_v9  ;;  %v1947_v58 = vsel %vm1932_vm7, %v1914_v27, %v5182_v10  ;;  %v1948_v37 = vsel %vm1932_vm7, %v1915_v28, %v5183_v38  ;;  %v2472_v6 = vld [vmem:[#allocation3 + $0x2] sm:$0xff] }
 0x111   : > { %v5191_v18 = vpop.permute.xlu1 %5190  ;;  %v1912_v0 = vsel %vm1899_vm6, %v1879_v5, %v5167_v17  ;;  %v1946_v20 = vsel %vm1932_vm7, %v1913_v35, %v5178_v49  ;;  %v5529_v13 = vpack.i.bf16 %v2473_v8, %v2472_v6  ;;  %v472_v49 = vld [vmem:[#allocation2 + $0xc8] sm:$0xff] }
 0x112   : > { %v5186_v23 = vpop.permute.xlu0 %5185  ;;  %v5193_v25 = vunpack.i.h.bf16 %v5191_v18  ;;  %v5192_v26 = vunpack.i.l.bf16 %v5191_v18  ;;  %v1945_v34 = vsel %vm1932_vm7, %v1912_v0, %v5177_v63 }
 0x113   : > { %5480 = vrot.lane.b32.xlu1 %v6851_v47, %s6118_s18  ;;  %v5188_v29 = vunpack.i.h.bf16 %v5186_v23  ;;  %v5187_v32 = vunpack.i.l.bf16 %v5186_v23 }
 0x114   : > { %5475 = vrot.lane.b32.xlu0 %v6817_v41, %s6118_s18  ;;  %v1980_v7 = vsel %vm1965_vm8, %v1947_v58, %v5192_v26  ;;  %v1981_v41 = vsel %vm1965_vm8, %v1948_v37, %v5193_v25 }
 0x115   : > { %v5201_v39 = vpop.permute.xlu1 %5200  ;;  %v1978_v45 = vsel %vm1965_vm8, %v1945_v34, %v5187_v32  ;;  %v1979_v46 = vsel %vm1965_vm8, %v1946_v20, %v5188_v29 }
 0x116   : > { %v5203_v40 = vunpack.i.h.bf16 %v5201_v39  ;;  %v5202_v33 = vunpack.i.l.bf16 %v5201_v39  ;;  %v5196_v30 = vpop.permute.xlu0 %5195 }
 0x117   : > { %v5198_v42 = vunpack.i.h.bf16 %v5196_v30  ;;  %v5197_v24 = vunpack.i.l.bf16 %v5196_v30  ;;  %5490 = vrot.lane.b32.xlu1 %v6855_v50, %s6119_s19 }
 0x118   : > { %v2013_v48 = vsel %vm1998_vm9, %v1980_v7, %v5202_v33  ;;  %v2014_v31 = vsel %vm1998_vm9, %v1981_v41, %v5203_v40  ;;  %5485 = vrot.lane.b32.xlu0 %v6825_v2, %s6119_s19  ;;  %v742_v2 = vld [vmem:[#allocation2 + $0x19a] sm:$0xff]  ;;  %s6124_s19 = smov 64  }
 0x119   : > { %v2011_v55 = vsel %vm1998_vm9, %v1978_v45, %v5197_v24  ;;  %v2012_v56 = vsel %vm1998_vm9, %v1979_v46, %v5198_v42  ;;  %v5211_v57 = vpop.permute.xlu1 %5210  ;;  %v2038_v22 = vpack.c.bf16 %v2014_v31, %v2013_v48  ;;  %v5519_v21 = vpack.i.bf16 %v743_v61, %v742_v2 }
 0x11a   : > { %v5206_v59 = vpop.permute.xlu0 %5205  ;;  %v2037_v36 = vpack.c.bf16 %v2012_v56, %v2011_v55  ;;  %v5213_v11 = vunpack.i.h.bf16 %v5211_v57  ;;  %v5212_v12 = vunpack.i.l.bf16 %v5211_v57 }
 0x11b   : > { %5500 = vrot.lane.b32.xlu1 %v5499_v52, %s6120_s22  ;;  %v2441_v52 = vld [vmem:[#allocation3 + $0x9] sm:$0xff]  ;;  %v5208_v17 = vunpack.i.h.bf16 %v5206_v59  ;;  %v5207_v38 = vunpack.i.l.bf16 %v5206_v59 }
 0x11c   : > { %5495 = vrot.lane.b32.xlu0 %v6849_v1, %s6120_s22  ;;  %4778 = vmatprep.mubr.msk.bf16.mxu0 %vm2074_vm10, %v2037_v36  ;;  %v5524_v1 = vpack.i.bf16 %v2441_v52, %v2440_v43  ;;  %v1787_v25 = vsel %vm334_vm0, %v474_v15, %v5213_v11 }
 0x11d   : > { %4779 = vmatmul.mubr.msk.bf16.gmra.mrb[12].mxu0 %vm2074_vm10, %v2038_v22  ;;  %v5221_v51 = vpop.permute.xlu1 %5220  ;;  %v1785_v29 = vsel %vm334_vm0, %v472_v49, %v5208_v17  ;;  %v1784_v32 = vsel %vm334_vm0, %v471_v16, %v5207_v38 }
 0x11e   : > { %v5216_v62 = vpop.permute.xlu0 %5215  ;;  %v5223_v10 = vunpack.i.h.bf16 %v5221_v51  ;;  %v5222_v18 = vunpack.i.l.bf16 %v5221_v51 }
 0x11f   : > { %5510 = vrot.lane.b32.xlu1 %v5509_v60, %s6121_s27  ;;  %v5217_v63 = vunpack.i.l.bf16 %v5216_v62 }
 0x120   : > { %5505 = vrot.lane.b32.xlu0 %v6851_v47, %s6121_s27  ;;  %v473_v47 = vld [vmem:[#allocation2 + $0xd8] sm:$0xff]  ;;  %v1820_v35 = vsel %vm1800_vm4, %v1787_v25, %v5223_v10 }
 0x121   : > { %v5231_v44 = vpop.permute.xlu1 %5230  ;;  %v1786_v26 = vsel %vm334_vm0, %v473_v47, %v5212_v12  ;;  %v1817_v37 = vsel %vm1800_vm4, %v1784_v32, %v5217_v63 }
 0x122   : > { %v5226_v3 = vpop.permute.xlu0 %5225  ;;  %v5233_v5 = vunpack.i.h.bf16 %v5231_v44  ;;  %v5232_v14 = vunpack.i.l.bf16 %v5231_v44  ;;  %v1819_v0 = vsel %vm1800_vm4, %v1786_v26, %v5222_v18 }
 0x123   : > { %5520 = vrot.lane.b32.xlu1 %v5519_v21, %s6122_s28  ;;  %v5228_v27 = vunpack.i.h.bf16 %v5226_v3  ;;  %v5227_v28 = vunpack.i.l.bf16 %v5226_v3 }
 0x124   : > { %5515 = vrot.lane.b32.xlu0 %v6855_v50, %s6122_s28  ;;  %v5218_v50 = vunpack.i.h.bf16 %v5216_v62  ;;  %v1852_v33 = vsel %vm1833_vm5, %v1819_v0, %v5232_v14  ;;  %v1853_v30 = vsel %vm1833_vm5, %v1820_v35, %v5233_v5 }
 0x125   : > { %v5241_v4 = vpop.permute.xlu1 %5240  ;;  %v1850_v42 = vsel %vm1833_vm5, %v1817_v37, %v5227_v28  ;;  %v478_v37 = vld [vmem:[#allocation2 + $0x110] sm:$0xff] }
 0x126   : > { %v5236_v9 = vpop.permute.xlu0 %5235  ;;  %v1818_v39 = vsel %vm1800_vm4, %v1785_v29, %v5218_v50  ;;  %v5243_v34 = vunpack.i.h.bf16 %v5241_v4  ;;  %v5242_v20 = vunpack.i.l.bf16 %v5241_v4 }
 0x127   : > { %v5238_v7 = vunpack.i.h.bf16 %v5236_v9  ;;  %v5237_v41 = vunpack.i.l.bf16 %v5236_v9  ;;  %v1851_v24 = vsel %vm1833_vm5, %v1818_v39, %v5228_v27 }
 0x128   : > { %5525 = vrot.lane.b32.xlu0 %v5524_v1, %s6118_s18  ;;  %v1885_v56 = vsel %vm1866_vm2, %v1852_v33, %v5242_v20  ;;  %v1886_v57 = vsel %vm1866_vm2, %v1853_v30, %v5243_v34  ;;  %v475_v30 = vld [vmem:[#allocation2 + $0xf0] sm:$0xff] }
 0x129   : > { %v5251_v19 = vpop.permute.xlu1 %5250  ;;  %v1883_v60 = vsel %vm1866_vm2, %v1850_v42, %v5237_v41  ;;  %v1884_v2 = vsel %vm1866_vm2, %v1851_v24, %v5238_v7  ;;  %v476_v7 = vld [vmem:[#allocation2 + $0xf8] sm:$0xff] }
 0x12a   : > { %v5246_v23 = vpop.permute.xlu0 %5245  ;;  %v5253_v45 = vunpack.i.h.bf16 %v5251_v19  ;;  %v5252_v46 = vunpack.i.l.bf16 %v5251_v19 }
 0x12b   : > { %v5248_v48 = vunpack.i.h.bf16 %v5246_v23  ;;  %v5247_v31 = vunpack.i.l.bf16 %v5246_v23 }
 0x12c   : > { %5530 = vrot.lane.b32.xlu0 %v5529_v13, %s6122_s28  ;;  %v1918_v62 = vsel %vm1899_vm6, %v1885_v56, %v5252_v46  ;;  %v1919_v21 = vsel %vm1899_vm6, %v1886_v57, %v5253_v45 }
 0x12d   : > { %v5261_v58 = vpop.permute.xlu1 %5260  ;;  %v1916_v52 = vsel %vm1899_vm6, %v1883_v60, %v5247_v31  ;;  %v1917_v3 = vsel %vm1899_vm6, %v1884_v2, %v5248_v48 }
 0x12e   : > { %v5256_v40 = vpop.permute.xlu0 %5255  ;;  %v5263_v53 = vunpack.i.h.bf16 %v5261_v58  ;;  %v5262_v54 = vunpack.i.l.bf16 %v5261_v58  ;;  %v477_v58 = vld [vmem:[#allocation2 + $0x108] sm:$0xff] }
 0x12f   : > { %v5258_v22 = vunpack.i.h.bf16 %v5256_v40  ;;  %v5257_v59 = vunpack.i.l.bf16 %v5256_v40 }
 0x130   : > { %v1951_v1 = vsel %vm1932_vm7, %v1918_v62, %v5262_v54  ;;  %v1952_v4 = vsel %vm1932_vm7, %v1919_v21, %v5263_v53 }
 0x131   : > { %v5271_v55 = vpop.permute.xlu1 %5270  ;;  %v1949_v8 = vsel %vm1932_vm7, %v1916_v52, %v5257_v59  ;;  %v1950_v9 = vsel %vm1932_vm7, %v1917_v3, %v5258_v22 }
 0x132   : > { %v5266_v36 = vpop.permute.xlu0 %5265  ;;  %v5273_v61 = vunpack.i.h.bf16 %v5271_v55  ;;  %v5272_v51 = vunpack.i.l.bf16 %v5271_v55 }
 0x133   : > { %v5268_v44 = vunpack.i.h.bf16 %v5266_v36  ;;  %v5267_v43 = vunpack.i.l.bf16 %v5266_v36 }
 0x134   : > { %v1984_v47 = vsel %vm1965_vm8, %v1951_v1, %v5272_v51  ;;  %v1985_v15 = vsel %vm1965_vm8, %v1952_v4, %v5273_v61 }
 0x135   : > { %v5281_v6 = vpop.permute.xlu1 %5280  ;;  %v1982_v10 = vsel %vm1965_vm8, %v1949_v8, %v5267_v43  ;;  %v1983_v18 = vsel %vm1965_vm8, %v1950_v9, %v5268_v44 }
 0x136   : > { %v5283_v11 = vunpack.i.h.bf16 %v5281_v6  ;;  %v5282_v12 = vunpack.i.l.bf16 %v5281_v6  ;;  %v5276_v13 = vpop.permute.xlu0 %5275 }
 0x137   : > { %v5278_v17 = vunpack.i.h.bf16 %v5276_v13  ;;  %v5277_v38 = vunpack.i.l.bf16 %v5276_v13 }
 0x138   : > { %v2017_v19 = vsel %vm1998_vm9, %v1984_v47, %v5282_v12  ;;  %v2018_v16 = vsel %vm1998_vm9, %v1985_v15, %v5283_v11 }
 0x139   : > { %v2015_v49 = vsel %vm1998_vm9, %v1982_v10, %v5277_v38  ;;  %v2016_v50 = vsel %vm1998_vm9, %v1983_v18, %v5278_v17  ;;  %v5291_v63 = vpop.permute.xlu1 %5290  ;;  %v2040_v23 = vpack.c.bf16 %v2018_v16, %v2017_v19 }
 0x13a   : > { %v5286_v5 = vpop.permute.xlu0 %5285  ;;  %v2039_v14 = vpack.c.bf16 %v2016_v50, %v2015_v49  ;;  %v5293_v0 = vunpack.i.h.bf16 %v5291_v63  ;;  %v5292_v35 = vunpack.i.l.bf16 %v5291_v63 }
 0x13b   : > { %v5288_v39 = vunpack.i.h.bf16 %v5286_v5  ;;  %v5287_v34 = vunpack.i.l.bf16 %v5286_v5 }
 0x13c   : > { %4782 = vmatprep.mubr.msk.bf16.mxu0 %vm2074_vm10, %v2039_v14  ;;  %v1791_v48 = vsel %vm334_vm0, %v478_v37, %v5293_v0  ;;  %v1790_v31 = vsel %vm334_vm0, %v477_v58, %v5292_v35 }
 0x13d   : > { %4783 = vmatmul.mubr.msk.bf16.gmra.mrb[16].mxu0 %vm2074_vm10, %v2040_v23  ;;  %v5301_v25 = vpop.permute.xlu1 %5300  ;;  %v1789_v55 = vsel %vm334_vm0, %v476_v7, %v5288_v39  ;;  %v1788_v56 = vsel %vm334_vm0, %v475_v30, %v5287_v34 }
 0x13e   : > { %v5296_v26 = vpop.permute.xlu0 %5295  ;;  %v5303_v20 = vunpack.i.h.bf16 %v5301_v25  ;;  %v5302_v40 = vunpack.i.l.bf16 %v5301_v25 }
 0x13f   : > { %v5298_v41 = vunpack.i.h.bf16 %v5296_v26  ;;  %v5297_v42 = vunpack.i.l.bf16 %v5296_v26 }
 0x140   : > { %v1823_v57 = vsel %vm1800_vm4, %v1790_v31, %v5302_v40  ;;  %v1824_v22 = vsel %vm1800_vm4, %v1791_v48, %v5303_v20 }
 0x141   : > { %v5311_v27 = vpop.permute.xlu1 %5310  ;;  %v1821_v36 = vsel %vm1800_vm4, %v1788_v56, %v5297_v42  ;;  %v1822_v60 = vsel %vm1800_vm4, %v1789_v55, %v5298_v41 }
 0x142   : > { %v5306_v28 = vpop.permute.xlu0 %5305  ;;  %v5313_v45 = vunpack.i.h.bf16 %v5311_v27  ;;  %v5312_v46 = vunpack.i.l.bf16 %v5311_v27 }
 0x143   : > { %v5308_v53 = vunpack.i.h.bf16 %v5306_v28  ;;  %v5307_v54 = vunpack.i.l.bf16 %v5306_v28 }
 0x144   : > { %v1856_v62 = vsel %vm1833_vm5, %v1823_v57, %v5312_v46  ;;  %v1857_v21 = vsel %vm1833_vm5, %v1824_v22, %v5313_v45 }
 0x145   : > { %v5321_v29 = vpop.permute.xlu1 %5320  ;;  %v1854_v52 = vsel %vm1833_vm5, %v1821_v36, %v5307_v54  ;;  %v1855_v3 = vsel %vm1833_vm5, %v1822_v60, %v5308_v53 }
 0x146   : > { %v5316_v32 = vpop.permute.xlu0 %5315  ;;  %v5323_v2 = vunpack.i.h.bf16 %v5321_v29  ;;  %v5322_v61 = vunpack.i.l.bf16 %v5321_v29 }
 0x147   : > { %v5318_v44 = vunpack.i.h.bf16 %v5316_v32  ;;  %v5317_v43 = vunpack.i.l.bf16 %v5316_v32 }
 0x148   : > { %v1889_v13 = vsel %vm1866_vm2, %v1856_v62, %v5322_v61  ;;  %v1890_v47 = vsel %vm1866_vm2, %v1857_v21, %v5323_v2  ;;  %v480_v62 = vld [vmem:[#allocation2 + $0x128] sm:$0xff] }
 0x149   : > { %v5331_v33 = vpop.permute.xlu1 %5330  ;;  %v1887_v10 = vsel %vm1866_vm2, %v1854_v52, %v5317_v43  ;;  %v1888_v18 = vsel %vm1866_vm2, %v1855_v3, %v5318_v44 }
 0x14a   : > { %v5326_v24 = vpop.permute.xlu0 %5325  ;;  %v5333_v1 = vunpack.i.h.bf16 %v5331_v33  ;;  %v5332_v4 = vunpack.i.l.bf16 %v5331_v33 }
 0x14b   : > { %v5328_v6 = vunpack.i.h.bf16 %v5326_v24  ;;  %v5327_v8 = vunpack.i.l.bf16 %v5326_v24 }
 0x14c   : > { %v1922_v49 = vsel %vm1899_vm6, %v1889_v13, %v5332_v4  ;;  %v1923_v50 = vsel %vm1899_vm6, %v1890_v47, %v5333_v1  ;;  %v6099_v1 = vld [vmem:[#allocation2 + $0x140] sm:$0xff] }
 0x14d   : > { %v5341_v59 = vpop.permute.xlu1 %5340  ;;  %v1920_v5 = vsel %vm1899_vm6, %v1887_v10, %v5327_v8  ;;  %v1921_v14 = vsel %vm1899_vm6, %v1888_v18, %v5328_v6  ;;  %v6100_v6 = vld [vmem:[#allocation2 + $0x138] sm:$0xff] }
 0x14e   : > { %v5336_v51 = vpop.permute.xlu0 %5335  ;;  %v5343_v9 = vunpack.i.h.bf16 %v5341_v59  ;;  %v5342_v11 = vunpack.i.l.bf16 %v5341_v59 }
 0x14f   : > { %v5338_v15 = vunpack.i.h.bf16 %v5336_v51  ;;  %v5337_v17 = vunpack.i.l.bf16 %v5336_v51  ;;  %v479_v51 = vld [vmem:[#allocation2 + $0x120] sm:$0xff] }
 0x150   : > { %v1955_v25 = vsel %vm1932_vm7, %v1922_v49, %v5342_v11  ;;  %v1956_v26 = vsel %vm1932_vm7, %v1923_v50, %v5343_v9 }
 0x151   : > { %v5351_v12 = vpop.permute.xlu1 %5350  ;;  %v1953_v28 = vsel %vm1932_vm7, %v1920_v5, %v5337_v17  ;;  %v1954_v29 = vsel %vm1932_vm7, %v1921_v14, %v5338_v15 }
 0x152   : > { %v5346_v38 = vpop.permute.xlu0 %5345  ;;  %v5353_v19 = vunpack.i.h.bf16 %v5351_v12  ;;  %v5352_v16 = vunpack.i.l.bf16 %v5351_v12 }
 0x153   : > { %v5348_v63 = vunpack.i.h.bf16 %v5346_v38  ;;  %v5347_v23 = vunpack.i.l.bf16 %v5346_v38 }
 0x154   : > { %v1988_v58 = vsel %vm1965_vm8, %v1955_v25, %v5352_v16  ;;  %v1989_v37 = vsel %vm1965_vm8, %v1956_v26, %v5353_v19 }
 0x155   : > { %v5361_v27 = vpop.permute.xlu1 %5360  ;;  %v1986_v20 = vsel %vm1965_vm8, %v1953_v28, %v5347_v23  ;;  %v1987_v40 = vsel %vm1965_vm8, %v1954_v29, %v5348_v63 }
 0x156   : > { %v5363_v32 = vunpack.i.h.bf16 %v5361_v27  ;;  %v5362_v0 = vunpack.i.l.bf16 %v5361_v27  ;;  %v5356_v35 = vpop.permute.xlu0 %5355 }
 0x157   : > { %v5358_v39 = vunpack.i.h.bf16 %v5356_v35  ;;  %v5357_v34 = vunpack.i.l.bf16 %v5356_v35 }
 0x158   : > { %v2021_v33 = vsel %vm1998_vm9, %v1988_v58, %v5362_v0  ;;  %v2022_v30 = vsel %vm1998_vm9, %v1989_v37, %v5363_v32 }
 0x159   : > { %v2019_v7 = vsel %vm1998_vm9, %v1986_v20, %v5357_v34  ;;  %v2020_v41 = vsel %vm1998_vm9, %v1987_v40, %v5358_v39  ;;  %v5371_v42 = vpop.permute.xlu1 %5370  ;;  %v2042_v24 = vpack.c.bf16 %v2022_v30, %v2021_v33 }
 0x15a   : > { %v5366_v45 = vpop.permute.xlu0 %5365  ;;  %v2041_v46 = vpack.c.bf16 %v2020_v41, %v2019_v7  ;;  %v5373_v57 = vunpack.i.h.bf16 %v5371_v42  ;;  %v5372_v22 = vunpack.i.l.bf16 %v5371_v42 }
 0x15b   : > { %v5368_v59 = vunpack.i.h.bf16 %v5366_v45  ;;  %v5367_v36 = vunpack.i.l.bf16 %v5366_v45 }
 0x15c   : > { %4786 = vmatprep.mubr.msk.bf16.mxu0 %vm2074_vm10, %v2041_v46  ;;  %v1795_v4 = vsel %vm334_vm0, %v6099_v1, %v5373_v57  ;;  %v1794_v8 = vsel %vm334_vm0, %v6100_v6, %v5372_v22 }
 0x15d   : > { %4787 = vmatmul.mubr.msk.bf16.gmra.mrb[20].mxu0 %vm2074_vm10, %v2042_v24  ;;  %v5381_v48 = vpop.permute.xlu1 %5380  ;;  %v1793_v12 = vsel %vm334_vm0, %v480_v62, %v5368_v59  ;;  %v1792_v13 = vsel %vm334_vm0, %v479_v51, %v5367_v36 }
 0x15e   : > { %v5376_v31 = vpop.permute.xlu0 %5375  ;;  %v5383_v60 = vunpack.i.h.bf16 %v5381_v48  ;;  %v5382_v2 = vunpack.i.l.bf16 %v5381_v48 }
 0x15f   : > { %v5378_v21 = vunpack.i.h.bf16 %v5376_v31  ;;  %v5377_v44 = vunpack.i.l.bf16 %v5376_v31 }
 0x160   : > { %v1827_v47 = vsel %vm1800_vm4, %v1794_v8, %v5382_v2  ;;  %v1828_v15 = vsel %vm1800_vm4, %v1795_v4, %v5383_v60 }
 0x161   : > { %v5391_v53 = vpop.permute.xlu1 %5390  ;;  %v1825_v38 = vsel %vm1800_vm4, %v1792_v13, %v5377_v44  ;;  %v1826_v10 = vsel %vm1800_vm4, %v1793_v12, %v5378_v21 }
 0x162   : > { %v5386_v54 = vpop.permute.xlu0 %5385  ;;  %v5393_v52 = vunpack.i.h.bf16 %v5391_v53  ;;  %v5392_v3 = vunpack.i.l.bf16 %v5391_v53 }
 0x163   : > { %v5388_v9 = vunpack.i.h.bf16 %v5386_v54  ;;  %v5387_v11 = vunpack.i.l.bf16 %v5386_v54 }
 0x164   : > { %v1860_v49 = vsel %vm1833_vm5, %v1827_v47, %v5392_v3  ;;  %v1861_v50 = vsel %vm1833_vm5, %v1828_v15, %v5393_v52 }
 0x165   : > { %v5401_v55 = vpop.permute.xlu1 %5400  ;;  %v1858_v5 = vsel %vm1833_vm5, %v1825_v38, %v5387_v11  ;;  %v1859_v14 = vsel %vm1833_vm5, %v1826_v10, %v5388_v9 }
 0x166   : > { %v5396_v56 = vpop.permute.xlu0 %5395  ;;  %v5403_v18 = vunpack.i.h.bf16 %v5401_v55  ;;  %v5402_v19 = vunpack.i.l.bf16 %v5401_v55 }
 0x167   : > { %v5398_v63 = vunpack.i.h.bf16 %v5396_v56  ;;  %v5397_v23 = vunpack.i.l.bf16 %v5396_v56 }
 0x168   : > { %v1893_v35 = vsel %vm1866_vm2, %v1860_v49, %v5402_v19  ;;  %v1894_v58 = vsel %vm1866_vm2, %v1861_v50, %v5403_v18  ;;  %v6101_v49 = vld [vmem:[#allocation2 + $0x170] sm:$0xff] }
 0x169   : > { %v5411_v61 = vpop.permute.xlu1 %5410  ;;  %v1891_v20 = vsel %vm1866_vm2, %v1858_v5, %v5397_v23  ;;  %v1892_v40 = vsel %vm1866_vm2, %v1859_v14, %v5398_v63  ;;  %v6102_v23 = vld [vmem:[#allocation2 + $0x168] sm:$0xff]  ;;  %v6103_v14 = vld [vmem:[#allocation2 + $0x158] sm:$0xff] }
 0x16a   : > { %v5406_v43 = vpop.permute.xlu0 %5405  ;;  %v5413_v25 = vunpack.i.h.bf16 %v5411_v61  ;;  %v5412_v26 = vunpack.i.l.bf16 %v5411_v61 }
 0x16b   : > { %v5408_v27 = vunpack.i.h.bf16 %v5406_v43  ;;  %v5407_v28 = vunpack.i.l.bf16 %v5406_v43 }
 0x16c   : > { %v1926_v7 = vsel %vm1899_vm6, %v1893_v35, %v5412_v26  ;;  %v1927_v41 = vsel %vm1899_vm6, %v1894_v58, %v5413_v25 }
 0x16d   : > { %v5421_v17 = vpop.permute.xlu1 %5420  ;;  %v1924_v45 = vsel %vm1899_vm6, %v1891_v20, %v5407_v28  ;;  %v1925_v46 = vsel %vm1899_vm6, %v1892_v40, %v5408_v27 }
 0x16e   : > { %v5416_v16 = vpop.permute.xlu0 %5415  ;;  %v5423_v29 = vunpack.i.h.bf16 %v5421_v17  ;;  %v5422_v32 = vunpack.i.l.bf16 %v5421_v17 }
 0x16f   : > { %v5418_v37 = vunpack.i.h.bf16 %v5416_v16  ;;  %v5417_v39 = vunpack.i.l.bf16 %v5416_v16 }
 0x170   : > { %v1959_v48 = vsel %vm1932_vm7, %v1926_v7, %v5422_v32  ;;  %v1960_v31 = vsel %vm1932_vm7, %v1927_v41, %v5423_v29  ;;  %v6104_v29 = vld [vmem:[#allocation2 + $0x150] sm:$0xff] }
 0x171   : > { %v5431_v0 = vpop.permute.xlu1 %5430  ;;  %v1957_v54 = vsel %vm1932_vm7, %v1924_v45, %v5417_v39  ;;  %v1958_v55 = vsel %vm1932_vm7, %v1925_v46, %v5418_v37 }
 0x172   : > { %v5426_v34 = vpop.permute.xlu0 %5425  ;;  %v5433_v33 = vunpack.i.h.bf16 %v5431_v0  ;;  %v5432_v30 = vunpack.i.l.bf16 %v5431_v0 }
 0x173   : > { %v5428_v42 = vunpack.i.h.bf16 %v5426_v34  ;;  %v5427_v24 = vunpack.i.l.bf16 %v5426_v34 }
 0x174   : > { %v1992_v59 = vsel %vm1965_vm8, %v1959_v48, %v5432_v30  ;;  %v1993_v36 = vsel %vm1965_vm8, %v1960_v31, %v5433_v33 }
 0x175   : > { %v5441_v53 = vpop.permute.xlu1 %5440  ;;  %v1990_v61 = vsel %vm1965_vm8, %v1957_v54, %v5427_v24  ;;  %v1991_v51 = vsel %vm1965_vm8, %v1958_v55, %v5428_v42 }
 0x176   : > { %v5443_v56 = vunpack.i.h.bf16 %v5441_v53  ;;  %v5442_v57 = vunpack.i.l.bf16 %v5441_v53  ;;  %v5436_v22 = vpop.permute.xlu0 %5435 }
 0x177   : > { %v5438_v60 = vunpack.i.h.bf16 %v5436_v22  ;;  %v5437_v2 = vunpack.i.l.bf16 %v5436_v22 }
 0x178   : > { %v2025_v62 = vsel %vm1998_vm9, %v1992_v59, %v5442_v57  ;;  %v2026_v21 = vsel %vm1998_vm9, %v1993_v36, %v5443_v56 }
 0x179   : > { %v2023_v44 = vsel %vm1998_vm9, %v1990_v61, %v5437_v2  ;;  %v2024_v43 = vsel %vm1998_vm9, %v1991_v51, %v5438_v60  ;;  %v5451_v52 = vpop.permute.xlu1 %5450  ;;  %v2044_v3 = vpack.c.bf16 %v2026_v21, %v2025_v62  ;;  %v7087_v62 = vld [vmem:[%s8055_s2] ss:$0 sm:$0xff] }
 0x17a   : > { %v5446_v1 = vpop.permute.xlu0 %5445  ;;  %v2043_v4 = vpack.c.bf16 %v2024_v43, %v2023_v44  ;;  %v5453_v12 = vunpack.i.h.bf16 %v5451_v52  ;;  %v5452_v47 = vunpack.i.l.bf16 %v5451_v52 }
 0x17b   : > { %v5448_v15 = vunpack.i.h.bf16 %v5446_v1  ;;  %v5447_v38 = vunpack.i.l.bf16 %v5446_v1 }
 0x17c   : > { %4790 = vmatprep.mubr.msk.bf16.mxu0 %vm2074_vm10, %v2043_v4  ;;  %v1799_v50 = vsel %vm334_vm0, %v6101_v49, %v5453_v12  ;;  %v1798_v5 = vsel %vm334_vm0, %v6102_v23, %v5452_v47 }
 0x17d   : > { %4791 = vmatmul.mubr.msk.bf16.gmra.mrb[24].mxu0 %vm2074_vm10, %v2044_v3  ;;  %v5461_v6 = vpop.permute.xlu1 %5460  ;;  %v1797_v25 = vsel %vm334_vm0, %v6103_v14, %v5448_v15  ;;  %v1796_v32 = vsel %vm334_vm0, %v6104_v29, %v5447_v38  ;;  %vm3789_vm0 = vcmask 916480  }
 0x17e   : > { %v5456_v8 = vpop.permute.xlu0 %5455  ;;  %v5463_v10 = vunpack.i.h.bf16 %v5461_v6  ;;  %v5462_v18 = vunpack.i.l.bf16 %v5461_v6 }
 0x17f   : > { %v5458_v19 = vunpack.i.h.bf16 %v5456_v8  ;;  %v5457_v16 = vunpack.i.l.bf16 %v5456_v8 }
 0x180   : > { %v1831_v0 = vsel %vm1800_vm4, %v1798_v5, %v5462_v18  ;;  %v1832_v35 = vsel %vm1800_vm4, %v1799_v50, %v5463_v10 }
 0x181   : > { %v5471_v9 = vpop.permute.xlu1 %5470  ;;  %v1829_v37 = vsel %vm1800_vm4, %v1796_v32, %v5457_v16  ;;  %v1830_v39 = vsel %vm1800_vm4, %v1797_v25, %v5458_v19 }
 0x182   : > { %v5466_v11 = vpop.permute.xlu0 %5465  ;;  %v5473_v26 = vunpack.i.h.bf16 %v5471_v9  ;;  %v5472_v27 = vunpack.i.l.bf16 %v5471_v9 }
 0x183   : > { %v5467_v58 = vunpack.i.l.bf16 %v5466_v11  ;;  %v5468_v34 = vunpack.i.h.bf16 %v5466_v11 }
 0x184   : > { %v1864_v42 = vsel %vm1833_vm5, %v1831_v0, %v5472_v27  ;;  %v1865_v24 = vsel %vm1833_vm5, %v1832_v35, %v5473_v26 }
 0x185   : > { %v5481_v13 = vpop.permute.xlu1 %5480  ;;  %v1862_v31 = vsel %vm1833_vm5, %v1829_v37, %v5467_v58  ;;  %v1863_v56 = vsel %vm1833_vm5, %v1830_v39, %v5468_v34 }
 0x186   : > { %v5476_v17 = vpop.permute.xlu0 %5475  ;;  %v5482_v20 = vunpack.i.l.bf16 %v5481_v13  ;;  %v5483_v40 = vunpack.i.h.bf16 %v5481_v13 }
 0x187   : > { %v5478_v33 = vunpack.i.h.bf16 %v5476_v17  ;;  %v5477_v30 = vunpack.i.l.bf16 %v5476_v17 }
 0x188   : > { %v1897_v57 = vsel %vm1866_vm2, %v1864_v42, %v5482_v20  ;;  %v1898_v36 = vsel %vm1866_vm2, %v1865_v24, %v5483_v40  ;;  %v6123_v40 = vmov 0  }
 0x189   : > { %v5491_v63 = vpop.permute.xlu1 %5490  ;;  %v1895_v60 = vsel %vm1866_vm2, %v1862_v31, %v5477_v30  ;;  %v1896_v2 = vsel %vm1866_vm2, %v1863_v56, %v5478_v33  ;;  %3981 = vmatprep.subr.bf16.mxu0 %v6123_v40  ;;  %v6088_v33 = vld [vmem:[%s8056_s3] sm:$0xff]   ;;  %4834 = vmatprep.subr.bf16.mxu1 %v6123_v40  ;;  %v6089_v30 = vld [vmem:[%s8056_s3 + $0x8] sm:$0xff]  }
 0x18a   : > { %v5486_v28 = vpop.permute.xlu0 %5485  ;;  %v5492_v7 = vunpack.i.l.bf16 %v5491_v63  ;;  %v5493_v45 = vunpack.i.h.bf16 %v5491_v63  ;;  %6084 = vset.pattern.permute.xlu0 %v6123_v40  ;;  %4843 = vmatpush1.bf16.msra.mxu1 %v6088_v33 }
 0x18b   : > { %v5487_v46 = vunpack.i.l.bf16 %v5486_v28  ;;  %v5488_v53 = vunpack.i.h.bf16 %v5486_v28  ;;  %3982 = vmatpush1.bf16.msra.mxu0 %v6088_v33  ;;  %4835 = vmatprep.subr.bf16.mxu1 %v6123_v40 }
 0x18c   : > { %v1930_v61 = vsel %vm1899_vm6, %v1897_v57, %v5492_v7  ;;  %v1931_v21 = vsel %vm1899_vm6, %v1898_v36, %v5493_v45  ;;  %3983 = vmatprep.subr.bf16.mxu0 %v6123_v40  ;;  %v6092_v36 = vld [vmem:[%s8056_s3 + $0x20] sm:$0xff]  }
 0x18d   : > { %v5501_v41 = vpop.permute.xlu1 %5500  ;;  %v1928_v44 = vsel %vm1899_vm6, %v1895_v60, %v5487_v46  ;;  %v1929_v1 = vsel %vm1899_vm6, %v1896_v2, %v5488_v53  ;;  %v6093_v60 = vld [vmem:[%s8056_s3 + $0x28] sm:$0xff]  }
 0x18e   : > { %v5496_v48 = vpop.permute.xlu0 %5495  ;;  %v5503_v54 = vunpack.i.h.bf16 %v5501_v41  ;;  %v5502_v55 = vunpack.i.l.bf16 %v5501_v41  ;;  %4844 = vmatpush1.bf16.msra.mxu1 %v6089_v30 }
 0x18f   : > { %v5498_v22 = vunpack.i.h.bf16 %v5496_v48  ;;  %v5497_v59 = vunpack.i.l.bf16 %v5496_v48  ;;  %3984 = vmatpush1.bf16.msra.mxu0 %v6089_v30  ;;  %4836 = vmatprep.subr.bf16.mxu1 %v6123_v40 }
 0x190   : > { %v1963_v4 = vsel %vm1932_vm7, %v1930_v61, %v5502_v55  ;;  %v1964_v6 = vsel %vm1932_vm7, %v1931_v21, %v5503_v54  ;;  %3985 = vmatprep.subr.bf16.mxu0 %v6123_v40  ;;  %v6090_v54 = vld [vmem:[%s8056_s3 + $0x10] sm:$0xff]  }
 0x191   : > { %v5511_v51 = vpop.permute.xlu1 %5510  ;;  %v1961_v11 = vsel %vm1932_vm7, %v1928_v44, %v5497_v59  ;;  %v1962_v12 = vsel %vm1932_vm7, %v1929_v1, %v5498_v22  ;;  %v6091_v22 = vld [vmem:[%s8056_s3 + $0x18] sm:$0xff]   ;;  %v6094_v1 = vld [vmem:[%s8056_s3 + $0x30] sm:$0xff]  }
 0x192   : > { %v5513_v43 = vunpack.i.h.bf16 %v5511_v51  ;;  %v5512_v52 = vunpack.i.l.bf16 %v5511_v51  ;;  %v5506_v3 = vpop.permute.xlu0 %5505  ;;  %4845 = vmatpush1.bf16.msra.mxu1 %v6090_v54 }
 0x193   : > { %v5507_v8 = vunpack.i.l.bf16 %v5506_v3  ;;  %v4768_v9 = vpop.f32.mrb[0].mxu0  ;;  %v5508_v13 = vunpack.i.h.bf16 %v5506_v3  ;;  %3986 = vmatpush1.bf16.msra.mxu0 %v6090_v54  ;;  %4837 = vmatprep.subr.bf16.mxu1 %v6123_v40 }
 0x194   : > { %v2170_v47 = vadd.f32 %v4768_v9, %v7087_v62  ;;  %v2161_v15 = vpop.f32.mrb[1].mxu0  ;;  %v1996_v17 = vsel %vm1965_vm8, %v1963_v4, %v5512_v52  ;;  %v1997_v38 = vsel %vm1965_vm8, %v1964_v6, %v5513_v43  ;;  %3987 = vmatprep.subr.bf16.mxu0 %v6123_v40 }
 0x195   : > { %v1994_v10 = vsel %vm1965_vm8, %v1961_v11, %v5507_v8  ;;  %v2162_v18 = vadd.f32 %v7087_v62, %v2161_v15  ;;  %v4769_v19 = vpop.f32.mrb[2].mxu0  ;;  %v5521_v16 = vpop.permute.xlu1 %5520  ;;  %v1995_v29 = vsel %vm1965_vm8, %v1962_v12, %v5508_v13 }
 0x196   : > { %v2290_v49 = vmax.f32 %v2170_v47, 0.0  ;;  %v2173_v50 = vadd.f32 %v4769_v19, %v7087_v62  ;;  %v5523_v63 = vunpack.i.h.bf16 %v5521_v16  ;;  %v5522_v23 = vunpack.i.l.bf16 %v5521_v16  ;;  %v5516_v5 = vpop.permute.xlu0 %5515  ;;  %v2164_v14 = vpop.f32.mrb[3].mxu0  ;;  %4846 = vmatpush1.bf16.msra.mxu1 %v6091_v22  ;;  %v6095_v47 = vld [vmem:[%s8056_s3 + $0x38] sm:$0xff]  }
 0x197   : > { %v2288_v25 = vmax.f32 %v2162_v18, 0.0  ;;  %v5518_v26 = vunpack.i.h.bf16 %v5516_v5  ;;  %v5517_v27 = vunpack.i.l.bf16 %v5516_v5  ;;  %v2165_v28 = vadd.f32 %v7087_v62, %v2164_v14  ;;  %3988 = vmatpush1.bf16.msra.mxu0 %v6091_v22  ;;  %4838 = vmatprep.subr.bf16.mxu1 %v6123_v40 }
 0x198   : > { %2378 = vst.msk [vmem:[#allocation3 + $0x31] sm:$0xff] %vm1866_vm2, %v2290_v49  ;;  %v2291_v32 = vmax.f32 %v2173_v50, 0.0  ;;  %v2029_v0 = vsel %vm1998_vm9, %v1996_v17, %v5522_v23  ;;  %v2030_v35 = vsel %vm1998_vm9, %v1997_v38, %v5523_v63  ;;  %3989 = vmatprep.subr.bf16.mxu0 %v6123_v40 }
 0x199   : > { %2376 = vst.msk [vmem:[#allocation3 + $0x19] sm:$0xff] %vm1866_vm2, %v2288_v25  ;;  %v2027_v58 = vsel %vm1998_vm9, %v1994_v10, %v5517_v27  ;;  %v2028_v37 = vsel %vm1998_vm9, %v1995_v29, %v5518_v26  ;;  %v2289_v39 = vmax.f32 %v2165_v28, 0.0  ;;  %v2046_v34 = vpack.c.bf16 %v2030_v35, %v2029_v0  ;;  %v6096_v10 = vld [vmem:[%s8056_s3 + $0x40] sm:$0xff]  }
 0x19a   : > { %2379 = vst.msk [vmem:[#allocation3 + $0x39] sm:$0xff] %vm1866_vm2, %v2291_v32  ;;  %v2045_v20 = vpack.c.bf16 %v2028_v37, %v2027_v58  ;;  %4847 = vmatpush1.bf16.msra.mxu1 %v6092_v36 }
 0x19b   : > { %2377 = vst.msk [vmem:[#allocation3 + $0x21] sm:$0xff] %vm1866_vm2, %v2289_v39  ;;  %3990 = vmatpush1.bf16.msra.mxu0 %v6092_v36  ;;  %4839 = vmatprep.subr.bf16.mxu1 %v6123_v40 }
 0x19c   : > { %4794 = vmatprep.mubr.msk.bf16.mxu0 %vm2074_vm10, %v2045_v20  ;;  %3991 = vmatprep.subr.bf16.mxu0 %v6123_v40 }
 0x19d   : > { %4795 = vmatmul.mubr.msk.bf16.gmra.mrb[28].mxu0 %vm2074_vm10, %v2046_v34 }
 0x19e   : > { %4848 = vmatpush1.bf16.msra.mxu1 %v6093_v60 }
 0x19f   : > { %v2538_v7 = vld [vmem:[#allocation3 + $0x31] sm:$0xff]  ;;  %3992 = vmatpush1.bf16.msra.mxu0 %v6093_v60  ;;  %4840 = vmatprep.subr.bf16.mxu1 %v6123_v40 }
 0x1a0   : > { %v7125_v48 = vld [vmem:[#allocation3 + $0x30] sm:$0xff]  ;;  %3993 = vmatprep.subr.bf16.mxu0 %v6123_v40  ;;  %v2442_v12 = vld [vmem:[#allocation3 + $0x19] sm:$0xff] }
 0x1a1   : > { %v2665_v41 = vld [vmem:[#allocation3 + $0x32] sm:$0xff]  ;;  %v2666_v42 = vld [vmem:[#allocation3 + $0x3a] sm:$0xff] }
 0x1a2   : > { %v2539_v24 = vld [vmem:[#allocation3 + $0x39] sm:$0xff]  ;;  %v3823_v45 = vpack.c.bf16 %v2666_v42, %v2665_v41  ;;  %v5544_v55 = vpack.i.bf16 %v2666_v42, %v2665_v41  ;;  %v2475_v57 = vld [vmem:[#allocation3 + $0x22] sm:$0xff]  ;;  %4849 = vmatpush1.bf16.msra.mxu1 %v6094_v1 }
 0x1a3   : > { %v5539_v46 = vpack.i.bf16 %v2539_v24, %v2538_v7  ;;  %v7127_v31 = vld [vmem:[#allocation3 + $0x38] sm:$0xff]  ;;  %v2443_v8 = vld [vmem:[#allocation3 + $0x21] sm:$0xff]  ;;  %3994 = vmatpush1.bf16.msra.mxu0 %v6094_v1  ;;  %4841 = vmatprep.subr.bf16.mxu1 %v6123_v40 }
 0x1a4   : > { %v5534_v53 = vpack.i.bf16 %v7127_v31, %v7125_v48  ;;  %4665 = vmatprep.mubr.msk.bf16.mxu0 %vm1866_vm2, %v3823_v45  ;;  %v2474_v56 = vld [vmem:[#allocation3 + $0x1a] sm:$0xff]  ;;  %v5569_v13 = vpack.i.bf16 %v2443_v8, %v2442_v12  ;;  %3995 = vmatprep.subr.bf16.mxu0 %v6123_v40 }
 0x1a5   : > { %5540 = vrot.lane.b32.xlu1 %v5539_v46, %s6124_s19  ;;  %v7146_v59 = vpack.i.bf16 %v2475_v57, %v2474_v56  ;;  %v7181_v15 = vld [vmem:[#allocation3 + $0x20] sm:$0xff]  ;;  %v7184_v17 = vld [vmem:[#allocation3 + $0x18] sm:$0xff] }
 0x1a6   : > { %5535 = vrot.lane.b32.xlu0 %v5534_v53, %s6125_s20  ;;  %4850 = vmatpush1.bf16.msra.mxu1 %v6095_v47  ;;  %v5579_v38 = vpack.i.bf16 %v7181_v15, %v7184_v17 }
 0x1a7   : > { %3996 = vmatpush1.bf16.msra.mxu0 %v6095_v47  ;;  %4842 = vmatprep.subr.bf16.mxu1 %v6123_v40 }
 0x1a8   : > { %3997 = vmatprep.subr.bf16.mxu0 %v6123_v40 }
 0x1a9   : > { %5550 = vrot.lane.b32.xlu1 %v5539_v46, %s6118_s18 }
 0x1aa   : > { %5545 = vrot.lane.b32.xlu0 %v5544_v55, %s6126_s23  ;;  %4851 = vmatpush1.bf16.msra.mxu1 %v6096_v10 }
 0x1ab   : > { %3998 = vmatpush1.bf16.msra.mxu0 %v6096_v10 }
 0x1ad   : > { %5575 = vrot.lane.b32.xlu1 %v7146_v59, %s6122_s28 }
 0x1ae   : > { %5555 = vrot.lane.b32.xlu0 %v5544_v55, %s6122_s28 }
 0x1b0   : > { %v4772_v2 = vpop.f32.mrb[4].mxu0 }
 0x1b1   : > { %v2186_v61 = vadd.f32 %v4772_v2, %v7087_v62  ;;  %v2177_v51 = vpop.f32.mrb[5].mxu0 }
 0x1b2   : > { %5560 = vrot.lane.b32.xlu0 %v5534_v53, %s6127_s29  ;;  %v2178_v21 = vadd.f32 %v7087_v62, %v2177_v51  ;;  %v4773_v44 = vpop.f32.mrb[6].mxu0 }
 0x1b3   : > { %v2294_v43 = vmax.f32 %v2186_v61, 0.0  ;;  %v2189_v52 = vadd.f32 %v4773_v44, %v7087_v62  ;;  %v2180_v3 = vpop.f32.mrb[7].mxu0 }
 0x1b4   : > { %v2292_v4 = vmax.f32 %v2178_v21, 0.0  ;;  %v2181_v6 = vadd.f32 %v7087_v62, %v2180_v3 }
 0x1b5   : > { %2382 = vst.msk [vmem:[#allocation3 + $0x61] sm:$0xff] %vm1866_vm2, %v2294_v43  ;;  %v2295_v9 = vmax.f32 %v2189_v52, 0.0 }
 0x1b6   : > { %5565 = vrot.lane.b32.xlu0 %v5539_v46, %s6128_s13  ;;  %2380 = vst.msk [vmem:[#allocation3 + $0x49] sm:$0xff] %vm1866_vm2, %v2292_v4  ;;  %v2293_v11 = vmax.f32 %v2181_v6, 0.0 }
 0x1b7   : > { %2383 = vst.msk [vmem:[#allocation3 + $0x69] sm:$0xff] %vm1866_vm2, %v2295_v9 }
 0x1b8   : > { %2381 = vst.msk [vmem:[#allocation3 + $0x51] sm:$0xff] %vm1866_vm2, %v2293_v11 }
 0x1ba   : > { %5570 = vrot.lane.b32.xlu0 %v5569_v13, %s6118_s18 }
 0x1bc   : > { %v2637_v18 = vld [vmem:[#allocation3 + $0x61] sm:$0xff] }
 0x1bd   : > { %v7208_v26 = vld [vmem:[#allocation3 + $0x60] sm:$0xff]  ;;  %v2603_v29 = vld [vmem:[#allocation3 + $0x48] sm:$0xff] }
 0x1be   : > { %5580 = vrot.lane.b32.xlu0 %v5579_v38, %s6125_s20  ;;  %v2638_v19 = vld [vmem:[#allocation3 + $0x69] sm:$0xff] }
 0x1bf   : > { %v7194_v16 = vld [vmem:[#allocation3 + $0x62] sm:$0xff]  ;;  %v5599_v49 = vpack.i.bf16 %v2638_v19, %v2637_v18  ;;  %v2667_v50 = vld [vmem:[#allocation3 + $0x4a] sm:$0xff]  ;;  %v2668_v63 = vld [vmem:[#allocation3 + $0x52] sm:$0xff] }
 0x1c0   : > { %v3825_v23 = vpack.c.bf16 %v2668_v63, %v2667_v50  ;;  %v7196_v5 = vld [vmem:[#allocation3 + $0x6a] sm:$0xff]  ;;  %v5649_v30 = vpack.i.bf16 %v2668_v63, %v2667_v50 }
 0x1c1   : > { %5600 = vrot.lane.b32.xlu1 %v5599_v49, %s6128_s13  ;;  %v3827_v14 = vpack.c.bf16 %v7196_v5, %v7194_v16  ;;  %v7203_v25 = vld [vmem:[#allocation3 + $0x68] sm:$0xff]  ;;  %v2604_v28 = vld [vmem:[#allocation3 + $0x50] sm:$0xff]  ;;  %v5614_v0 = vpack.i.bf16 %v7196_v5, %v7194_v16 }
 0x1c2   : > { %5585 = vrot.lane.b32.xlu0 %v5569_v13, %s6124_s19  ;;  %4666 = vmatprep.mubr.msk.bf16.mxu1 %vm1866_vm2, %v3825_v23  ;;  %v5594_v27 = vpack.i.bf16 %v7203_v25, %v7208_v26  ;;  %v5629_v32 = vpack.i.bf16 %v2604_v28, %v2603_v29  ;;  %v2636_v42 = vld [vmem:[#allocation3 + $0x51] sm:$0xff]  ;;  %v2635_v46 = vld [vmem:[#allocation3 + $0x49] sm:$0xff] }
 0x1c3   : > { %v5634_v53 = vpack.i.bf16 %v2636_v42, %v2635_v46 }
 0x1c5   : > { %5610 = vrot.lane.b32.xlu1 %v5599_v49, %s6124_s19 }
 0x1c6   : > { %5590 = vrot.lane.b32.xlu0 %v7146_v59, %s6126_s23 }
 0x1c9   : > { %5620 = vrot.lane.b32.xlu1 %v5599_v49, %s6118_s18 }
 0x1ca   : > { %5595 = vrot.lane.b32.xlu0 %v5594_v27, %s6127_s29 }
 0x1cd   : > { %5630 = vrot.lane.b32.xlu1 %v5629_v32, %s6127_s29 }
 0x1ce   : > { %5605 = vrot.lane.b32.xlu0 %v5594_v27, %s6125_s20 }
 0x1d0   : > { %v4776_v35 = vpop.f32.mrb[8].mxu0 }
 0x1d1   : > { %v2202_v58 = vadd.f32 %v4776_v35, %v7087_v62  ;;  %v2193_v37 = vpop.f32.mrb[9].mxu0  ;;  %5640 = vrot.lane.b32.xlu1 %v5629_v32, %s6125_s20 }
 0x1d2   : > { %5615 = vrot.lane.b32.xlu0 %v5614_v0, %s6126_s23  ;;  %v2194_v39 = vadd.f32 %v7087_v62, %v2193_v37  ;;  %v4777_v34 = vpop.f32.mrb[10].mxu0  ;;  %v7268_v37 = vpop.permute.xlu0 %5525 }
 0x1d3   : > { %v2298_v20 = vmax.f32 %v2202_v58, 0.0  ;;  %v2205_v40 = vadd.f32 %v4777_v34, %v7087_v62  ;;  %v2196_v33 = vpop.f32.mrb[11].mxu0 }
 0x1d4   : > { %v2296_v7 = vmax.f32 %v2194_v39, 0.0  ;;  %v2197_v41 = vadd.f32 %v7087_v62, %v2196_v33 }
 0x1d5   : > { %2386 = vst.msk [vmem:[#allocation3 + $0x91] sm:$0xff] %vm1866_vm2, %v2298_v20  ;;  %v2299_v24 = vmax.f32 %v2205_v40, 0.0  ;;  %5650 = vrot.lane.b32.xlu1 %v5649_v30, %s6126_s23 }
 0x1d6   : > { %5625 = vrot.lane.b32.xlu0 %v5614_v0, %s6122_s28  ;;  %2384 = vst.msk [vmem:[#allocation3 + $0x79] sm:$0xff] %vm1866_vm2, %v2296_v7  ;;  %v2297_v45 = vmax.f32 %v2197_v41, 0.0 }
 0x1d7   : > { %2387 = vst.msk [vmem:[#allocation3 + $0x99] sm:$0xff] %vm1866_vm2, %v2299_v24  ;;  %v7275_v24 = vpop.permute.xlu0 %5530 }
 0x1d8   : > { %2385 = vst.msk [vmem:[#allocation3 + $0x81] sm:$0xff] %vm1866_vm2, %v2297_v45 }
 0x1d9   : > { %5660 = vrot.lane.b32.xlu1 %v5649_v30, %s6122_s28 }
 0x1da   : > { %5635 = vrot.lane.b32.xlu0 %v5634_v53, %s6128_s13 }
 0x1dc   : > { %v2641_v54 = vld [vmem:[#allocation3 + $0x91] sm:$0xff] }
 0x1dd   : > { %v2609_v60 = vld [vmem:[#allocation3 + $0x90] sm:$0xff]  ;;  %v2639_v44 = vld [vmem:[#allocation3 + $0x79] sm:$0xff] }
 0x1de   : > { %5645 = vrot.lane.b32.xlu0 %v5634_v53, %s6124_s19  ;;  %v2642_v55 = vld [vmem:[#allocation3 + $0x99] sm:$0xff] }
 0x1df   : > { %v5669_v56 = vpack.i.bf16 %v2642_v55, %v2641_v54  ;;  %v2610_v57 = vld [vmem:[#allocation3 + $0x98] sm:$0xff]  ;;  %v7235_v59 = vld [vmem:[#allocation3 + $0x82] sm:$0xff] }
 0x1e0   : > { %v7233_v22 = vld [vmem:[#allocation3 + $0x7a] sm:$0xff]  ;;  %v5664_v2 = vpack.i.bf16 %v2610_v57, %v2609_v60  ;;  %v2578_v51 = vld [vmem:[#allocation3 + $0x92] sm:$0xff] }
 0x1e1   : > { %5670 = vrot.lane.b32.xlu1 %v5669_v56, %s6128_s13  ;;  %v3829_v36 = vpack.c.bf16 %v7235_v59, %v7233_v22  ;;  %v2640_v61 = vld [vmem:[#allocation3 + $0x81] sm:$0xff]  ;;  %v2607_v11 = vld [vmem:[#allocation3 + $0x78] sm:$0xff]  ;;  %v5719_v50 = vpack.i.bf16 %v7235_v59, %v7233_v22 }
 0x1e2   : > { %5655 = vrot.lane.b32.xlu0 %v5634_v53, %s6118_s18  ;;  %v2579_v21 = vld [vmem:[#allocation3 + $0x9a] sm:$0xff]  ;;  %v5704_v43 = vpack.i.bf16 %v2640_v61, %v2639_v44 }
 0x1e3   : > { %v5684_v52 = vpack.i.bf16 %v2579_v21, %v2578_v51  ;;  %v2608_v1 = vld [vmem:[#allocation3 + $0x80] sm:$0xff] }
 0x1e4   : > { %v5699_v38 = vpack.i.bf16 %v2608_v1, %v2607_v11 }
 0x1e5   : > { %5675 = vrot.lane.b32.xlu1 %v5664_v2, %s6125_s20 }
 0x1e6   : > { %5665 = vrot.lane.b32.xlu0 %v5664_v2, %s6127_s29 }
 0x1e9   : > { %5680 = vrot.lane.b32.xlu1 %v5669_v56, %s6124_s19 }
 0x1ea   : > { %5690 = vrot.lane.b32.xlu0 %v5669_v56, %s6118_s18 }
 0x1ed   : > { %5685 = vrot.lane.b32.xlu1 %v5684_v52, %s6126_s23 }
 0x1ee   : > { %5705 = vrot.lane.b32.xlu0 %v5704_v43, %s6128_s13 }
 0x1f0   : > { %v4780_v3 = vpop.f32.mrb[12].mxu0 }
 0x1f1   : > { %v2218_v4 = vadd.f32 %v4780_v3, %v7087_v62  ;;  %v2209_v6 = vpop.f32.mrb[13].mxu0  ;;  %5695 = vrot.lane.b32.xlu1 %v5684_v52, %s6122_s28 }
 0x1f2   : > { %5715 = vrot.lane.b32.xlu0 %v5704_v43, %s6124_s19  ;;  %v2210_v8 = vadd.f32 %v7087_v62, %v2209_v6  ;;  %v4781_v9 = vpop.f32.mrb[14].mxu0 }
 0x1f3   : > { %v2302_v12 = vmax.f32 %v2218_v4, 0.0  ;;  %v2221_v13 = vadd.f32 %v4781_v9, %v7087_v62  ;;  %v2212_v47 = vpop.f32.mrb[15].mxu0 }
 0x1f4   : > { %v2300_v10 = vmax.f32 %v2210_v8, 0.0  ;;  %v2213_v18 = vadd.f32 %v7087_v62, %v2212_v47 }
 0x1f5   : > { %2390 = vst.msk [vmem:[#allocation3 + $0xc1] sm:$0xff] %vm1866_vm2, %v2302_v12  ;;  %v2303_v19 = vmax.f32 %v2221_v13, 0.0  ;;  %5700 = vrot.lane.b32.xlu1 %v5699_v38, %s6127_s29 }
 0x1f6   : > { %2388 = vst.msk [vmem:[#allocation3 + $0xa9] sm:$0xff] %vm1866_vm2, %v2300_v10  ;;  %v2301_v49 = vmax.f32 %v2213_v18, 0.0 }
 0x1f7   : > { %2391 = vst.msk [vmem:[#allocation3 + $0xc9] sm:$0xff] %vm1866_vm2, %v2303_v19 }
 0x1f8   : > { %2389 = vst.msk [vmem:[#allocation3 + $0xb1] sm:$0xff] %vm1866_vm2, %v2301_v49  ;;  %v5527_v49 = vunpack.i.l.bf16 %v7268_v37 }
 0x1f9   : > { %5710 = vrot.lane.b32.xlu1 %v5699_v38, %s6125_s20 }
 0x1fc   : > { %v2645_v63 = vld [vmem:[#allocation3 + $0xc1] sm:$0xff] }
 0x1fd   : > { %5720 = vrot.lane.b32.xlu1 %v5719_v50, %s6126_s23  ;;  %v2613_v29 = vld [vmem:[#allocation3 + $0xc0] sm:$0xff]  ;;  %v2516_v35 = vld [vmem:[#allocation3 + $0xa8] sm:$0xff] }
 0x1fe   : > { %v2646_v23 = vld [vmem:[#allocation3 + $0xc9] sm:$0xff] }
 0x1ff   : > { %v5739_v27 = vpack.i.bf16 %v2646_v23, %v2645_v63  ;;  %v2614_v28 = vld [vmem:[#allocation3 + $0xc8] sm:$0xff]  ;;  %v2517_v0 = vld [vmem:[#allocation3 + $0xb0] sm:$0xff]  ;;  %v2408_v23 = vld [vmem:[#allocation3] sm:$0xff] }
 0x200   : > { %v5734_v32 = vpack.i.bf16 %v2614_v28, %v2613_v29  ;;  %v5779_v58 = vpack.i.bf16 %v2517_v0, %v2516_v35  ;;  %v2582_v39 = vld [vmem:[#allocation3 + $0xc2] sm:$0xff]  ;;  %v2583_v34 = vld [vmem:[#allocation3 + $0xca] sm:$0xff]  ;;  %v2581_v40 = vld [vmem:[#allocation3 + $0xb2] sm:$0xff]  ;;  %v5532_v29 = vunpack.i.l.bf16 %v7275_v24  ;;  %v3593_v35 = vsel %vm1866_vm2, %v2408_v23, %v5527_v49 }
 0x201   : > { %5725 = vrot.lane.b32.xlu1 %v5704_v43, %s6118_s18  ;;  %5740 = vrot.lane.b32.xlu0 %v5739_v27, %s6128_s13  ;;  %v2580_v20 = vld [vmem:[#allocation3 + $0xaa] sm:$0xff]  ;;  %v5754_v33 = vpack.i.bf16 %v2583_v34, %v2582_v39 }
 0x202   : > { %v5789_v30 = vpack.i.bf16 %v2581_v40, %v2580_v20  ;;  %v2644_v51 = vld [vmem:[#allocation3 + $0xb1] sm:$0xff]  ;;  %v2643_v21 = vld [vmem:[#allocation3 + $0xa9] sm:$0xff]  ;;  %v5533_v40 = vunpack.i.h.bf16 %v7275_v24 }
 0x203   : > { %v5774_v43 = vpack.i.bf16 %v2644_v51, %v2643_v21  ;;  %v2409_v28 = vld [vmem:[#allocation3 + $0x8] sm:$0xff] }
 0x205   : > { %5730 = vrot.lane.b32.xlu1 %v5719_v50, %s6122_s28  ;;  %5750 = vrot.lane.b32.xlu0 %v5739_v27, %s6124_s19 }
 0x209   : > { %5735 = vrot.lane.b32.xlu1 %v5734_v32, %s6127_s29  ;;  %5760 = vrot.lane.b32.xlu0 %v5739_v27, %s6118_s18  ;;  %v5528_v27 = vunpack.i.h.bf16 %v7268_v37 }
 0x20b   : > { %v3594_v37 = vsel %vm1866_vm2, %v2409_v28, %v5528_v27 }
 0x20c   : > { %v3626_v21 = vsel %vm1998_vm9, %v3594_v37, %v5533_v40 }
 0x20d   : > { %5745 = vrot.lane.b32.xlu1 %v5734_v32, %s6125_s20  ;;  %5780 = vrot.lane.b32.xlu0 %v5779_v58, %s6125_s20 }
 0x210   : > { %v4784_v7 = vpop.f32.mrb[16].mxu0 }
 0x211   : > { %v2234_v41 = vadd.f32 %v4784_v7, %v7087_v62  ;;  %v2225_v42 = vpop.f32.mrb[17].mxu0  ;;  %5755 = vrot.lane.b32.xlu1 %v5754_v33, %s6126_s23  ;;  %5790 = vrot.lane.b32.xlu0 %v5789_v30, %s6126_s23 }
 0x212   : > { %v2226_v45 = vadd.f32 %v7087_v62, %v2225_v42  ;;  %v4785_v46 = vpop.f32.mrb[18].mxu0  ;;  %v3625_v42 = vsel %vm1998_vm9, %v3593_v35, %v5532_v29 }
 0x213   : > { %v2306_v53 = vmax.f32 %v2234_v41, 0.0  ;;  %v2237_v54 = vadd.f32 %v4785_v46, %v7087_v62  ;;  %v2228_v55 = vpop.f32.mrb[19].mxu0 }
 0x214   : > { %v2304_v56 = vmax.f32 %v2226_v45, 0.0  ;;  %v2229_v57 = vadd.f32 %v7087_v62, %v2228_v55 }
 0x215   : > { %2394 = vst.msk [vmem:[#allocation3 + $0xf1] sm:$0xff] %vm1866_vm2, %v2306_v53  ;;  %v2307_v60 = vmax.f32 %v2237_v54, 0.0  ;;  %5765 = vrot.lane.b32.xlu1 %v5754_v33, %s6122_s28  ;;  %5800 = vrot.lane.b32.xlu0 %v5789_v30, %s6122_s28 }
 0x216   : > { %2392 = vst.msk [vmem:[#allocation3 + $0xd9] sm:$0xff] %vm1866_vm2, %v2304_v56  ;;  %v2305_v2 = vmax.f32 %v2229_v57, 0.0 }
 0x217   : > { %2395 = vst.msk [vmem:[#allocation3 + $0xf9] sm:$0xff] %vm1866_vm2, %v2307_v60  ;;  %v7298_v8 = vpop.permute.xlu1 %5540 }
 0x218   : > { %v7285_v61 = vpop.permute.xlu0 %5535  ;;  %2393 = vst.msk [vmem:[#allocation3 + $0xe1] sm:$0xff] %vm1866_vm2, %v2305_v2 }
 0x219   : > { %5770 = vrot.lane.b32.xlu1 %v5779_v58, %s6127_s29 }
 0x21b   : > { %v7306_v38 = vpop.permute.xlu1 %5550 }
 0x21c   : > { %v7289_v44 = vpop.permute.xlu0 %5545  ;;  %v2649_v52 = vld [vmem:[#allocation3 + $0xf1] sm:$0xff] }
 0x21d   : > { %5775 = vrot.lane.b32.xlu1 %v5774_v43, %s6128_s13  ;;  %v2617_v11 = vld [vmem:[#allocation3 + $0xf0] sm:$0xff]  ;;  %v2615_v10 = vld [vmem:[#allocation3 + $0xd8] sm:$0xff] }
 0x21e   : > { %v2650_v3 = vld [vmem:[#allocation3 + $0xf9] sm:$0xff] }
 0x21f   : > { %v5809_v4 = vpack.i.bf16 %v2650_v3, %v2649_v52  ;;  %v2618_v9 = vld [vmem:[#allocation3 + $0xf8] sm:$0xff]  ;;  %v2616_v47 = vld [vmem:[#allocation3 + $0xe0] sm:$0xff]  ;;  %v7316_v58 = vpop.permute.xlu1 %5575 }
 0x220   : > { %v7292_v1 = vpop.permute.xlu0 %5555  ;;  %v5804_v13 = vpack.i.bf16 %v2618_v9, %v2617_v11  ;;  %v5839_v19 = vpack.i.bf16 %v2616_v47, %v2615_v10  ;;  %v2586_v50 = vld [vmem:[#allocation3 + $0xf2] sm:$0xff]  ;;  %v2587_v63 = vld [vmem:[#allocation3 + $0xfa] sm:$0xff]  ;;  %v2585_v20 = vld [vmem:[#allocation3 + $0xe2] sm:$0xff] }
 0x221   : > { %5785 = vrot.lane.b32.xlu1 %v5774_v43, %s6124_s19  ;;  %5810 = vrot.lane.b32.xlu0 %v5809_v4, %s6128_s13  ;;  %v5824_v0 = vpack.i.bf16 %v2587_v63, %v2586_v50  ;;  %v2584_v34 = vld [vmem:[#allocation3 + $0xda] sm:$0xff] }
 0x222   : > { %v5859_v24 = vpack.i.bf16 %v2585_v20, %v2584_v34  ;;  %v2648_v51 = vld [vmem:[#allocation3 + $0xe1] sm:$0xff]  ;;  %v2647_v9 = vld [vmem:[#allocation3 + $0xd9] sm:$0xff] }
 0x224   : > { %v7296_v6 = vpop.permute.xlu0 %5560 }
 0x225   : > { %5795 = vrot.lane.b32.xlu1 %v5774_v43, %s6118_s18  ;;  %5820 = vrot.lane.b32.xlu0 %v5809_v4, %s6124_s19  ;;  %v5563_v63 = vunpack.i.h.bf16 %v7296_v6  ;;  %v5562_v23 = vunpack.i.l.bf16 %v7296_v6 }
 0x228   : > { %v7302_v12 = vpop.permute.xlu0 %5565 }
 0x229   : > { %5805 = vrot.lane.b32.xlu1 %v5804_v13, %s6127_s29  ;;  %5830 = vrot.lane.b32.xlu0 %v5809_v4, %s6118_s18  ;;  %v5568_v29 = vunpack.i.h.bf16 %v7302_v12 }
 0x22c   : > { %v7308_v18 = vpop.permute.xlu0 %5570 }
 0x22d   : > { %5815 = vrot.lane.b32.xlu1 %v5804_v13, %s6125_s20  ;;  %5840 = vrot.lane.b32.xlu0 %v5839_v19, %s6127_s29  ;;  %v5844_v13 = vpack.i.bf16 %v2648_v51, %v2647_v9  ;;  %v5572_v6 = vunpack.i.l.bf16 %v7308_v18 }
 0x230   : > { %v5581_v32 = vpop.permute.xlu0 %5580  ;;  %v4788_v39 = vpop.f32.mrb[20].mxu0 }
 0x231   : > { %v2250_v33 = vadd.f32 %v4788_v39, %v7087_v62  ;;  %v2241_v30 = vpop.f32.mrb[21].mxu0  ;;  %5825 = vrot.lane.b32.xlu1 %v5824_v0, %s6126_s23  ;;  %5850 = vrot.lane.b32.xlu0 %v5839_v19, %s6125_s20  ;;  %v5583_v55 = vunpack.i.h.bf16 %v5581_v32  ;;  %v5582_v56 = vunpack.i.l.bf16 %v5581_v32  ;;  %v5567_v32 = vunpack.i.l.bf16 %v7302_v12 }
 0x232   : > { %v2242_v7 = vadd.f32 %v7087_v62, %v2241_v30  ;;  %v4789_v41 = vpop.f32.mrb[22].mxu0  ;;  %v5573_v39 = vunpack.i.h.bf16 %v7308_v18 }
 0x233   : > { %v2310_v45 = vmax.f32 %v2250_v33, 0.0  ;;  %v2253_v46 = vadd.f32 %v4789_v41, %v7087_v62  ;;  %v2244_v54 = vpop.f32.mrb[23].mxu0  ;;  %v7327_v2 = vpop.permute.xlu1 %5600  ;;  %v3659_v47 = vsel %vm3657_vm12, %v3626_v21, %v5583_v55  ;;  %v3658_v10 = vsel %vm3657_vm12, %v3625_v42, %v5582_v56 }
 0x234   : > { %v5586_v53 = vpop.permute.xlu0 %5585  ;;  %v2308_v57 = vmax.f32 %v2242_v7, 0.0  ;;  %v2245_v60 = vadd.f32 %v7087_v62, %v2244_v54  ;;  %v3595_v41 = vsel %vm1866_vm2, %v7184_v17, %v5572_v6  ;;  %v3596_v18 = vsel %vm1866_vm2, %v7181_v15, %v5573_v39 }
 0x235   : > { %2398 = vst.msk [vmem:[#allocation3 + $0x121] sm:$0xff] %vm1866_vm2, %v2310_v45  ;;  %v2311_v43 = vmax.f32 %v2253_v46, 0.0  ;;  %v5588_v52 = vunpack.i.h.bf16 %v5586_v53  ;;  %v5587_v3 = vunpack.i.l.bf16 %v5586_v53  ;;  %5835 = vrot.lane.b32.xlu1 %v5824_v0, %s6122_s28  ;;  %5860 = vrot.lane.b32.xlu0 %v5859_v24, %s6126_s23  ;;  %v5578_v54 = vunpack.i.h.bf16 %v7316_v58 }
 0x236   : > { %2396 = vst.msk [vmem:[#allocation3 + $0x109] sm:$0xff] %vm1866_vm2, %v2308_v57  ;;  %v2309_v4 = vmax.f32 %v2245_v60, 0.0  ;;  %v5553_v6 = vunpack.i.h.bf16 %v7306_v38  ;;  %v5603_v16 = vunpack.i.h.bf16 %v7327_v2  ;;  %v5602_v5 = vunpack.i.l.bf16 %v7327_v2 }
 0x237   : > { %2399 = vst.msk [vmem:[#allocation3 + $0x129] sm:$0xff] %vm1866_vm2, %v2311_v43  ;;  %v7338_v50 = vpop.permute.xlu1 %5610  ;;  %v3691_v27 = vsel %vm3690_vm13, %v3658_v10, %v5587_v3  ;;  %v3692_v28 = vsel %vm3690_vm13, %v3659_v47, %v5588_v52  ;;  %v3628_v51 = vsel %vm1998_vm9, %v3596_v18, %v5578_v54  ;;  %v5538_v52 = vunpack.i.h.bf16 %v7285_v61 }
 0x238   : > { %v5591_v11 = vpop.permute.xlu0 %5590  ;;  %2397 = vst.msk [vmem:[#allocation3 + $0x111] sm:$0xff] %vm1866_vm2, %v2309_v4  ;;  %v5537_v3 = vunpack.i.l.bf16 %v7285_v61 }
 0x239   : > { %v5593_v19 = vunpack.i.h.bf16 %v5591_v11  ;;  %v5592_v49 = vunpack.i.l.bf16 %v5591_v11  ;;  %5845 = vrot.lane.b32.xlu1 %v5844_v13, %s6128_s13  ;;  %5870 = vrot.lane.b32.xlu0 %v5859_v24, %s6122_s28  ;;  %v5577_v24 = vunpack.i.l.bf16 %v7316_v58  ;;  %v3661_v10 = vsel %vm3657_vm12, %v3628_v51, %v5538_v52 }
 0x23b   : > { %v3724_v0 = vsel %vm3723_vm14, %v3691_v27, %v5592_v49  ;;  %v3725_v35 = vsel %vm3723_vm14, %v3692_v28, %v5593_v19  ;;  %v7358_v37 = vpop.permute.xlu1 %5620  ;;  %v3627_v15 = vsel %vm1998_vm9, %v3595_v41, %v5577_v24  ;;  %v5543_v19 = vunpack.i.h.bf16 %v7298_v8 }
 0x23c   : > { %v3757_v34 = vsel %vm3756_vm15, %v3724_v0, %v5562_v23  ;;  %v3758_v20 = vsel %vm3756_vm15, %v3725_v35, %v5563_v63  ;;  %v7354_v40 = vpop.permute.xlu0 %5595  ;;  %v2621_v21 = vld [vmem:[#allocation3 + $0x120] sm:$0xff]  ;;  %v3660_v47 = vsel %vm3657_vm12, %v3627_v15, %v5537_v3  ;;  %v5542_v49 = vunpack.i.l.bf16 %v7298_v8 }
 0x23d   : > { %v3790_v33 = vsel %vm3789_vm0, %v3757_v34, %v5567_v32  ;;  %v3791_v30 = vsel %vm3789_vm0, %v3758_v20, %v5568_v29  ;;  %5855 = vrot.lane.b32.xlu1 %v5844_v13, %s6124_s19  ;;  %v2619_v7 = vld [vmem:[#allocation3 + $0x108] sm:$0xff]  ;;  %v3694_v29 = vsel %vm3690_vm13, %v3661_v10, %v5543_v19  ;;  %v5548_v32 = vunpack.i.h.bf16 %v7289_v44 }
 0x23e   : > { %v3822_v12 = vpack.c.bf16 %v3791_v30, %v3790_v33  ;;  %v7369_v53 = vld [vmem:[#allocation3 + $0x122] sm:$0xff]  ;;  %v7375_v17 = vld [vmem:[#allocation3 + $0x12a] sm:$0xff]  ;;  %v3693_v28 = vsel %vm3690_vm13, %v3660_v47, %v5542_v49  ;;  %v5547_v0 = vunpack.i.l.bf16 %v7289_v44  ;;  %v5552_v34 = vunpack.i.l.bf16 %v7306_v38 }
 0x23f   : > { %v2620_v45 = vld [vmem:[#allocation3 + $0x110] sm:$0xff]  ;;  %v5631_v55 = vpop.permute.xlu1 %5630  ;;  %v2622_v57 = vld [vmem:[#allocation3 + $0x128] sm:$0xff]  ;;  %v3843_v58 = vpack.c.bf16 %v7375_v17, %v7369_v53  ;;  %v5558_v33 = vunpack.i.h.bf16 %v7292_v1  ;;  %v5557_v30 = vunpack.i.l.bf16 %v7292_v1  ;;  %v3727_v41 = vsel %vm3723_vm14, %v3694_v29, %v5548_v32 }
 0x240   : > { %v7365_v42 = vpop.permute.xlu0 %5605  ;;  %4014 = vmatmul.mubr.bf16.vlgmr.msra.gmra.mrb[32].mxu0 %v3822_v12  ;;  %v7367_v46 = vld [vmem:[#allocation3 + $0x10a] sm:$0xff]  ;;  %v5879_v56 = vpack.i.bf16 %v2620_v45, %v2619_v7  ;;  %v7373_v60 = vld [vmem:[#allocation3 + $0x112] sm:$0xff]  ;;  %v7389_v9 = vpack.i.bf16 %v2622_v57, %v2621_v21  ;;  %v5633_v35 = vunpack.i.h.bf16 %v5631_v55  ;;  %v5632_v39 = vunpack.i.l.bf16 %v5631_v55  ;;  %v2653_v7 = vld [vmem:[#allocation3 + $0x121] sm:$0xff] }
 0x241   : > { %5865 = vrot.lane.b32.xlu1 %v5844_v13, %s6118_s18  ;;  %v3841_v43 = vpack.c.bf16 %v7373_v60, %v7367_v46  ;;  %v2652_v13 = vld [vmem:[#allocation3 + $0x111] sm:$0xff]  ;;  %v2651_v61 = vld [vmem:[#allocation3 + $0x109] sm:$0xff]  ;;  %v5899_v27 = vpack.i.bf16 %v7373_v60, %v7367_v46  ;;  %v3726_v44 = vsel %vm3723_vm14, %v3693_v28, %v5547_v0  ;;  %v3598_v1 = vsel %vm1866_vm2, %v7127_v31, %v5553_v6 }
 0x242   : > { %5880 = vrot.lane.b32.xlu0 %v5879_v56, %s6127_s29  ;;  %v5884_v23 = vpack.i.bf16 %v2652_v13, %v2651_v61  ;;  %v2654_v8 = vld [vmem:[#allocation3 + $0x129] sm:$0xff]  ;;  %v3759_v38 = vsel %vm3756_vm15, %v3726_v44, %v5632_v39  ;;  %v3597_v51 = vsel %vm1866_vm2, %v7125_v48, %v5552_v34  ;;  %v3630_v21 = vsel %vm1998_vm9, %v3598_v1, %v5558_v33 }
 0x243   : > { %v5641_v11 = vpop.permute.xlu1 %5640  ;;  %v7414_v24 = vpack.i.bf16 %v2654_v8, %v2653_v7  ;;  %v5597_v32 = vunpack.i.l.bf16 %v7354_v40 }
 0x244   : > { %v7387_v4 = vpop.permute.xlu0 %5615  ;;  %v5643_v18 = vunpack.i.h.bf16 %v5641_v11  ;;  %v5642_v55 = vunpack.i.l.bf16 %v5641_v11  ;;  %v3629_v11 = vsel %vm1998_vm9, %v3597_v51, %v5557_v30  ;;  %v5598_v30 = vunpack.i.h.bf16 %v7354_v40 }
 0x245   : > { %5875 = vrot.lane.b32.xlu1 %v7389_v9, %s6127_s29 }
 0x246   : > { %5890 = vrot.lane.b32.xlu0 %v5879_v56, %s6125_s20  ;;  %v3760_v56 = vsel %vm3756_vm15, %v3727_v41, %v5633_v35  ;;  %v3663_v13 = vsel %vm3657_vm12, %v3630_v21, %v5643_v18  ;;  %v3662_v49 = vsel %vm3657_vm12, %v3629_v11, %v5642_v55 }
 0x247   : > { %v5651_v20 = vpop.permute.xlu1 %5650 }
 0x248   : > { %v7398_v63 = vpop.permute.xlu0 %5625  ;;  %v5653_v61 = vunpack.i.h.bf16 %v5651_v20  ;;  %v5652_v28 = vunpack.i.l.bf16 %v5651_v20 }
 0x249   : > { %5885 = vrot.lane.b32.xlu1 %v5884_v23, %s6128_s13 }
 0x24a   : > { %5900 = vrot.lane.b32.xlu0 %v5899_v27, %s6126_s23 }
 0x24b   : > { %v7430_v47 = vpop.permute.xlu1 %5660 }
 0x24c   : > { %v5636_v12 = vpop.permute.xlu0 %5635 }
 0x24d   : > { %v5638_v45 = vunpack.i.h.bf16 %v5636_v12  ;;  %v5637_v54 = vunpack.i.l.bf16 %v5636_v12  ;;  %5895 = vrot.lane.b32.xlu1 %v5884_v23, %s6124_s19 }
 0x24e   : > { %5905 = vrot.lane.b32.xlu0 %v7414_v24, %s6128_s13 }
 0x24f   : > { %v3792_v57 = vsel %vm3789_vm0, %v3759_v38, %v5637_v54  ;;  %v3793_v15 = vsel %vm3789_vm0, %v3760_v56, %v5638_v45  ;;  %v5929_v45 = vpack.i.bf16 %v7375_v17, %v7369_v53 }
 0x250   : > { %v5646_v52 = vpop.permute.xlu0 %5645  ;;  %v3824_v3 = vpack.c.bf16 %v3793_v15, %v3792_v57  ;;  %v4792_v19 = vpop.f32.mrb[24].mxu0  ;;  %v2414_v57 = vld [vmem:[#allocation3 + $0x48] sm:$0xff]  ;;  %v2415_v15 = vld [vmem:[#allocation3 + $0x50] sm:$0xff] }
 0x251   : > { %v5648_v31 = vunpack.i.h.bf16 %v5646_v52  ;;  %v5647_v10 = vunpack.i.l.bf16 %v5646_v52  ;;  %v2266_v29 = vadd.f32 %v4792_v19, %v7087_v62  ;;  %v2257_v48 = vpop.f32.mrb[25].mxu0  ;;  %5910 = vrot.lane.b32.xlu1 %v5884_v23, %s6118_s18 }
 0x252   : > { %4022 = vmatmul.mubr.bf16.vlgmr.msra.gmra.mrb[0].mxu1 %v3824_v3  ;;  %v2258_v39 = vadd.f32 %v7087_v62, %v2257_v48  ;;  %v4793_v8 = vpop.f32.mrb[26].mxu0  ;;  %5915 = vrot.lane.b32.xlu0 %v5899_v27, %s6122_s28 }
 0x253   : > { %v3696_v0 = vsel %vm3690_vm13, %v3663_v13, %v5648_v31  ;;  %v3695_v35 = vsel %vm3690_vm13, %v3662_v49, %v5647_v10  ;;  %4667 = vmatprep.mubr.msk.bf16.mxu1 %vm1866_vm2, %v3827_v14  ;;  %v2314_v34 = vmax.f32 %v2266_v29, 0.0  ;;  %v2269_v20 = vadd.f32 %v4793_v8, %v7087_v62  ;;  %v2260_v33 = vpop.f32.mrb[27].mxu0  ;;  %v7449_v44 = vpop.permute.xlu1 %5670 }
 0x254   : > { %v3729_v6 = vsel %vm3723_vm14, %v3696_v0, %v5653_v61  ;;  %v3728_v23 = vsel %vm3723_vm14, %v3695_v35, %v5652_v28  ;;  %v2312_v12 = vmax.f32 %v2258_v39, 0.0  ;;  %v2261_v7 = vadd.f32 %v7087_v62, %v2260_v33  ;;  %v5656_v27 = vpop.permute.xlu0 %5655 }
 0x255   : > { %2402 = vst.msk [vmem:[#allocation3 + $0x151] sm:$0xff] %vm1866_vm2, %v2314_v34  ;;  %v2315_v14 = vmax.f32 %v2269_v20, 0.0  ;;  %5920 = vrot.lane.b32.xlu1 %v7389_v9, %s6125_s20  ;;  %v3761_v41 = vsel %vm3756_vm15, %v3728_v23, %v5597_v32  ;;  %v3762_v62 = vsel %vm3756_vm15, %v3729_v6, %v5598_v30  ;;  %v5658_v55 = vunpack.i.h.bf16 %v5656_v27 }
 0x256   : > { %2400 = vst.msk [vmem:[#allocation3 + $0x139] sm:$0xff] %vm1866_vm2, %v2312_v12  ;;  %v2313_v40 = vmax.f32 %v2261_v7, 0.0  ;;  %5925 = vrot.lane.b32.xlu0 %v7414_v24, %s6124_s19  ;;  %v3794_v2 = vsel %vm3789_vm0, %v3761_v41, %v5602_v5  ;;  %v3795_v18 = vsel %vm3789_vm0, %v3762_v62, %v5603_v16  ;;  %v5657_v38 = vunpack.i.l.bf16 %v5656_v27 }
 0x257   : > { %2403 = vst.msk [vmem:[#allocation3 + $0x159] sm:$0xff] %vm1866_vm2, %v2315_v14  ;;  %v7467_v9 = vpop.permute.xlu1 %5675  ;;  %v3826_v54 = vpack.c.bf16 %v3795_v18, %v3794_v2  ;;  %v3600_v51 = vsel %vm1866_vm2, %v2415_v15, %v5658_v55  ;;  %v5663_v13 = vunpack.i.h.bf16 %v7430_v47  ;;  %v5662_v31 = vunpack.i.l.bf16 %v7430_v47  ;;  %v2673_v55 = vld [vmem:[#allocation3 + $0x92] sm:$0xff] }
 0x258   : > { %2401 = vst.msk [vmem:[#allocation3 + $0x141] sm:$0xff] %vm1866_vm2, %v2313_v40  ;;  %v7470_v56 = vpop.permute.xlu0 %5665  ;;  %v3599_v21 = vsel %vm1866_vm2, %v2414_v57, %v5657_v38  ;;  %v5608_v32 = vunpack.i.h.bf16 %v7365_v42  ;;  %v5607_v0 = vunpack.i.l.bf16 %v7365_v42  ;;  %v5613_v34 = vunpack.i.h.bf16 %v7338_v50  ;;  %v2674_v38 = vld [vmem:[#allocation3 + $0x9a] sm:$0xff] }
 0x259   : > { %5930 = vrot.lane.b32.xlu1 %v5929_v45, %s6126_s23  ;;  %v3632_v29 = vsel %vm1998_vm9, %v3600_v51, %v5663_v13  ;;  %v3631_v47 = vsel %vm1998_vm9, %v3599_v21, %v5662_v31  ;;  %v5612_v42 = vunpack.i.l.bf16 %v7338_v50  ;;  %v5623_v20 = vunpack.i.h.bf16 %v7358_v37 }
 0x25a   : > { %4030 = vmatmul.mubr.bf16.gmra.mrb[4].mxu1 %v3826_v54  ;;  %v3664_v8 = vsel %vm3657_vm12, %v3631_v47, %v5607_v0  ;;  %v3665_v6 = vsel %vm3657_vm12, %v3632_v29, %v5608_v32  ;;  %v5622_v7 = vunpack.i.l.bf16 %v7358_v37  ;;  %v5618_v16 = vunpack.i.h.bf16 %v7387_v4 }
 0x25b   : > { %4668 = vmatprep.mubr.msk.bf16.mxu1 %vm1866_vm2, %v3829_v36  ;;  %v7476_v1 = vpop.permute.xlu1 %5680  ;;  %v3697_v30 = vsel %vm3690_vm13, %v3664_v8, %v5612_v42  ;;  %v3698_v12 = vsel %vm3690_vm13, %v3665_v6, %v5613_v34  ;;  %v5617_v5 = vunpack.i.l.bf16 %v7387_v4  ;;  %v5628_v50 = vunpack.i.h.bf16 %v7398_v63 }
 0x25c   : > { %v7502_v48 = vpop.permute.xlu0 %5690  ;;  %v5627_v27 = vunpack.i.l.bf16 %v7398_v63  ;;  %v3602_v37 = vsel %vm1866_vm2, %v7203_v25, %v5623_v20  ;;  %v7541_v54 = vld [vmem:[#allocation3 + $0x150] sm:$0xff]  ;;  %v3601_v25 = vsel %vm1866_vm2, %v7208_v26, %v5622_v7  ;;  %v3831_v0 = vpack.c.bf16 %v2674_v38, %v2673_v55 }
 0x25d   : > { %v2655_v52 = vld [vmem:[#allocation3 + $0x139] sm:$0xff]  ;;  %v3730_v18 = vsel %vm3723_vm14, %v3697_v30, %v5617_v5  ;;  %v3634_v47 = vsel %vm1998_vm9, %v3602_v37, %v5628_v50  ;;  %v2657_v26 = vld [vmem:[#allocation3 + $0x151] sm:$0xff]  ;;  %v5667_v50 = vunpack.i.l.bf16 %v7470_v56  ;;  %v5672_v55 = vunpack.i.l.bf16 %v7449_v44 }
 0x25e   : > { %v7480_v3 = vld [vmem:[#allocation3 + $0x138] sm:$0xff]  ;;  %v3633_v32 = vsel %vm1998_vm9, %v3601_v25, %v5627_v27  ;;  %v5668_v38 = vunpack.i.h.bf16 %v7470_v56 }
 0x25f   : > { %v7482_v11 = vld [vmem:[#allocation3 + $0x152] sm:$0xff]  ;;  %v2656_v22 = vld [vmem:[#allocation3 + $0x141] sm:$0xff]  ;;  %v7490_v10 = vpop.permute.xlu1 %5685 }
 0x260   : > { %v7486_v59 = vld [vmem:[#allocation3 + $0x140] sm:$0xff]  ;;  %v7492_v19 = vpack.i.bf16 %v2656_v22, %v2655_v52  ;;  %v5706_v33 = vpop.permute.xlu0 %5705  ;;  %v7530_v40 = vld [vmem:[#allocation3 + $0x158] sm:$0xff] }
 0x261   : > { %v7488_v36 = vld [vmem:[#allocation3 + $0x13a] sm:$0xff]  ;;  %v5934_v49 = vpack.i.bf16 %v7486_v59, %v7480_v3  ;;  %v7496_v61 = vld [vmem:[#allocation3 + $0x142] sm:$0xff]  ;;  %v5708_v62 = vunpack.i.h.bf16 %v5706_v33  ;;  %v5707_v2 = vunpack.i.l.bf16 %v5706_v33  ;;  %v5969_v15 = vpack.i.bf16 %v7530_v40, %v7541_v54 }
 0x262   : > { %v7498_v28 = vld [vmem:[#allocation3 + $0x15a] sm:$0xff]  ;;  %5940 = vrot.lane.b32.xlu1 %v7492_v19, %s6128_s13  ;;  %v3845_v35 = vpack.c.bf16 %v7496_v61, %v7488_v36  ;;  %v5964_v51 = vpack.i.bf16 %v7496_v61, %v7488_v36 }
 0x263   : > { %5935 = vrot.lane.b32.xlu0 %v5934_v49, %s6127_s29  ;;  %v3847_v39 = vpack.c.bf16 %v7498_v28, %v7482_v11  ;;  %v7515_v23 = vpop.permute.xlu1 %5695  ;;  %v2658_v29 = vld [vmem:[#allocation3 + $0x159] sm:$0xff] }
 0x264   : > { %v5716_v13 = vpop.permute.xlu0 %5715  ;;  %v7558_v30 = vpack.i.bf16 %v2658_v29, %v2657_v26  ;;  %v2676_v29 = vld [vmem:[#allocation3 + $0xb2] sm:$0xff] }
 0x265   : > { %v5718_v34 = vunpack.i.h.bf16 %v5716_v13  ;;  %v5717_v42 = vunpack.i.l.bf16 %v5716_v13 }
 0x266   : > { %5950 = vrot.lane.b32.xlu1 %v5929_v45, %s6122_s28  ;;  %v3731_v45 = vsel %vm3723_vm14, %v3698_v12, %v5618_v16  ;;  %v6105_v16 = vld [vmem:[%s8055_s2] ss:$0 sm:$0xff] }
 0x267   : > { %5945 = vrot.lane.b32.xlu0 %v7414_v24, %s6118_s18  ;;  %v5701_v14 = vpop.permute.xlu1 %5700 }
 0x268   : > { %v5703_v41 = vunpack.i.h.bf16 %v5701_v14  ;;  %v5702_v24 = vunpack.i.l.bf16 %v5701_v14 }
 0x26a   : > { %5960 = vrot.lane.b32.xlu1 %v7492_v19, %s6124_s19  ;;  %v3763_v4 = vsel %vm3756_vm15, %v3730_v18, %v5702_v24  ;;  %v3764_v63 = vsel %vm3756_vm15, %v3731_v45, %v5703_v41 }
 0x26b   : > { %5955 = vrot.lane.b32.xlu0 %v5934_v49, %s6125_s20  ;;  %v5711_v57 = vpop.permute.xlu1 %5710  ;;  %v3796_v21 = vsel %vm3789_vm0, %v3763_v4, %v5707_v2  ;;  %v3797_v52 = vsel %vm3789_vm0, %v3764_v63, %v5708_v62 }
 0x26c   : > { %v5713_v31 = vunpack.i.h.bf16 %v5711_v57  ;;  %v5712_v22 = vunpack.i.l.bf16 %v5711_v57  ;;  %v3828_v49 = vpack.c.bf16 %v3797_v52, %v3796_v21 }
 0x26e   : > { %5970 = vrot.lane.b32.xlu1 %v5969_v15, %s6127_s29  ;;  %v3666_v8 = vsel %vm3657_vm12, %v3633_v32, %v5712_v22  ;;  %v3667_v6 = vsel %vm3657_vm12, %v3634_v47, %v5713_v31  ;;  %4038 = vmatmul.mubr.bf16.gmra.mrb[8].mxu1 %v3828_v49  ;;  %v2675_v49 = vld [vmem:[#allocation3 + $0xaa] sm:$0xff] }
 0x26f   : > { %5965 = vrot.lane.b32.xlu0 %v5964_v51, %s6126_s23  ;;  %v5721_v20 = vpop.permute.xlu1 %5720  ;;  %4669 = vmatprep.mubr.msk.bf16.mxu1 %vm1866_vm2, %v3831_v0  ;;  %v3699_v27 = vsel %vm3690_vm13, %v3666_v8, %v5717_v42  ;;  %v3700_v41 = vsel %vm3690_vm13, %v3667_v6, %v5718_v34 }
 0x270   : > { %v4796_v33 = vpop.f32.mrb[28].mxu0  ;;  %v5723_v12 = vunpack.i.h.bf16 %v5721_v20  ;;  %v5722_v7 = vunpack.i.l.bf16 %v5721_v20 }
 0x271   : > { %v2282_v5 = vadd.f32 %v6105_v16, %v4796_v33  ;;  %v2273_v14 = vpop.f32.mrb[29].mxu0 }
 0x272   : > { %v2274_v24 = vadd.f32 %v6105_v16, %v2273_v14  ;;  %v4797_v62 = vpop.f32.mrb[30].mxu0  ;;  %5980 = vrot.lane.b32.xlu1 %v7492_v19, %s6118_s18  ;;  %v3732_v2 = vsel %vm3723_vm14, %v3699_v27, %v5722_v7  ;;  %v3733_v18 = vsel %vm3723_vm14, %v3700_v41, %v5723_v12  ;;  %v5673_v19 = vunpack.i.h.bf16 %v7449_v44 }
 0x273   : > { %5975 = vrot.lane.b32.xlu0 %v7558_v30, %s6128_s13  ;;  %v2318_v45 = vmax.f32 %v2282_v5, 0.0  ;;  %v2285_v37 = vadd.f32 %v6105_v16, %v4797_v62  ;;  %v2276_v4 = vpop.f32.mrb[31].mxu0  ;;  %v7572_v63 = vpop.permute.xlu0 %5740  ;;  %v3765_v13 = vsel %vm3756_vm15, %v3732_v2, %v5667_v50  ;;  %v3766_v22 = vsel %vm3756_vm15, %v3733_v18, %v5668_v38 }
 0x274   : > { %v2316_v57 = vmax.f32 %v2274_v24, 0.0  ;;  %v2277_v21 = vadd.f32 %v6105_v16, %v2276_v4  ;;  %v5726_v52 = vpop.permute.xlu1 %5725  ;;  %v3798_v56 = vsel %vm3789_vm0, %v3765_v13, %v5672_v55  ;;  %v3799_v47 = vsel %vm3789_vm0, %v3766_v22, %v5673_v19  ;;  %v2418_v4 = vld [vmem:[#allocation3 + $0x78] sm:$0xff]  ;;  %v2419_v55 = vld [vmem:[#allocation3 + $0x80] sm:$0xff] }
 0x275   : > { %2406 = vst.msk [vmem:[#allocation3 + $0x181] sm:$0xff] %vm1866_vm2, %v2318_v45  ;;  %v2319_v25 = vmax.f32 %v2285_v37, 0.0  ;;  %v3830_v0 = vpack.c.bf16 %v3799_v47, %v3798_v56  ;;  %v5728_v41 = vunpack.i.h.bf16 %v5726_v52  ;;  %v5727_v24 = vunpack.i.l.bf16 %v5726_v52 }
 0x276   : > { %2404 = vst.msk [vmem:[#allocation3 + $0x169] sm:$0xff] %vm1866_vm2, %v2316_v57  ;;  %v2317_v31 = vmax.f32 %v2277_v21, 0.0  ;;  %5990 = vrot.lane.b32.xlu1 %v5969_v15, %s6125_s20  ;;  %v5999_v15 = vpack.i.bf16 %v7498_v28, %v7482_v11  ;;  %v5677_v13 = vunpack.i.l.bf16 %v7467_v9  ;;  %v5682_v47 = vunpack.i.l.bf16 %v7476_v1 }
 0x277   : > { %5985 = vrot.lane.b32.xlu0 %v5964_v51, %s6122_s28  ;;  %2407 = vst.msk [vmem:[#allocation3 + $0x189] sm:$0xff] %vm1866_vm2, %v2319_v25  ;;  %v7585_v44 = vpop.permute.xlu0 %5750  ;;  %v3833_v51 = vpack.c.bf16 %v2676_v29, %v2675_v49  ;;  %4046 = vmatmul.mubr.bf16.gmra.mrb[12].mxu1 %v3830_v0  ;;  %v3604_v38 = vsel %vm1866_vm2, %v2419_v55, %v5728_v41  ;;  %v5678_v25 = vunpack.i.h.bf16 %v7467_v9  ;;  %v5683_v29 = vunpack.i.h.bf16 %v7476_v1 }
 0x278   : > { %2405 = vst.msk [vmem:[#allocation3 + $0x171] sm:$0xff] %vm1866_vm2, %v2317_v31  ;;  %v5731_v32 = vpop.permute.xlu1 %5730  ;;  %v3603_v57 = vsel %vm1866_vm2, %v2418_v4, %v5727_v24  ;;  %v5692_v41 = vunpack.i.l.bf16 %v7502_v48  ;;  %v5688_v1 = vunpack.i.h.bf16 %v7490_v10  ;;  %v5687_v24 = vunpack.i.l.bf16 %v7490_v10  ;;  %v2420_v10 = vld [vmem:[#allocation3 + $0x90] sm:$0xff] }
 0x279   : > { %4670 = vmatprep.mubr.msk.bf16.mxu1 %vm1866_vm2, %v3833_v51  ;;  %v5733_v18 = vunpack.i.h.bf16 %v5731_v32  ;;  %v5732_v45 = vunpack.i.l.bf16 %v5731_v32  ;;  %v5693_v4 = vunpack.i.h.bf16 %v7502_v48  ;;  %v5698_v55 = vunpack.i.h.bf16 %v7515_v23 }
 0x27a   : > { %6000 = vrot.lane.b32.xlu1 %v5999_v15, %s6126_s23 }
 0x27b   : > { %5995 = vrot.lane.b32.xlu0 %v7558_v30, %s6124_s19  ;;  %v7597_v6 = vpop.permute.xlu0 %5760  ;;  %v3635_v21 = vsel %vm1998_vm9, %v3603_v57, %v5732_v45  ;;  %v3636_v52 = vsel %vm1998_vm9, %v3604_v38, %v5733_v18  ;;  %v5697_v38 = vunpack.i.l.bf16 %v7515_v23  ;;  %v2421_v23 = vld [vmem:[#allocation3 + $0x98] sm:$0xff] }
 0x27c   : > { %v7595_v8 = vpop.permute.xlu1 %5735  ;;  %v3669_v56 = vsel %vm3657_vm12, %v3636_v52, %v5678_v25  ;;  %v2629_v49 = vld [vmem:[#allocation3 + $0x180] sm:$0xff] }
 0x27d   : > { %v2659_v26 = vld [vmem:[#allocation3 + $0x169] sm:$0xff]  ;;  %v2661_v45 = vld [vmem:[#allocation3 + $0x181] sm:$0xff] }
 0x27e   : > { %v7599_v34 = vld [vmem:[#allocation3 + $0x168] sm:$0xff] }
 0x27f   : > { %v2660_v42 = vld [vmem:[#allocation3 + $0x171] sm:$0xff]  ;;  %v7613_v14 = vld [vmem:[#allocation3 + $0x182] sm:$0xff]  ;;  %v7622_v62 = vpop.permute.xlu0 %5780 }
 0x280   : > { %v7601_v20 = vld [vmem:[#allocation3 + $0x170] sm:$0xff]  ;;  %v7605_v12 = vpop.permute.xlu1 %5745  ;;  %v7607_v7 = vpack.i.bf16 %v2660_v42, %v2659_v26  ;;  %v2630_v22 = vld [vmem:[#allocation3 + $0x188] sm:$0xff] }
 0x281   : > { %v7603_v33 = vld [vmem:[#allocation3 + $0x16a] sm:$0xff]  ;;  %v6004_v16 = vpack.i.bf16 %v7601_v20, %v7599_v34  ;;  %v7611_v5 = vld [vmem:[#allocation3 + $0x172] sm:$0xff]  ;;  %v6039_v0 = vpack.i.bf16 %v2630_v22, %v2629_v49  ;;  %v5783_v49 = vunpack.i.h.bf16 %v7622_v62 }
 0x282   : > { %v7615_v50 = vld [vmem:[#allocation3 + $0x18a] sm:$0xff]  ;;  %6010 = vrot.lane.b32.xlu1 %v7607_v7, %s6128_s13  ;;  %v3849_v27 = vpack.c.bf16 %v7611_v5, %v7603_v33  ;;  %v6034_v9 = vpack.i.bf16 %v7611_v5, %v7603_v33 }
 0x283   : > { %6005 = vrot.lane.b32.xlu0 %v6004_v16, %s6127_s29  ;;  %v3851_v2 = vpack.c.bf16 %v7615_v50, %v7613_v14  ;;  %v7639_v31 = vpop.permute.xlu0 %5790 }
 0x284   : > { %v7626_v37 = vpop.permute.xlu1 %5755 }
 0x286   : > { %6020 = vrot.lane.b32.xlu1 %v5999_v15, %s6122_s28  ;;  %v2662_v15 = vld [vmem:[#allocation3 + $0x189] sm:$0xff] }
 0x287   : > { %6015 = vrot.lane.b32.xlu0 %v7558_v30, %s6118_s18  ;;  %v3668_v30 = vsel %vm3657_vm12, %v3635_v21, %v5677_v13  ;;  %v7657_v18 = vpop.permute.xlu0 %5800  ;;  %v6044_v21 = vpack.i.bf16 %v2662_v15, %v2661_v45  ;;  %v5743_v45 = vunpack.i.h.bf16 %v7572_v63 }
 0x288   : > { %v7635_v19 = vpop.permute.xlu1 %5765  ;;  %v3701_v42 = vsel %vm3690_vm13, %v3668_v30, %v5682_v47  ;;  %v2677_v30 = vld [vmem:[#allocation3 + $0xc2] sm:$0xff] }
 0x289   : > { %v3734_v52 = vsel %vm3723_vm14, %v3701_v42, %v5687_v24 }
 0x28a   : > { %6030 = vrot.lane.b32.xlu1 %v7607_v7, %s6124_s19 }
 0x28b   : > { %6025 = vrot.lane.b32.xlu0 %v6004_v16, %s6125_s20  ;;  %v3702_v16 = vsel %vm3690_vm13, %v3669_v56, %v5683_v29  ;;  %v2678_v56 = vld [vmem:[#allocation3 + $0xca] sm:$0xff]  ;;  %v5782_v29 = vunpack.i.l.bf16 %v7622_v62  ;;  %v3606_v62 = vsel %vm1866_vm2, %v2421_v23, %v5693_v4  ;;  %v5738_v4 = vunpack.i.h.bf16 %v7595_v8  ;;  %v2632_v23 = vld [vmem:[#allocation3 + $0x1a0] sm:$0xff] }
 0x28c   : > { %v5771_v32 = vpop.permute.xlu1 %5770  ;;  %v3735_v25 = vsel %vm3723_vm14, %v3702_v16, %v5688_v1  ;;  %v3835_v24 = vpack.c.bf16 %v2678_v56, %v2677_v30 }
 0x28d   : > { %v5773_v51 = vunpack.i.h.bf16 %v5771_v32  ;;  %v5772_v26 = vunpack.i.l.bf16 %v5771_v32  ;;  %v3605_v32 = vsel %vm1866_vm2, %v2420_v10, %v5692_v41  ;;  %v2663_v10 = vld [vmem:[#allocation3 + $0x199] sm:$0xff] }
 0x28e   : > { %6040 = vrot.lane.b32.xlu1 %v6039_v0, %s6127_s29 }
 0x28f   : > { %6035 = vrot.lane.b32.xlu0 %v6034_v9, %s6126_s23  ;;  %v3767_v48 = vsel %vm3756_vm15, %v3734_v52, %v5772_v26  ;;  %v3768_v47 = vsel %vm3756_vm15, %v3735_v25, %v5773_v51  ;;  %v3637_v26 = vsel %vm1998_vm9, %v3605_v32, %v5697_v38  ;;  %v5737_v38 = vunpack.i.l.bf16 %v7595_v8 }
 0x290   : > { %v5776_v57 = vpop.permute.xlu1 %5775  ;;  %v3670_v41 = vsel %vm3657_vm12, %v3637_v26, %v5782_v29  ;;  %v6069_v8 = vpack.i.bf16 %v7615_v50, %v7613_v14 }
 0x291   : > { %v5778_v13 = vunpack.i.h.bf16 %v5776_v57  ;;  %v5777_v22 = vunpack.i.l.bf16 %v5776_v57 }
 0x292   : > { %6050 = vrot.lane.b32.xlu1 %v7607_v7, %s6118_s18  ;;  %v3638_v7 = vsel %vm1998_vm9, %v3606_v62, %v5698_v55  ;;  %v2680_v62 = vld [vmem:[#allocation3 + $0xe2] sm:$0xff] }
 0x293   : > { %6045 = vrot.lane.b32.xlu0 %v6044_v21, %s6128_s13  ;;  %v7672_v15 = vpop.permute.xlu0 %5810  ;;  %v3800_v42 = vsel %vm3789_vm0, %v3767_v48, %v5777_v22  ;;  %v3801_v16 = vsel %vm3789_vm0, %v3768_v47, %v5778_v13  ;;  %v3671_v25 = vsel %vm3657_vm12, %v3638_v7, %v5783_v49  ;;  %v5793_v22 = vunpack.i.h.bf16 %v7639_v31  ;;  %v2664_v49 = vld [vmem:[#allocation3 + $0x1a1] sm:$0xff]  ;;  %v2631_v47 = vld [vmem:[#allocation3 + $0x198] sm:$0xff] }
 0x294   : > { %v5786_v1 = vpop.permute.xlu1 %5785  ;;  %v3832_v51 = vpack.c.bf16 %v3801_v16, %v3800_v42  ;;  %v5792_v13 = vunpack.i.l.bf16 %v7639_v31  ;;  %v5742_v31 = vunpack.i.l.bf16 %v7572_v63  ;;  %v2679_v16 = vld [vmem:[#allocation3 + $0xda] sm:$0xff]  ;;  %v6079_v26 = vpack.i.bf16 %v2664_v49, %v2663_v10 }
 0x295   : > { %v5788_v57 = vunpack.i.h.bf16 %v5786_v1  ;;  %v5787_v52 = vunpack.i.l.bf16 %v5786_v1 }
 0x296   : > { %4054 = vmatmul.mubr.bf16.gmra.mrb[16].mxu1 %v3832_v51  ;;  %6060 = vrot.lane.b32.xlu1 %v6039_v0, %s6125_s20 }
 0x297   : > { %v3703_v55 = vsel %vm3690_vm13, %v3670_v41, %v5787_v52  ;;  %v3704_v30 = vsel %vm3690_vm13, %v3671_v25, %v5788_v57  ;;  %6055 = vrot.lane.b32.xlu0 %v6034_v9, %s6122_s28  ;;  %4671 = vmatprep.mubr.msk.bf16.mxu1 %vm1866_vm2, %v3835_v24  ;;  %v7691_v56 = vpop.permute.xlu0 %5820  ;;  %v6074_v24 = vpack.i.bf16 %v2632_v23, %v2631_v47  ;;  %v2422_v25 = vld [vmem:[#allocation3 + $0xa8] sm:$0xff]  ;;  %v6097_v47 = vld [vmem:[%s8058_s5] sm:$0xff]   ;;  %v5752_v23 = vunpack.i.l.bf16 %v7585_v44 }
 0x298   : > { %v3736_v0 = vsel %vm3723_vm14, %v3703_v55, %v5792_v13  ;;  %v3737_v29 = vsel %vm3723_vm14, %v3704_v30, %v5793_v22  ;;  %v5796_v48 = vpop.permute.xlu1 %5795  ;;  %v3837_v41 = vpack.c.bf16 %v2680_v62, %v2679_v16  ;;  %v2423_v22 = vld [vmem:[#allocation3 + $0xb0] sm:$0xff]  ;;  %v5802_v55 = vunpack.i.l.bf16 %v7657_v18  ;;  %4798 = vmatprep.subr.bf16.mxu0 %v6097_v47 }
 0x299   : > { %v3769_v9 = vsel %vm3756_vm15, %v3736_v0, %v5737_v38  ;;  %v3770_v32 = vsel %vm3756_vm15, %v3737_v29, %v5738_v4  ;;  %v5798_v57 = vunpack.i.h.bf16 %v5796_v48  ;;  %v5797_v52 = vunpack.i.l.bf16 %v5796_v48  ;;  %4799 = vmatpush3.bf16.msra.mxu0 %v6097_v47 }
 0x29a   : > { %6070 = vrot.lane.b32.xlu1 %v6069_v8, %s6126_s23  ;;  %v3802_v42 = vsel %vm3789_vm0, %v3769_v9, %v5742_v31  ;;  %v3803_v63 = vsel %vm3789_vm0, %v3770_v32, %v5743_v45  ;;  %v5803_v38 = vunpack.i.h.bf16 %v7657_v18  ;;  %v5748_v0 = vunpack.i.h.bf16 %v7605_v12 }
 0x29b   : > { %6065 = vrot.lane.b32.xlu0 %v6044_v21, %s6124_s19  ;;  %v7704_v1 = vpop.permute.xlu0 %5830  ;;  %v3834_v51 = vpack.c.bf16 %v3803_v63, %v3802_v42  ;;  %v3608_v13 = vsel %vm1866_vm2, %v2423_v22, %v5798_v57  ;;  %v3607_v4 = vsel %vm1866_vm2, %v2422_v25, %v5797_v52  ;;  %v5747_v29 = vunpack.i.l.bf16 %v7605_v12 }
 0x29c   : > { %v7706_v7 = vpop.permute.xlu1 %5805  ;;  %v3639_v30 = vsel %vm1998_vm9, %v3607_v4, %v5802_v55  ;;  %v3640_v10 = vsel %vm1998_vm9, %v3608_v13, %v5803_v38  ;;  %v5753_v18 = vunpack.i.h.bf16 %v7585_v44  ;;  %v5762_v62 = vunpack.i.l.bf16 %v7597_v6  ;;  %v6098_v44 = vld [vmem:[%s8058_s5 + $0x8] sm:$0xff]  }
 0x29d   : > { %v3672_v48 = vsel %vm3657_vm12, %v3639_v30, %v5747_v29  ;;  %v3673_v8 = vsel %vm3657_vm12, %v3640_v10, %v5748_v0  ;;  %v5768_v57 = vunpack.i.h.bf16 %v7635_v19  ;;  %v5767_v52 = vunpack.i.l.bf16 %v7635_v19  ;;  %v2681_v4 = vld [vmem:[#allocation3 + $0xf2] sm:$0xff]  ;;  %v2682_v38 = vld [vmem:[#allocation3 + $0xfa] sm:$0xff]  ;;  %4800 = vmatprep.subr.bf16.mxu0 %v6098_v44  ;;  %v2425_v0 = vld [vmem:[#allocation3 + $0xc8] sm:$0xff] }
 0x29e   : > { %4062 = vmatmul.mubr.bf16.gmra.mrb[20].mxu1 %v3834_v51  ;;  %6080 = vrot.lane.b32.xlu1 %v6079_v26, %s6128_s13  ;;  %v3705_v63 = vsel %vm3690_vm13, %v3672_v48, %v5752_v23  ;;  %v3706_v12 = vsel %vm3690_vm13, %v3673_v8, %v5753_v18  ;;  %v5758_v26 = vunpack.i.h.bf16 %v7626_v37  ;;  %v5757_v51 = vunpack.i.l.bf16 %v7626_v37  ;;  %v2424_v37 = vld [vmem:[#allocation3 + $0xc0] sm:$0xff]  ;;  %s4704_s13 = sshll.u32 %s8064_s10, 4 }
 0x29f   : > { %6075 = vrot.lane.b32.xlu0 %v6074_v24, %s6127_s29  ;;  %4672 = vmatprep.mubr.msk.bf16.mxu1 %vm1866_vm2, %v3837_v41  ;;  %v5841_v45 = vpop.permute.xlu0 %5840  ;;  %v5763_v24 = vunpack.i.h.bf16 %v7597_v6  ;;  %v3609_v19 = vsel %vm1866_vm2, %v2424_v37, %v5762_v62  ;;  %s332_s16 = scalar_lea.vmem %s8062_s9, %s4704_s13 }
 0x2a0   : > { %v7711_v21 = vpop.permute.xlu1 %5815  ;;  %v5843_v32 = vunpack.i.h.bf16 %v5841_v45  ;;  %v5842_v42 = vunpack.i.l.bf16 %v5841_v45  ;;  %v3738_v45 = vsel %vm3723_vm14, %v3705_v63, %v5757_v51  ;;  %v3739_v25 = vsel %vm3723_vm14, %v3706_v12, %v5758_v26  ;;  %4801 = vmatpush3.bf16.msra.mxu0 %v6098_v44 }
 0x2a1   : > { %v3610_v8 = vsel %vm1866_vm2, %v2425_v0, %v5763_v24  ;;  %v3641_v47 = vsel %vm1998_vm9, %v3609_v19, %v5767_v52  ;;  %v5812_v24 = vunpack.i.l.bf16 %v7672_v15  ;;  %v5823_v52 = vunpack.i.h.bf16 %v7691_v56  ;;  %v2426_v0 = vld [vmem:[#allocation3 + $0xd8] sm:$0xff]  ;;  %v2427_v19 = vld [vmem:[#allocation3 + $0xe0] sm:$0xff] }
 0x2a2   : > { %v3771_v55 = vsel %vm3756_vm15, %v3738_v45, %v5842_v42  ;;  %v3772_v30 = vsel %vm3756_vm15, %v3739_v25, %v5843_v32  ;;  %v3839_v42 = vpack.c.bf16 %v2682_v38, %v2681_v4  ;;  %v3642_v32 = vsel %vm1998_vm9, %v3610_v8, %v5768_v57 }
 0x2a3   : > { %v5851_v31 = vpop.permute.xlu0 %5850  ;;  %v5808_v57 = vunpack.i.h.bf16 %v7706_v7  ;;  %v5817_v37 = vunpack.i.l.bf16 %v7711_v21 }
 0x2a4   : > { %v7719_v49 = vpop.permute.xlu1 %5825  ;;  %v5853_v6 = vunpack.i.h.bf16 %v5851_v31  ;;  %v5852_v10 = vunpack.i.l.bf16 %v5851_v31  ;;  %v5813_v31 = vunpack.i.h.bf16 %v7672_v15  ;;  %v5818_v15 = vunpack.i.h.bf16 %v7711_v21 }
 0x2a5   : > { %v5822_v21 = vunpack.i.l.bf16 %v7691_v56 }
 0x2a6   : > { %v3674_v62 = vsel %vm3657_vm12, %v3641_v47, %v5852_v10  ;;  %v3675_v51 = vsel %vm3657_vm12, %v3642_v32, %v5853_v6 }
 0x2a7   : > { %v5861_v16 = vpop.permute.xlu0 %5860 }
 0x2a8   : > { %v7730_v9 = vpop.permute.xlu1 %5835  ;;  %v5863_v44 = vunpack.i.h.bf16 %v5861_v16 }
 0x2ab   : > { %v5871_v18 = vpop.permute.xlu0 %5870 }
 0x2ac   : > { %v5846_v41 = vpop.permute.xlu1 %5845  ;;  %v5873_v6 = vunpack.i.h.bf16 %v5871_v18  ;;  %v5872_v10 = vunpack.i.l.bf16 %v5871_v18 }
 0x2ad   : > { %v5848_v22 = vunpack.i.h.bf16 %v5846_v41  ;;  %v5847_v13 = vunpack.i.l.bf16 %v5846_v41  ;;  %v5862_v41 = vunpack.i.l.bf16 %v5861_v16 }
 0x2af   : > { %v3804_v29 = vsel %vm3789_vm0, %v3771_v55, %v5847_v13  ;;  %v3805_v48 = vsel %vm3789_vm0, %v3772_v30, %v5848_v22  ;;  %v5807_v22 = vunpack.i.l.bf16 %v7706_v7 }
 0x2b0   : > { %v5856_v23 = vpop.permute.xlu1 %5855  ;;  %v3836_v63 = vpack.c.bf16 %v3805_v48, %v3804_v29 }
 0x2b1   : > { %v5858_v12 = vunpack.i.h.bf16 %v5856_v23  ;;  %v5857_v26 = vunpack.i.l.bf16 %v5856_v23 }
 0x2b2   : > { %4070 = vmatmul.mubr.bf16.gmra.mrb[24].mxu1 %v3836_v63 }
 0x2b3   : > { %v3707_v45 = vsel %vm3690_vm13, %v3674_v62, %v5857_v26  ;;  %v3708_v25 = vsel %vm3690_vm13, %v3675_v51, %v5858_v12  ;;  %4673 = vmatprep.mubr.msk.bf16.mxu1 %vm1866_vm2, %v3839_v42  ;;  %v5828_v26 = vunpack.i.h.bf16 %v7719_v49  ;;  %v5827_v62 = vunpack.i.l.bf16 %v7719_v49 }
 0x2b4   : > { %v3740_v13 = vsel %vm3723_vm14, %v3707_v45, %v5862_v41  ;;  %v3741_v4 = vsel %vm3723_vm14, %v3708_v25, %v5863_v44  ;;  %v5866_v16 = vpop.permute.xlu1 %5865  ;;  %v5881_v38 = vpop.permute.xlu0 %5880  ;;  %v5833_v49 = vunpack.i.h.bf16 %v7704_v1  ;;  %v5832_v45 = vunpack.i.l.bf16 %v7704_v1 }
 0x2b5   : > { %v5868_v55 = vunpack.i.h.bf16 %v5866_v16  ;;  %v5867_v30 = vunpack.i.l.bf16 %v5866_v16  ;;  %v3773_v29 = vsel %vm3756_vm15, %v3740_v13, %v5807_v22  ;;  %v3774_v7 = vsel %vm3756_vm15, %v3741_v4, %v5808_v57 }
 0x2b6   : > { %v3806_v47 = vsel %vm3789_vm0, %v3773_v29, %v5812_v24  ;;  %v3807_v23 = vsel %vm3789_vm0, %v3774_v7, %v5813_v31  ;;  %v5883_v25 = vunpack.i.h.bf16 %v5881_v38  ;;  %v5882_v57 = vunpack.i.l.bf16 %v5881_v38 }
 0x2b7   : > { %v3612_v48 = vsel %vm1866_vm2, %v2427_v19, %v5868_v55  ;;  %v3611_v8 = vsel %vm1866_vm2, %v2426_v0, %v5867_v30  ;;  %v3838_v12 = vpack.c.bf16 %v3807_v23, %v3806_v47  ;;  %v5837_v4 = vunpack.i.l.bf16 %v7730_v9  ;;  %v2428_v55 = vld [vmem:[#allocation3 + $0xf0] sm:$0xff]  ;;  %v2429_v30 = vld [vmem:[#allocation3 + $0xf8] sm:$0xff] }
 0x2b8   : > { %v3643_v63 = vsel %vm1998_vm9, %v3611_v8, %v5872_v10  ;;  %v3644_v18 = vsel %vm1998_vm9, %v3612_v48, %v5873_v6  ;;  %v5876_v42 = vpop.permute.xlu1 %5875  ;;  %v5891_v32 = vpop.permute.xlu0 %5890  ;;  %v3614_v6 = vsel %vm1866_vm2, %v2429_v30, %v5833_v49  ;;  %v3613_v10 = vsel %vm1866_vm2, %v2428_v55, %v5832_v45 }
 0x2b9   : > { %v3676_v51 = vsel %vm3657_vm12, %v3643_v63, %v5817_v37  ;;  %v3677_v44 = vsel %vm3657_vm12, %v3644_v18, %v5818_v15  ;;  %v5893_v60 = vunpack.i.h.bf16 %v5891_v32  ;;  %v3645_v19 = vsel %vm1998_vm9, %v3613_v10, %v5837_v4 }
 0x2ba   : > { %v3709_v41 = vsel %vm3690_vm13, %v3676_v51, %v5822_v21  ;;  %v3710_v31 = vsel %vm3690_vm13, %v3677_v44, %v5823_v52  ;;  %4078 = vmatmul.mubr.bf16.gmra.mrb[28].mxu1 %v3838_v12  ;;  %v5838_v52 = vunpack.i.h.bf16 %v7730_v9  ;;  %v5878_v12 = vunpack.i.h.bf16 %v5876_v42 }
 0x2bb   : > { %v3742_v56 = vsel %vm3723_vm14, %v3709_v41, %v5827_v62  ;;  %v3743_v24 = vsel %vm3723_vm14, %v3710_v31, %v5828_v26  ;;  %4674 = vmatprep.mubr.msk.bf16.mxu1 %vm1866_vm2, %v3841_v43  ;;  %v5892_v43 = vunpack.i.l.bf16 %v5891_v32  ;;  %v5877_v26 = vunpack.i.l.bf16 %v5876_v42 }
 0x2bc   : > { %v5886_v22 = vpop.permute.xlu1 %5885  ;;  %v5901_v13 = vpop.permute.xlu0 %5900  ;;  %v3775_v37 = vsel %vm3756_vm15, %v3742_v56, %v5882_v57  ;;  %v3776_v46 = vsel %vm3756_vm15, %v3743_v24, %v5883_v25  ;;  %v3646_v29 = vsel %vm1998_vm9, %v3614_v6, %v5838_v52  ;;  %v2430_v57 = vld [vmem:[#allocation3 + $0x108] sm:$0xff] }
 0x2bd   : > { %v5888_v16 = vunpack.i.h.bf16 %v5886_v22  ;;  %v5887_v15 = vunpack.i.l.bf16 %v5886_v22  ;;  %v3678_v47 = vsel %vm3657_vm12, %v3645_v19, %v5892_v43  ;;  %v3679_v23 = vsel %vm3657_vm12, %v3646_v29, %v5893_v60  ;;  %v2431_v22 = vld [vmem:[#allocation3 + $0x110] sm:$0xff] }
 0x2be   : > { %v5903_v21 = vunpack.i.h.bf16 %v5901_v13  ;;  %v5902_v63 = vunpack.i.l.bf16 %v5901_v13 }
 0x2bf   : > { %v3808_v1 = vsel %vm3789_vm0, %v3775_v37, %v5887_v15  ;;  %v3809_v38 = vsel %vm3789_vm0, %v3776_v46, %v5888_v16 }
 0x2c0   : > { %v5896_v0 = vpop.permute.xlu1 %5895  ;;  %v3840_v9 = vpack.c.bf16 %v3809_v38, %v3808_v1  ;;  %v5906_v8 = vpop.permute.xlu0 %5905 }
 0x2c1   : > { %v5898_v7 = vunpack.i.h.bf16 %v5896_v0  ;;  %v5897_v48 = vunpack.i.l.bf16 %v5896_v0  ;;  %v5908_v41 = vunpack.i.h.bf16 %v5906_v8  ;;  %v5907_v31 = vunpack.i.l.bf16 %v5906_v8 }
 0x2c2   : > { %4086 = vmatmul.mubr.bf16.gmra.mrb[32].mxu1 %v3840_v9 }
 0x2c3   : > { %v3711_v18 = vsel %vm3690_vm13, %v3678_v47, %v5897_v48  ;;  %v3712_v32 = vsel %vm3690_vm13, %v3679_v23, %v5898_v7  ;;  %4675 = vmatprep.mubr.msk.bf16.mxu1 %vm1866_vm2, %v3843_v58 }
 0x2c4   : > { %v3744_v62 = vsel %vm3723_vm14, %v3711_v18, %v5902_v63  ;;  %v3745_v51 = vsel %vm3723_vm14, %v3712_v32, %v5903_v21  ;;  %v5911_v44 = vpop.permute.xlu1 %5910  ;;  %v5916_v49 = vpop.permute.xlu0 %5915 }
 0x2c5   : > { %v3777_v56 = vsel %vm3756_vm15, %v3744_v62, %v5877_v26  ;;  %v3778_v24 = vsel %vm3756_vm15, %v3745_v51, %v5878_v12  ;;  %v5913_v58 = vunpack.i.h.bf16 %v5911_v44  ;;  %v5912_v25 = vunpack.i.l.bf16 %v5911_v44 }
 0x2c6   : > { %v3810_v45 = vsel %vm3789_vm0, %v3777_v56, %v5907_v31  ;;  %v3811_v53 = vsel %vm3789_vm0, %v3778_v24, %v5908_v41  ;;  %v5918_v13 = vunpack.i.h.bf16 %v5916_v49  ;;  %v5917_v52 = vunpack.i.l.bf16 %v5916_v49  ;;  %v2432_v41 = vld [vmem:[#allocation3 + $0x120] sm:$0xff]  ;;  %v2433_v31 = vld [vmem:[#allocation3 + $0x128] sm:$0xff] }
 0x2c7   : > { %v3842_v17 = vpack.c.bf16 %v3811_v53, %v3810_v45  ;;  %v3616_v4 = vsel %vm1866_vm2, %v2431_v22, %v5913_v58  ;;  %v3615_v16 = vsel %vm1866_vm2, %v2430_v57, %v5912_v25 }
 0x2c8   : > { %v5921_v42 = vpop.permute.xlu1 %5920  ;;  %v5926_v46 = vpop.permute.xlu0 %5925  ;;  %v3648_v43 = vsel %vm1998_vm9, %v3616_v4, %v5918_v13  ;;  %v3647_v55 = vsel %vm1998_vm9, %v3615_v16, %v5917_v52 }
 0x2c9   : > { %v5923_v15 = vunpack.i.h.bf16 %v5921_v42  ;;  %v5922_v37 = vunpack.i.l.bf16 %v5921_v42  ;;  %v5928_v30 = vunpack.i.h.bf16 %v5926_v46  ;;  %v5927_v36 = vunpack.i.l.bf16 %v5926_v46 }
 0x2ca   : > { %4094 = vmatmul.mubr.bf16.gmra.mrb[36].mxu1 %v3842_v17 }
 0x2cb   : > { %4676 = vmatprep.mubr.msk.bf16.mxu1 %vm1866_vm2, %v3845_v35  ;;  %v3680_v61 = vsel %vm3657_vm12, %v3647_v55, %v5922_v37  ;;  %v3681_v35 = vsel %vm3657_vm12, %v3648_v43, %v5923_v15 }
 0x2cc   : > { %v5931_v60 = vpop.permute.xlu1 %5930  ;;  %v3713_v6 = vsel %vm3690_vm13, %v3680_v61, %v5927_v36  ;;  %v3714_v10 = vsel %vm3690_vm13, %v3681_v35, %v5928_v30 }
 0x2cd   : > { %v5933_v1 = vunpack.i.h.bf16 %v5931_v60  ;;  %v5932_v38 = vunpack.i.l.bf16 %v5931_v60 }
 0x2cf   : > { %v3746_v8 = vsel %vm3723_vm14, %v3713_v6, %v5932_v38  ;;  %v3747_v47 = vsel %vm3723_vm14, %v3714_v10, %v5933_v1 }
 0x2d4   : > { %v5941_v0 = vpop.permute.xlu1 %5940 }
 0x2d5   : > { %v5936_v9 = vpop.permute.xlu0 %5935  ;;  %v5943_v19 = vunpack.i.h.bf16 %v5941_v0  ;;  %v5942_v29 = vunpack.i.l.bf16 %v5941_v0 }
 0x2d6   : > { %v5938_v7 = vunpack.i.h.bf16 %v5936_v9  ;;  %v5937_v48 = vunpack.i.l.bf16 %v5936_v9 }
 0x2d8   : > { %v3779_v23 = vsel %vm3756_vm15, %v3746_v8, %v5937_v48  ;;  %v3780_v21 = vsel %vm3756_vm15, %v3747_v47, %v5938_v7  ;;  %v5951_v63 = vpop.permute.xlu1 %5950 }
 0x2d9   : > { %v5946_v18 = vpop.permute.xlu0 %5945  ;;  %v3812_v32 = vsel %vm3789_vm0, %v3779_v23, %v5942_v29  ;;  %v3813_v12 = vsel %vm3789_vm0, %v3780_v21, %v5943_v19  ;;  %v5953_v51 = vunpack.i.h.bf16 %v5951_v63  ;;  %v5952_v44 = vunpack.i.l.bf16 %v5951_v63 }
 0x2da   : > { %v5948_v26 = vunpack.i.h.bf16 %v5946_v18  ;;  %v5947_v62 = vunpack.i.l.bf16 %v5946_v18  ;;  %v3844_v56 = vpack.c.bf16 %v3813_v12, %v3812_v32 }
 0x2dc   : > { %v3618_v24 = vsel %vm1866_vm2, %v2433_v31, %v5948_v26  ;;  %v3617_v49 = vsel %vm1866_vm2, %v2432_v41, %v5947_v62  ;;  %4102 = vmatmul.mubr.bf16.gmra.mrb[40].mxu1 %v3844_v56  ;;  %v5961_v45 = vpop.permute.xlu1 %5960 }
 0x2dd   : > { %v5956_v53 = vpop.permute.xlu0 %5955  ;;  %4677 = vmatprep.mubr.msk.bf16.mxu1 %vm1866_vm2, %v3847_v39  ;;  %v5963_v25 = vunpack.i.h.bf16 %v5961_v45  ;;  %v5962_v42 = vunpack.i.l.bf16 %v5961_v45  ;;  %v3649_v57 = vsel %vm1998_vm9, %v3617_v49, %v5952_v44  ;;  %v3650_v22 = vsel %vm1998_vm9, %v3618_v24, %v5953_v51 }
 0x2de   : > { %v5958_v17 = vunpack.i.h.bf16 %v5956_v53  ;;  %v5957_v58 = vunpack.i.l.bf16 %v5956_v53 }
 0x2e0   : > { %v3682_v13 = vsel %vm3657_vm12, %v3649_v57, %v5957_v58  ;;  %v3683_v52 = vsel %vm3657_vm12, %v3650_v22, %v5958_v17  ;;  %v5971_v4 = vpop.permute.xlu1 %5970 }
 0x2e1   : > { %v5966_v16 = vpop.permute.xlu0 %5965  ;;  %v5973_v46 = vunpack.i.h.bf16 %v5971_v4  ;;  %v5972_v60 = vunpack.i.l.bf16 %v5971_v4  ;;  %v3715_v11 = vsel %vm3690_vm13, %v3682_v13, %v5962_v42  ;;  %v3716_v28 = vsel %vm3690_vm13, %v3683_v52, %v5963_v25 }
 0x2e2   : > { %v5968_v15 = vunpack.i.h.bf16 %v5966_v16  ;;  %v5967_v37 = vunpack.i.l.bf16 %v5966_v16 }
 0x2e4   : > { %v3748_v39 = vsel %vm3723_vm14, %v3715_v11, %v5967_v37  ;;  %v3749_v43 = vsel %vm3723_vm14, %v3716_v28, %v5968_v15  ;;  %v5981_v55 = vpop.permute.xlu1 %5980 }
 0x2e5   : > { %v5976_v30 = vpop.permute.xlu0 %5975  ;;  %v3781_v35 = vsel %vm3756_vm15, %v3748_v39, %v5972_v60  ;;  %v3782_v1 = vsel %vm3756_vm15, %v3749_v43, %v5973_v46  ;;  %v5983_v19 = vunpack.i.h.bf16 %v5981_v55  ;;  %v5982_v29 = vunpack.i.l.bf16 %v5981_v55 }
 0x2e6   : > { %v5978_v36 = vunpack.i.h.bf16 %v5976_v30  ;;  %v5977_v61 = vunpack.i.l.bf16 %v5976_v30 }
 0x2e7   : > { %v3620_v47 = vsel %vm1866_vm2, %v7486_v59, %v5983_v19  ;;  %v3619_v23 = vsel %vm1866_vm2, %v7480_v3, %v5982_v29  ;;  %v2696_v19 = vld [vmem:[#allocation3 + $0x1a2] sm:$0xff] }
 0x2e8   : > { %v3814_v38 = vsel %vm3789_vm0, %v3781_v35, %v5977_v61  ;;  %v3815_v6 = vsel %vm3789_vm0, %v3782_v1, %v5978_v36  ;;  %v5991_v9 = vpop.permute.xlu1 %5990 }
 0x2e9   : > { %v5986_v10 = vpop.permute.xlu0 %5985  ;;  %v3846_v0 = vpack.c.bf16 %v3815_v6, %v3814_v38  ;;  %v5993_v21 = vunpack.i.h.bf16 %v5991_v9  ;;  %v5992_v63 = vunpack.i.l.bf16 %v5991_v9  ;;  %v2695_v9 = vld [vmem:[#allocation3 + $0x19a] sm:$0xff] }
 0x2ea   : > { %v5988_v7 = vunpack.i.h.bf16 %v5986_v10  ;;  %v5987_v48 = vunpack.i.l.bf16 %v5986_v10 }
 0x2eb   : > { %4110 = vmatmul.mubr.bf16.gmra.mrb[44].mxu1 %v3846_v0 }
 0x2ec   : > { %4678 = vmatprep.mubr.msk.bf16.mxu1 %vm1866_vm2, %v3849_v27  ;;  %v3652_v18 = vsel %vm1998_vm9, %v3620_v47, %v5988_v7  ;;  %v3651_v32 = vsel %vm1998_vm9, %v3619_v23, %v5987_v48  ;;  %v6001_v12 = vpop.permute.xlu1 %6000 }
 0x2ed   : > { %v5996_v8 = vpop.permute.xlu0 %5995  ;;  %v6003_v51 = vunpack.i.h.bf16 %v6001_v12  ;;  %v6002_v33 = vunpack.i.l.bf16 %v6001_v12  ;;  %v3684_v5 = vsel %vm3657_vm12, %v3651_v32, %v5992_v63  ;;  %v3685_v27 = vsel %vm3657_vm12, %v3652_v18, %v5993_v21 }
 0x2ee   : > { %v5998_v26 = vunpack.i.h.bf16 %v5996_v8  ;;  %v5997_v62 = vunpack.i.l.bf16 %v5996_v8  ;;  %v3853_v21 = vpack.c.bf16 %v2696_v19, %v2695_v9 }
 0x2f0   : > { %v3717_v59 = vsel %vm3690_vm13, %v3684_v5, %v5997_v62  ;;  %v3718_v44 = vsel %vm3690_vm13, %v3685_v27, %v5998_v26 }
 0x2f1   : > { %v3750_v45 = vsel %vm3723_vm14, %v3717_v59, %v6002_v33  ;;  %v3751_v53 = vsel %vm3723_vm14, %v3718_v44, %v6003_v51 }
 0x2f4   : > { %v6011_v3 = vpop.permute.xlu1 %6010 }
 0x2f5   : > { %v6006_v41 = vpop.permute.xlu0 %6005  ;;  %v6013_v31 = vunpack.i.h.bf16 %v6011_v3  ;;  %v6012_v56 = vunpack.i.l.bf16 %v6011_v3 }
 0x2f6   : > { %v6008_v24 = vunpack.i.h.bf16 %v6006_v41  ;;  %v6007_v49 = vunpack.i.l.bf16 %v6006_v41 }
 0x2f8   : > { %v3783_v17 = vsel %vm3756_vm15, %v3750_v45, %v6007_v49  ;;  %v3784_v58 = vsel %vm3756_vm15, %v3751_v53, %v6008_v24  ;;  %v6021_v25 = vpop.permute.xlu1 %6020 }
 0x2f9   : > { %v6016_v42 = vpop.permute.xlu0 %6015  ;;  %v3816_v57 = vsel %vm3789_vm0, %v3783_v17, %v6012_v56  ;;  %v3817_v22 = vsel %vm3789_vm0, %v3784_v58, %v6013_v31  ;;  %v6023_v4 = vunpack.i.h.bf16 %v6021_v25  ;;  %v6022_v16 = vunpack.i.l.bf16 %v6021_v25 }
 0x2fa   : > { %v6018_v13 = vunpack.i.h.bf16 %v6016_v42  ;;  %v6017_v52 = vunpack.i.l.bf16 %v6016_v42  ;;  %v3848_v15 = vpack.c.bf16 %v3817_v22, %v3816_v57  ;;  %v7904_v57 = vld [vmem:[%s8057_s4] ss:$0 sm:$0xff] }
 0x2fc   : > { %v3622_v37 = vsel %vm1866_vm2, %v7530_v40, %v6018_v13  ;;  %v3621_v46 = vsel %vm1866_vm2, %v7541_v54, %v6017_v52  ;;  %4118 = vmatmul.mubr.bf16.gmra.mrb[48].mxu1 %v3848_v15  ;;  %v6031_v60 = vpop.permute.xlu1 %6030 }
 0x2fd   : > { %v6026_v11 = vpop.permute.xlu0 %6025  ;;  %4679 = vmatprep.mubr.msk.bf16.mxu1 %vm1866_vm2, %v3851_v2  ;;  %v6033_v43 = vunpack.i.h.bf16 %v6031_v60  ;;  %v6032_v55 = vunpack.i.l.bf16 %v6031_v60  ;;  %v3653_v30 = vsel %vm1998_vm9, %v3621_v46, %v6022_v16  ;;  %v3654_v36 = vsel %vm1998_vm9, %v3622_v37, %v6023_v4 }
 0x2fe   : > { %v6028_v28 = vunpack.i.h.bf16 %v6026_v11  ;;  %v6027_v39 = vunpack.i.l.bf16 %v6026_v11 }
 0x300   : > { %v3686_v40 = vsel %vm3657_vm12, %v3653_v30, %v6027_v39  ;;  %v3687_v54 = vsel %vm3657_vm12, %v3654_v36, %v6028_v28  ;;  %v6041_v61 = vpop.permute.xlu1 %6040 }
 0x301   : > { %v6036_v35 = vpop.permute.xlu0 %6035  ;;  %v6043_v6 = vunpack.i.h.bf16 %v6041_v61  ;;  %v6042_v10 = vunpack.i.l.bf16 %v6041_v61  ;;  %v3719_v14 = vsel %vm3690_vm13, %v3686_v40, %v6032_v55  ;;  %v3720_v50 = vsel %vm3690_vm13, %v3687_v54, %v6033_v43 }
 0x302   : > { %v6038_v1 = vunpack.i.h.bf16 %v6036_v35  ;;  %v6037_v38 = vunpack.i.l.bf16 %v6036_v35 }
 0x304   : > { %v3752_v2 = vsel %vm3723_vm14, %v3719_v14, %v6037_v38  ;;  %v3753_v0 = vsel %vm3723_vm14, %v3720_v50, %v6038_v1  ;;  %v6051_v29 = vpop.permute.xlu1 %6050 }
 0x305   : > { %v6046_v7 = vpop.permute.xlu0 %6045  ;;  %v3785_v47 = vsel %vm3756_vm15, %v3752_v2, %v6042_v10  ;;  %v3786_v23 = vsel %vm3756_vm15, %v3753_v0, %v6043_v6  ;;  %v6053_v63 = vunpack.i.h.bf16 %v6051_v29  ;;  %v6052_v18 = vunpack.i.l.bf16 %v6051_v29 }
 0x306   : > { %v6048_v48 = vunpack.i.h.bf16 %v6046_v7  ;;  %v6047_v8 = vunpack.i.l.bf16 %v6046_v7 }
 0x307   : > { %v3624_v27 = vsel %vm1866_vm2, %v7601_v20, %v6053_v63  ;;  %v3623_v59 = vsel %vm1866_vm2, %v7599_v34, %v6052_v18 }
 0x308   : > { %v3818_v32 = vsel %vm3789_vm0, %v3785_v47, %v6047_v8  ;;  %v3819_v12 = vsel %vm3789_vm0, %v3786_v23, %v6048_v48  ;;  %v6061_v26 = vpop.permute.xlu1 %6060 }
 0x309   : > { %v3850_v62 = vpack.c.bf16 %v3819_v12, %v3818_v32  ;;  %v6056_v51 = vpop.permute.xlu0 %6055  ;;  %v6063_v44 = vunpack.i.h.bf16 %v6061_v26  ;;  %v6062_v3 = vunpack.i.l.bf16 %v6061_v26 }
 0x30a   : > { %v6058_v33 = vunpack.i.h.bf16 %v6056_v51  ;;  %v6057_v5 = vunpack.i.l.bf16 %v6056_v51 }
 0x30b   : > { %4126 = vmatmul.mubr.bf16.gmra.mrb[52].mxu1 %v3850_v62 }
 0x30c   : > { %4680 = vmatprep.mubr.msk.bf16.mxu1 %vm1866_vm2, %v3853_v21  ;;  %v3656_v41 = vsel %vm1998_vm9, %v3624_v27, %v6058_v33  ;;  %v3655_v31 = vsel %vm1998_vm9, %v3623_v59, %v6057_v5  ;;  %v6071_v56 = vpop.permute.xlu1 %6070 }
 0x30d   : > { %v6066_v24 = vpop.permute.xlu0 %6065  ;;  %v6073_v53 = vunpack.i.h.bf16 %v6071_v56  ;;  %v6072_v17 = vunpack.i.l.bf16 %v6071_v56  ;;  %v3688_v58 = vsel %vm3657_vm12, %v3655_v31, %v6062_v3  ;;  %v3689_v20 = vsel %vm3657_vm12, %v3656_v41, %v6063_v44 }
 0x30e   : > { %v6068_v49 = vunpack.i.h.bf16 %v6066_v24  ;;  %v6067_v45 = vunpack.i.l.bf16 %v6066_v24 }
 0x310   : > { %v3721_v34 = vsel %vm3690_vm13, %v3688_v58, %v6067_v45  ;;  %v3722_v25 = vsel %vm3690_vm13, %v3689_v20, %v6068_v49  ;;  %v6081_v42 = vpop.permute.xlu1 %6080 }
 0x311   : > { %v6076_v22 = vpop.permute.xlu0 %6075  ;;  %v6083_v13 = vunpack.i.h.bf16 %v6081_v42  ;;  %v6082_v52 = vunpack.i.l.bf16 %v6081_v42  ;;  %v3754_v37 = vsel %vm3723_vm14, %v3721_v34, %v6072_v17  ;;  %v3755_v46 = vsel %vm3723_vm14, %v3722_v25, %v6073_v53 }
 0x312   : > { %v6078_v4 = vunpack.i.h.bf16 %v6076_v22  ;;  %v6077_v16 = vunpack.i.l.bf16 %v6076_v22 }
 0x313   : > { %v4015_v15 = vpop.f32.mrb[32].mxu0 }
 0x314   : > { %v4016_v60 = vadd.f32 %v7904_v57, %v4015_v15  ;;  %v4017_v11 = vpop.f32.mrb[33].mxu0  ;;  %v3787_v28 = vsel %vm3756_vm15, %v3754_v37, %v6077_v16  ;;  %v3788_v39 = vsel %vm3756_vm15, %v3755_v46, %v6078_v4 }
 0x315   : > { %v4018_v43 = vpop.f32.mrb[34].mxu0  ;;  %v3820_v36 = vsel %vm3789_vm0, %v3787_v28, %v6082_v52  ;;  %v3821_v40 = vsel %vm3789_vm0, %v3788_v39, %v6083_v13 }
 0x316   : > { %v4019_v55 = vadd.f32 %v7904_v57, %v4018_v43  ;;  %v4020_v30 = vpop.f32.mrb[35].mxu0  ;;  %v3852_v54 = vpack.c.bf16 %v3821_v40, %v3820_v36  ;;  %v4142_v61 = vmax.f32 %v4016_v60, 0.0 }
 0x318   : > { %v4143_v35 = vmax.f32 %v4019_v55, 0.0  ;;  %4134 = vmatmul.mubr.bf16.gmra.mrb[56].mxu1 %v3852_v54 }
 0x31a   : > { %v4174_v1 = vpack.c.bf16 %v4143_v35, %v4142_v61 }
 0x31c   : > { %4802 = vmatprep.mubr.msk.bf16.mxu0 %vm1998_vm9, %v4174_v1 }
 0x325   : > { %v4023_v38 = vpop.f32.mrb[0].mxu1 }
 0x326   : > { %v4024_v6 = vadd.f32 %v7904_v57, %v4023_v38  ;;  %v4025_v10 = vpop.f32.mrb[1].mxu1 }
 0x327   : > { %v4026_v14 = vpop.f32.mrb[2].mxu1 }
 0x328   : > { %v4027_v50 = vadd.f32 %v7904_v57, %v4026_v14  ;;  %v4028_v2 = vpop.f32.mrb[3].mxu1  ;;  %v4144_v0 = vmax.f32 %v4024_v6, 0.0 }
 0x32a   : > { %v4145_v9 = vmax.f32 %v4027_v50, 0.0 }
 0x32c   : > { %v4175_v19 = vpack.c.bf16 %v4145_v9, %v4144_v0 }
 0x32d   : > { %v4031_v29 = vpop.f32.mrb[4].mxu1 }
 0x32e   : > { %4803 = vmatmul.mubr.msk.bf16.vlgmr.msra.gmra.mrb[36].mxu0 %vm1998_vm9, %v4175_v19  ;;  %v4032_v7 = vadd.f32 %v7904_v57, %v4031_v29  ;;  %v4033_v48 = vpop.f32.mrb[5].mxu1 }
 0x32f   : > { %v4034_v8 = vpop.f32.mrb[6].mxu1 }
 0x330   : > { %v4035_v47 = vadd.f32 %v7904_v57, %v4034_v8  ;;  %v4036_v23 = vpop.f32.mrb[7].mxu1  ;;  %v4146_v21 = vmax.f32 %v4032_v7, 0.0 }
 0x332   : > { %v4147_v63 = vmax.f32 %v4035_v47, 0.0 }
 0x334   : > { %v4176_v18 = vpack.c.bf16 %v4147_v63, %v4146_v21 }
 0x336   : > { %4806 = vmatprep.mubr.msk.bf16.mxu0 %vm1998_vm9, %v4176_v18 }
 0x341   : > { %v4039_v32 = vpop.f32.mrb[8].mxu1 }
 0x342   : > { %v4040_v12 = vadd.f32 %v7904_v57, %v4039_v32  ;;  %v4041_v26 = vpop.f32.mrb[9].mxu1 }
 0x343   : > { %v4042_v62 = vpop.f32.mrb[10].mxu1 }
 0x344   : > { %v4043_v51 = vadd.f32 %v7904_v57, %v4042_v62  ;;  %v4044_v33 = vpop.f32.mrb[11].mxu1  ;;  %v4148_v5 = vmax.f32 %v4040_v12, 0.0 }
 0x346   : > { %v4149_v27 = vmax.f32 %v4043_v51, 0.0 }
 0x348   : > { %v4177_v59 = vpack.c.bf16 %v4149_v27, %v4148_v5 }
 0x34a   : > { %4807 = vmatmul.mubr.msk.bf16.gmra.mrb[40].mxu0 %vm1998_vm9, %v4177_v59  ;;  %v4047_v44 = vpop.f32.mrb[12].mxu1 }
 0x34b   : > { %v4048_v3 = vadd.f32 %v7904_v57, %v4047_v44  ;;  %v4049_v41 = vpop.f32.mrb[13].mxu1 }
 0x34c   : > { %v4050_v31 = vpop.f32.mrb[14].mxu1 }
 0x34d   : > { %v4051_v56 = vadd.f32 %v7904_v57, %v4050_v31  ;;  %v4052_v24 = vpop.f32.mrb[15].mxu1  ;;  %v4150_v49 = vmax.f32 %v4048_v3, 0.0 }
 0x34f   : > { %v4151_v45 = vmax.f32 %v4051_v56, 0.0 }
 0x351   : > { %v4178_v53 = vpack.c.bf16 %v4151_v45, %v4150_v49 }
 0x353   : > { %4810 = vmatprep.mubr.msk.bf16.mxu0 %vm1998_vm9, %v4178_v53 }
 0x369   : > { %v4055_v17 = vpop.f32.mrb[16].mxu1 }
 0x36a   : > { %v4056_v58 = vadd.f32 %v7904_v57, %v4055_v17  ;;  %v4057_v20 = vpop.f32.mrb[17].mxu1 }
 0x36b   : > { %v4058_v34 = vpop.f32.mrb[18].mxu1 }
 0x36c   : > { %v4059_v25 = vadd.f32 %v7904_v57, %v4058_v34  ;;  %v4060_v42 = vpop.f32.mrb[19].mxu1  ;;  %v4152_v22 = vmax.f32 %v4056_v58, 0.0 }
 0x36e   : > { %v4153_v13 = vmax.f32 %v4059_v25, 0.0 }
 0x370   : > { %v4179_v52 = vpack.c.bf16 %v4153_v13, %v4152_v22 }
 0x371   : > { %v4063_v4 = vpop.f32.mrb[20].mxu1 }
 0x372   : > { %v4064_v16 = vadd.f32 %v7904_v57, %v4063_v4  ;;  %v4065_v15 = vpop.f32.mrb[21].mxu1  ;;  %4811 = vmatmul.mubr.msk.bf16.gmra.mrb[44].mxu0 %vm1998_vm9, %v4179_v52 }
 0x373   : > { %v4066_v37 = vpop.f32.mrb[22].mxu1 }
 0x374   : > { %v4067_v46 = vadd.f32 %v7904_v57, %v4066_v37  ;;  %v4068_v60 = vpop.f32.mrb[23].mxu1  ;;  %v4154_v11 = vmax.f32 %v4064_v16, 0.0 }
 0x376   : > { %v4155_v28 = vmax.f32 %v4067_v46, 0.0 }
 0x378   : > { %v4180_v39 = vpack.c.bf16 %v4155_v28, %v4154_v11 }
 0x37a   : > { %4814 = vmatprep.mubr.msk.bf16.mxu0 %vm1998_vm9, %v4180_v39 }
 0x385   : > { %v4071_v43 = vpop.f32.mrb[24].mxu1 }
 0x386   : > { %v4072_v55 = vadd.f32 %v7904_v57, %v4071_v43  ;;  %v4073_v30 = vpop.f32.mrb[25].mxu1 }
 0x387   : > { %v4074_v36 = vpop.f32.mrb[26].mxu1 }
 0x388   : > { %v4075_v40 = vadd.f32 %v7904_v57, %v4074_v36  ;;  %v4076_v54 = vpop.f32.mrb[27].mxu1  ;;  %v4156_v61 = vmax.f32 %v4072_v55, 0.0 }
 0x38a   : > { %v4157_v35 = vmax.f32 %v4075_v40, 0.0 }
 0x38c   : > { %v4181_v1 = vpack.c.bf16 %v4157_v35, %v4156_v61 }
 0x38d   : > { %v4079_v38 = vpop.f32.mrb[28].mxu1 }
 0x38e   : > { %v4080_v6 = vadd.f32 %v7904_v57, %v4079_v38  ;;  %v4081_v10 = vpop.f32.mrb[29].mxu1  ;;  %4815 = vmatmul.mubr.msk.bf16.gmra.mrb[48].mxu0 %vm1998_vm9, %v4181_v1 }
 0x38f   : > { %v4082_v14 = vpop.f32.mrb[30].mxu1 }
 0x390   : > { %v4083_v50 = vadd.f32 %v7904_v57, %v4082_v14  ;;  %v4084_v2 = vpop.f32.mrb[31].mxu1  ;;  %v4158_v0 = vmax.f32 %v4080_v6, 0.0 }
 0x392   : > { %v4159_v9 = vmax.f32 %v4083_v50, 0.0 }
 0x394   : > { %v4182_v19 = vpack.c.bf16 %v4159_v9, %v4158_v0 }
 0x395   : > { %v4087_v29 = vpop.f32.mrb[32].mxu1 }
 0x396   : > { %v4088_v7 = vadd.f32 %v7904_v57, %v4087_v29  ;;  %v4089_v48 = vpop.f32.mrb[33].mxu1  ;;  %4818 = vmatprep.mubr.msk.bf16.mxu0 %vm1998_vm9, %v4182_v19  ;;  %v7963_v29 = vld [vmem:[%s8059_s6] ss:$0 sm:$0xff] }
 0x397   : > { %v4090_v8 = vpop.f32.mrb[34].mxu1 }
 0x398   : > { %v4091_v47 = vadd.f32 %v7904_v57, %v4090_v8  ;;  %v4092_v23 = vpop.f32.mrb[35].mxu1  ;;  %v4160_v21 = vmax.f32 %v4088_v7, 0.0 }
 0x39a   : > { %v4161_v63 = vmax.f32 %v4091_v47, 0.0 }
 0x39c   : > { %v4183_v18 = vpack.c.bf16 %v4161_v63, %v4160_v21 }
 0x39d   : > { %v4095_v32 = vpop.f32.mrb[36].mxu1 }
 0x39e   : > { %v4096_v12 = vadd.f32 %v7904_v57, %v4095_v32  ;;  %v4097_v26 = vpop.f32.mrb[37].mxu1  ;;  %4819 = vmatmul.mubr.msk.bf16.gmra.mrb[52].mxu0 %vm1998_vm9, %v4183_v18 }
 0x39f   : > { %v4098_v62 = vpop.f32.mrb[38].mxu1 }
 0x3a0   : > { %v4099_v51 = vadd.f32 %v7904_v57, %v4098_v62  ;;  %v4100_v33 = vpop.f32.mrb[39].mxu1  ;;  %v4162_v5 = vmax.f32 %v4096_v12, 0.0 }
 0x3a2   : > { %v4163_v27 = vmax.f32 %v4099_v51, 0.0 }
 0x3a4   : > { %v4184_v59 = vpack.c.bf16 %v4163_v27, %v4162_v5 }
 0x3a6   : > { %4822 = vmatprep.mubr.msk.bf16.mxu0 %vm1998_vm9, %v4184_v59 }
 0x3af   : > { %v4103_v44 = vpop.f32.mrb[40].mxu1 }
 0x3b0   : > { %v4104_v3 = vadd.f32 %v7904_v57, %v4103_v44  ;;  %v4105_v41 = vpop.f32.mrb[41].mxu1 }
 0x3b1   : > { %v4106_v31 = vpop.f32.mrb[42].mxu1 }
 0x3b2   : > { %v4107_v56 = vadd.f32 %v7904_v57, %v4106_v31  ;;  %v4108_v24 = vpop.f32.mrb[43].mxu1  ;;  %v4164_v49 = vmax.f32 %v4104_v3, 0.0 }
 0x3b4   : > { %v4165_v45 = vmax.f32 %v4107_v56, 0.0 }
 0x3b6   : > { %v4185_v53 = vpack.c.bf16 %v4165_v45, %v4164_v49 }
 0x3b8   : > { %4823 = vmatmul.mubr.msk.bf16.gmra.mrb[56].mxu0 %vm1998_vm9, %v4185_v53 }
 0x3be   : > { %v4111_v17 = vpop.f32.mrb[44].mxu1 }
 0x3bf   : > { %v4112_v58 = vadd.f32 %v7904_v57, %v4111_v17  ;;  %v4113_v20 = vpop.f32.mrb[45].mxu1 }
 0x3c0   : > { %v4114_v34 = vpop.f32.mrb[46].mxu1 }
 0x3c1   : > { %v4115_v25 = vadd.f32 %v7904_v57, %v4114_v34  ;;  %v4116_v42 = vpop.f32.mrb[47].mxu1  ;;  %v4166_v22 = vmax.f32 %v4112_v58, 0.0 }
 0x3c3   : > { %v4167_v13 = vmax.f32 %v4115_v25, 0.0 }
 0x3c5   : > { %v4186_v52 = vpack.c.bf16 %v4167_v13, %v4166_v22 }
 0x3c7   : > { %4826 = vmatprep.mubr.msk.bf16.mxu0 %vm1998_vm9, %v4186_v52 }
 0x3cf   : > { %v4119_v4 = vpop.f32.mrb[48].mxu1 }
 0x3d0   : > { %v4120_v16 = vadd.f32 %v7904_v57, %v4119_v4  ;;  %v4121_v15 = vpop.f32.mrb[49].mxu1 }
 0x3d1   : > { %v4122_v37 = vpop.f32.mrb[50].mxu1 }
 0x3d2   : > { %v4123_v46 = vadd.f32 %v7904_v57, %v4122_v37  ;;  %v4124_v60 = vpop.f32.mrb[51].mxu1  ;;  %v4168_v11 = vmax.f32 %v4120_v16, 0.0 }
 0x3d4   : > { %v4169_v28 = vmax.f32 %v4123_v46, 0.0 }
 0x3d6   : > { %v4187_v39 = vpack.c.bf16 %v4169_v28, %v4168_v11  ;;  %v7990_v11 = vld [vmem:[%s8060_s7] sm:$0xf] }
 0x3d8   : > { %4827 = vmatmul.mubr.msk.bf16.gmra.mrb[60].mxu0 %vm1998_vm9, %v4187_v39  ;;  %v4471_v39 = vld [vmem:[%s8061_s8] sm:$0xff] }
 0x3d9   : > { %4474 = vperm.xlu0 %6084, %v4471_v39  }
 0x3de   : > { %v4127_v43 = vpop.f32.mrb[52].mxu1 }
 0x3df   : > { %v4128_v55 = vadd.f32 %v7904_v57, %v4127_v43  ;;  %v4129_v30 = vpop.f32.mrb[53].mxu1 }
 0x3e0   : > { %v4130_v36 = vpop.f32.mrb[54].mxu1 }
 0x3e1   : > { %v4131_v40 = vadd.f32 %v7904_v57, %v4130_v36  ;;  %v4132_v54 = vpop.f32.mrb[55].mxu1  ;;  %v4170_v61 = vmax.f32 %v4128_v55, 0.0 }
 0x3e3   : > { %v4171_v35 = vmax.f32 %v4131_v40, 0.0 }
 0x3e5   : > { %v4188_v1 = vpack.c.bf16 %v4171_v35, %v4170_v61 }
 0x3e7   : > { %4830 = vmatprep.mubr.msk.bf16.mxu0 %vm1998_vm9, %v4188_v1 }
 0x3eb   : > { %v4135_v38 = vpop.f32.mrb[56].mxu1 }
 0x3ec   : > { %v4136_v6 = vadd.f32 %v7904_v57, %v4135_v38  ;;  %v4137_v10 = vpop.f32.mrb[57].mxu1 }
 0x3ed   : > { %v4138_v14 = vpop.f32.mrb[58].mxu1 }
 0x3ee   : > { %v4139_v50 = vadd.f32 %v7904_v57, %v4138_v14  ;;  %v4140_v2 = vpop.f32.mrb[59].mxu1  ;;  %v4172_v0 = vmax.f32 %v4136_v6, 0.0 }
 0x3f0   : > { %v4173_v9 = vmax.f32 %v4139_v50, 0.0 }
 0x3f2   : > { %v4189_v19 = vpack.c.bf16 %v4173_v9, %v4172_v0 }
 0x3f4   : > { %4831 = vmatmul.mubr.msk.bf16.gmra.mrb[64].mxu0 %vm1998_vm9, %v4189_v19 }
 0x3f5   : > { %4758 = vmatprep.mubr.msk.bf16.mxu0 %vm1998_vm9, %v7990_v11 }
 0x401   : > { %v4804_v7 = vpop.f32.mrb[36].mxu0 }
 0x402   : > { %v4304_v48 = vadd.f32 %v4804_v7, %v7963_v29  ;;  %v4295_v8 = vpop.f32.mrb[37].mxu0 }
 0x403   : > { %v4296_v47 = vadd.f32 %v7963_v29, %v4295_v8  ;;  %v4805_v23 = vpop.f32.mrb[38].mxu0 }
 0x404   : > { %v4307_v57 = vadd.f32 %v4805_v23, %v7963_v29  ;;  %v4298_v21 = vpop.f32.mrb[39].mxu0  ;;  %v4424_v18 = vmax.f32 %v4304_v48, 0.0 }
 0x405   : > { %v4299_v63 = vadd.f32 %v7963_v29, %v4298_v21  ;;  %v4422_v12 = vmax.f32 %v4296_v47, 0.0 }
 0x406   : > { %v4425_v32 = vmax.f32 %v4307_v57, 0.0 }
 0x407   : > { %v4423_v26 = vmax.f32 %v4299_v63, 0.0 }
 0x408   : > { %v7969_v62 = vpack.c.bf16 %v4425_v32, %v4424_v18 }
 0x409   : > { %v4455_v51 = vpack.c.bf16 %v4423_v26, %v4422_v12 }
 0x40a   : > { %v4484_v12 = vsel %vm1998_vm9, %v7969_v62, 0 }
 0x40b   : > { %v4481_v32 = vsel %vm1998_vm9, %v4455_v51, 0 }
 0x41d   : > { %v4808_v33 = vpop.f32.mrb[40].mxu0 }
 0x41e   : > { %v4320_v5 = vadd.f32 %v4808_v33, %v7963_v29  ;;  %v4311_v27 = vpop.f32.mrb[41].mxu0 }
 0x41f   : > { %v4312_v59 = vadd.f32 %v7963_v29, %v4311_v27  ;;  %v4809_v44 = vpop.f32.mrb[42].mxu0 }
 0x420   : > { %v4323_v3 = vadd.f32 %v4809_v44, %v7963_v29  ;;  %v4314_v41 = vpop.f32.mrb[43].mxu0  ;;  %v4428_v56 = vmax.f32 %v4320_v5, 0.0 }
 0x421   : > { %v4315_v31 = vadd.f32 %v7963_v29, %v4314_v41  ;;  %v4426_v49 = vmax.f32 %v4312_v59, 0.0 }
 0x422   : > { %v4429_v24 = vmax.f32 %v4323_v3, 0.0 }
 0x423   : > { %v4427_v45 = vmax.f32 %v4315_v31, 0.0 }
 0x424   : > { %v7975_v53 = vpack.c.bf16 %v4429_v24, %v4428_v56 }
 0x425   : > { %v7977_v17 = vpack.c.bf16 %v4427_v45, %v4426_v49 }
 0x427   : > { %v4487_v62 = vsel %vm1998_vm9, %v7977_v17, 0 }
 0x445   : > { %v4812_v58 = vpop.f32.mrb[44].mxu0 }
 0x446   : > { %v4336_v20 = vadd.f32 %v4812_v58, %v7963_v29  ;;  %v4327_v34 = vpop.f32.mrb[45].mxu0  ;;  %v4490_v58 = vsel %vm1998_vm9, %v7975_v53, 0 }
 0x447   : > { %v4328_v25 = vadd.f32 %v7963_v29, %v4327_v34  ;;  %v4813_v42 = vpop.f32.mrb[46].mxu0 }
 0x448   : > { %v4339_v22 = vadd.f32 %v4813_v42, %v7963_v29  ;;  %v4330_v13 = vpop.f32.mrb[47].mxu0  ;;  %v4432_v4 = vmax.f32 %v4336_v20, 0.0 }
 0x449   : > { %v4331_v52 = vadd.f32 %v7963_v29, %v4330_v13  ;;  %v4430_v15 = vmax.f32 %v4328_v25, 0.0 }
 0x44a   : > { %v4433_v16 = vmax.f32 %v4339_v22, 0.0 }
 0x44b   : > { %v4431_v37 = vmax.f32 %v4331_v52, 0.0 }
 0x44c   : > { %v7983_v46 = vpack.c.bf16 %v4433_v16, %v4432_v4 }
 0x44d   : > { %v7985_v60 = vpack.c.bf16 %v4431_v37, %v4430_v15 }
 0x44f   : > { %v4493_v53 = vsel %vm1998_vm9, %v7985_v60, 0 }
 0x461   : > { %v4816_v28 = vpop.f32.mrb[48].mxu0 }
 0x462   : > { %v4352_v43 = vadd.f32 %v4816_v28, %v7963_v29  ;;  %v4343_v55 = vpop.f32.mrb[49].mxu0 }
 0x463   : > { %v4344_v30 = vadd.f32 %v7963_v29, %v4343_v55  ;;  %v4817_v36 = vpop.f32.mrb[50].mxu0 }
 0x464   : > { %v4355_v40 = vadd.f32 %v4817_v36, %v7963_v29  ;;  %v4346_v54 = vpop.f32.mrb[51].mxu0  ;;  %v4436_v35 = vmax.f32 %v4352_v43, 0.0  ;;  %v4496_v43 = vsel %vm1998_vm9, %v7983_v46, 0 }
 0x465   : > { %v4347_v61 = vadd.f32 %v7963_v29, %v4346_v54  ;;  %v4434_v38 = vmax.f32 %v4344_v30, 0.0 }
 0x466   : > { %v4437_v1 = vmax.f32 %v4355_v40, 0.0 }
 0x467   : > { %v4435_v6 = vmax.f32 %v4347_v61, 0.0 }
 0x468   : > { %v8001_v10 = vpack.c.bf16 %v4437_v1, %v4436_v35 }
 0x469   : > { %v8003_v14 = vpack.c.bf16 %v4435_v6, %v4434_v38 }
 0x471   : > { %v4820_v50 = vpop.f32.mrb[52].mxu0 }
 0x472   : > { %v4368_v2 = vadd.f32 %v4820_v50, %v7963_v29  ;;  %v4359_v0 = vpop.f32.mrb[53].mxu0 }
 0x473   : > { %v4360_v9 = vadd.f32 %v7963_v29, %v4359_v0  ;;  %v4821_v19 = vpop.f32.mrb[54].mxu0  ;;  %v4499_v0 = vsel %vm1998_vm9, %v8003_v14, 0 }
 0x474   : > { %v4371_v7 = vadd.f32 %v4821_v19, %v7963_v29  ;;  %v4362_v48 = vpop.f32.mrb[55].mxu0  ;;  %v4440_v47 = vmax.f32 %v4368_v2, 0.0 }
 0x475   : > { %v4363_v8 = vadd.f32 %v7963_v29, %v4362_v48  ;;  %v4438_v57 = vmax.f32 %v4360_v9, 0.0  ;;  %v4502_v9 = vsel %vm1998_vm9, %v8001_v10, 0 }
 0x476   : > { %v4441_v23 = vmax.f32 %v4371_v7, 0.0 }
 0x477   : > { %v4439_v21 = vmax.f32 %v4363_v8, 0.0 }
 0x478   : > { %v4464_v63 = vpack.c.bf16 %v4441_v23, %v4440_v47 }
 0x479   : > { %v4463_v18 = vpack.c.bf16 %v4439_v21, %v4438_v57 }
 0x47b   : > { %4853 = vmatprep.subr.msk.bf16.mxu0 %vm1998_vm9, %v4463_v18 }
 0x47c   : > { %4743 = vmatpush3.bf16.xpose.msra.mxu0 %v4481_v32 }
 0x47d   : > { %4854 = vmatprep.subr.msk.bf16.mxu0 %vm1998_vm9, %v4464_v63 }
 0x484   : > { %4745 = vmatpush3.bf16.xpose.msra.mxu0 %v4484_v12 }
 0x48b   : > { %v4824_v26 = vpop.f32.mrb[56].mxu0 }
 0x48c   : > { %v4384_v33 = vadd.f32 %v4824_v26, %v7963_v29  ;;  %v4375_v5 = vpop.f32.mrb[57].mxu0 }
 0x48d   : > { %v4376_v27 = vadd.f32 %v7963_v29, %v4375_v5  ;;  %v4825_v59 = vpop.f32.mrb[58].mxu0 }
 0x48e   : > { %v4387_v44 = vadd.f32 %v4825_v59, %v7963_v29  ;;  %v4378_v3 = vpop.f32.mrb[59].mxu0  ;;  %v4444_v51 = vmax.f32 %v4384_v33, 0.0 }
 0x48f   : > { %v4379_v41 = vadd.f32 %v7963_v29, %v4378_v3  ;;  %v4442_v56 = vmax.f32 %v4376_v27, 0.0 }
 0x490   : > { %v4445_v31 = vmax.f32 %v4387_v44, 0.0 }
 0x491   : > { %v4443_v24 = vmax.f32 %v4379_v41, 0.0 }
 0x492   : > { %v4466_v49 = vpack.c.bf16 %v4445_v31, %v4444_v51 }
 0x493   : > { %v4465_v45 = vpack.c.bf16 %v4443_v24, %v4442_v56 }
 0x495   : > { %4855 = vmatprep.subr.msk.bf16.mxu0 %vm1998_vm9, %v4465_v45 }
 0x496   : > { %4747 = vmatpush3.bf16.xpose.msra.mxu0 %v4487_v62 }
 0x497   : > { %4856 = vmatprep.subr.msk.bf16.mxu0 %vm1998_vm9, %v4466_v49 }
 0x49e   : > { %4749 = vmatpush3.bf16.xpose.msra.mxu0 %v4490_v58 }
 0x4ab   : > { %v4828_v20 = vpop.f32.mrb[60].mxu0 }
 0x4ac   : > { %v4400_v34 = vadd.f32 %v4828_v20, %v7963_v29  ;;  %v4391_v25 = vpop.f32.mrb[61].mxu0 }
 0x4ad   : > { %v4392_v42 = vadd.f32 %v7963_v29, %v4391_v25  ;;  %v4829_v22 = vpop.f32.mrb[62].mxu0 }
 0x4ae   : > { %v4403_v13 = vadd.f32 %v4829_v22, %v7963_v29  ;;  %v4394_v52 = vpop.f32.mrb[63].mxu0  ;;  %v4448_v17 = vmax.f32 %v4400_v34, 0.0 }
 0x4af   : > { %v4395_v4 = vadd.f32 %v7963_v29, %v4394_v52  ;;  %v4446_v15 = vmax.f32 %v4392_v42, 0.0 }
 0x4b0   : > { %v4449_v16 = vmax.f32 %v4403_v13, 0.0 }
 0x4b1   : > { %v4447_v37 = vmax.f32 %v4395_v4, 0.0 }
 0x4b2   : > { %v4468_v28 = vpack.c.bf16 %v4449_v16, %v4448_v17 }
 0x4b3   : > { %v4467_v39 = vpack.c.bf16 %v4447_v37, %v4446_v15 }
 0x4b5   : > { %4857 = vmatprep.subr.msk.bf16.mxu0 %vm1998_vm9, %v4467_v39 }
 0x4b6   : > { %4751 = vmatpush3.bf16.xpose.msra.mxu0 %v4493_v53 }
 0x4b7   : > { %4858 = vmatprep.subr.msk.bf16.mxu0 %vm1998_vm9, %v4468_v28 }
 0x4be   : > { %4753 = vmatpush3.bf16.xpose.msra.mxu0 %v4496_v43 }
 0x4c7   : > { %v4832_v55 = vpop.f32.mrb[64].mxu0 }
 0x4c8   : > { %v4416_v30 = vadd.f32 %v4832_v55, %v7963_v29  ;;  %v4407_v36 = vpop.f32.mrb[65].mxu0 }
 0x4c9   : > { %v4408_v40 = vadd.f32 %v7963_v29, %v4407_v36  ;;  %v4833_v54 = vpop.f32.mrb[66].mxu0 }
 0x4ca   : > { %v4419_v61 = vadd.f32 %v4833_v54, %v7963_v29  ;;  %v4410_v35 = vpop.f32.mrb[67].mxu0  ;;  %v4452_v1 = vmax.f32 %v4416_v30, 0.0 }
 0x4cb   : > { %v4411_v60 = vadd.f32 %v7963_v29, %v4410_v35  ;;  %v4450_v6 = vmax.f32 %v4408_v40, 0.0  ;;  %v4475_v29 = vpop.permute.xlu0 %4474 }
 0x4cc   : > { %v4453_v38 = vmax.f32 %v4419_v61, 0.0 }
 0x4cd   : > { %v4451_v50 = vmax.f32 %v4411_v60, 0.0 }
 0x4ce   : > { %v4470_v2 = vpack.c.bf16 %v4453_v38, %v4452_v1 }
 0x4cf   : > { %v4469_v46 = vpack.c.bf16 %v4451_v50, %v4450_v6 }
 0x4d1   : > { %4859 = vmatprep.subr.msk.bf16.mxu0 %vm1998_vm9, %v4469_v46 }
 0x4d2   : > { %4755 = vmatpush3.bf16.xpose.msra.mxu0 %v4499_v0 }
 0x4d3   : > { %4860 = vmatprep.subr.msk.bf16.mxu0 %vm1998_vm9, %v4470_v2 }
 0x4da   : > { %4757 = vmatpush3.bf16.xpose.msra.mxu0 %v4502_v9 }
 0x4e1   : > { %4759 = vmatmul.mubr.msk.bf16.vlgmr.msra.gmra.mrb[68].mxu0 %vm1998_vm9, %v7990_v11 }
 0x5b4   : > { %v4562_v19 = vpop.f32.mrb[68].mxu0 }
 0x5b5   : > { %v4563_v7 = vadd.f32 %v4562_v19, %v4475_v29  ;;  %v4564_v48 = vpop.f32.mrb[69].mxu0 }
 0x5b6   : > { %v4565_v14 = vadd.f32 %v4564_v48, %v4475_v29  ;;  %v4566_v8 = vpop.f32.mrb[70].mxu0 }
 0x5b7   : > { %4569 = vst [vmem:[%s332_s16] sm:$0xff] %v4563_v7  ;;  %v4567_v47 = vpop.f32.mrb[71].mxu0 }
 0x5b8   : > { %4570 = vst [vmem:[%s332_s16 + $0x8] sm:$0xff] %v4565_v14 }
 0x5b9 PF: > { %s19_s30 = sadd.s32 1, %s6112_s30  }
 0x5ba   : > { %p16_p4 = scmp.ge.s32.totalorder %s19_s30, 4  }
 0x5bc   :  { %18 = sbr.rel (!%p16_p4) target bundleno = 1 (0x1), region = 90 }

</bundles_post_ra>
